<compile_context>
chip_gen: v7x
topology: tpu7x:2x2x1
jax: 0.10.0
libtpu: 0.0.40
codegen_flags: <defaults>
</compile_context>

<pallas_src>
import functools
import math

import jax
import jax.numpy as jnp
from jax.experimental import pallas as pl
from jax.experimental.pallas import tpu as pltpu

_LN_EPS = 1e-5
_MASK_VALUE = -1e30
_VMEM_LIMIT = 32 * 1024 * 1024  # safe under v5e/v6e/v7x scoped/physical limits


# ----------------------------------------------------------------------------
# In-kernel helpers (pure functions of VMEM-resident values)
# ----------------------------------------------------------------------------

def _layernorm(z, gamma, beta, eps):
    mean = jnp.mean(z, axis=-1, keepdims=True)
    zc = z - mean
    var = jnp.mean(zc * zc, axis=-1, keepdims=True)
    return zc * jax.lax.rsqrt(var + eps) * gamma + beta


def _multihead_attention(q, k, v, *, n_heads, scale, causal, pad):
    """q: (Sq, D), k/v: (Sk, D) f32; heads live in lane slices of width Dh.

    Returns the lane-dense (Sq, D) attention output (heads merged in VMEM).
    """
    Sq, D = q.shape
    Sk = k.shape[0]
    Dh = D // n_heads

    mask = None
    if causal:
        qi = jax.lax.broadcasted_iota(jnp.int32, (Sq, Sk), 0)
        ki = jax.lax.broadcasted_iota(jnp.int32, (Sq, Sk), 1)
        mask = ki > qi
    if pad is not None:
        p_bool = pad > 0.5                       # (1, Sk), broadcasts over rows
        mask = p_bool if mask is None else jnp.logical_or(mask, p_bool)

    outs = []
    for h in range(n_heads):                     # static unroll; H is small
        lo = h * Dh
        q_h = q[:, lo:lo + Dh].astype(jnp.bfloat16)
        k_h = k[:, lo:lo + Dh].astype(jnp.bfloat16)
        v_h = v[:, lo:lo + Dh].astype(jnp.bfloat16)
        # scores: contract over Dh without an explicit transpose
        s = jax.lax.dot_general(q_h, k_h, (((1,), (1,)), ((), ())),
                                preferred_element_type=jnp.float32) * scale
        if mask is not None:
            s = jnp.where(mask, jnp.float32(_MASK_VALUE), s)
        s = s - jnp.max(s, axis=-1, keepdims=True)
        p_un = jnp.exp(s)                        # unnormalized probabilities
        o_h = jnp.dot(p_un.astype(jnp.bfloat16), v_h,
                      preferred_element_type=jnp.float32)
        # normalize AFTER the PV matmul (Dh columns instead of Sk)
        o_h = o_h * pl.reciprocal(jnp.sum(p_un, axis=-1, keepdims=True),
                                  approx=True)
        outs.append(o_h)
    return jnp.concatenate(outs, axis=-1)        # (Sq, D), lane-dense


# ----------------------------------------------------------------------------
# Fused-block kernels (one pallas_call per transformer sub-block)
# ----------------------------------------------------------------------------

def _self_attn_block_body(x_ref, wqkv_ref, bqkv_ref, wo_ref, bo_ref,
                          g_ref, b_ref, o_ref, pad, *, n_heads, scale, causal):
    x = x_ref[0]                                             # (S, D) f32
    D = x.shape[-1]
    qkv = jnp.dot(x.astype(jnp.bfloat16), wqkv_ref[...],
                  preferred_element_type=jnp.float32) + bqkv_ref[...]   # (S, 3D)
    attn = _multihead_attention(qkv[:, :D], qkv[:, D:2 * D], qkv[:, 2 * D:],
                                n_heads=n_heads, scale=scale,
                                causal=causal, pad=pad)
    y = jnp.dot(attn.astype(jnp.bfloat16), wo_ref[...],
                preferred_element_type=jnp.float32) + bo_ref[...]
    o_ref[0] = _layernorm(x + y, g_ref[...], b_ref[...], _LN_EPS)


def _self_attn_kernel(x_ref, wqkv_ref, bqkv_ref, wo_ref, bo_ref, g_ref, b_ref,
                      o_ref, *, n_heads, scale, causal):
    _self_attn_block_body(x_ref, wqkv_ref, bqkv_ref, wo_ref, bo_ref, g_ref,
                          b_ref, o_ref, None,
                          n_heads=n_heads, scale=scale, causal=causal)


def _self_attn_kernel_pad(x_ref, wqkv_ref, bqkv_ref, wo_ref, bo_ref, g_ref,
                          b_ref, pad_ref, o_ref, *, n_heads, scale, causal):
    _self_attn_block_body(x_ref, wqkv_ref, bqkv_ref, wo_ref, bo_ref, g_ref,
                          b_ref, o_ref, pad_ref[0],
                          n_heads=n_heads, scale=scale, causal=causal)


def _cross_attn_block_body(x_ref, m_ref, wq_ref, bq_ref, wkv_ref, bkv_ref,
                           wo_ref, bo_ref, g_ref, b_ref, o_ref, pad,
                           *, n_heads, scale):
    x = x_ref[0]                                             # (Sq, D)
    mem = m_ref[0]                                           # (Sk, D)
    D = x.shape[-1]
    q = jnp.dot(x.astype(jnp.bfloat16), wq_ref[...],
                preferred_element_type=jnp.float32) + bq_ref[...]        # (Sq, D)
    kv = jnp.dot(mem.astype(jnp.bfloat16), wkv_ref[...],
                 preferred_element_type=jnp.float32) + bkv_ref[...]      # (Sk, 2D)
    attn = _multihead_attention(q, kv[:, :D], kv[:, D:],
                                n_heads=n_heads, scale=scale,
                                causal=False, pad=pad)
    y = jnp.dot(attn.astype(jnp.bfloat16), wo_ref[...],
                preferred_element_type=jnp.float32) + bo_ref[...]
    o_ref[0] = _layernorm(x + y, g_ref[...], b_ref[...], _LN_EPS)


def _cross_attn_kernel(x_ref, m_ref, wq_ref, bq_ref, wkv_ref, bkv_ref, wo_ref,
                       bo_ref, g_ref, b_ref, o_ref, *, n_heads, scale):
    _cross_attn_block_body(x_ref, m_ref, wq_ref, bq_ref, wkv_ref, bkv_ref,
                           wo_ref, bo_ref, g_ref, b_ref, o_ref, None,
                           n_heads=n_heads, scale=scale)


def _cross_attn_kernel_pad(x_ref, m_ref, wq_ref, bq_ref, wkv_ref, bkv_ref,
                           wo_ref, bo_ref, g_ref, b_ref, pad_ref, o_ref,
                           *, n_heads, scale):
    _cross_attn_block_body(x_ref, m_ref, wq_ref, bq_ref, wkv_ref, bkv_ref,
                           wo_ref, bo_ref, g_ref, b_ref, o_ref, pad_ref[0],
                           n_heads=n_heads, scale=scale)


def _ffn_block_kernel(x_ref, w1_ref, b1_ref, w2_ref, b2_ref, g_ref, b_ref,
                      o_ref):
    # Fused X@W1+b1 -> ReLU -> @W2+b2 -> residual add -> LayerNorm.
    # The (S, F) hidden never touches HBM.
    x = x_ref[0]                                             # (S, D)
    h = jnp.dot(x.astype(jnp.bfloat16), w1_ref[...],
                preferred_element_type=jnp.float32) + b1_ref[...]
    h = jnp.maximum(h, 0.0)
    y = jnp.dot(h.astype(jnp.bfloat16), w2_ref[...],
                preferred_element_type=jnp.float32) + b2_ref[...]
    o_ref[0] = _layernorm(x + y, g_ref[...], b_ref[...], _LN_EPS)


# ----------------------------------------------------------------------------
# pallas_call wrappers
# ----------------------------------------------------------------------------

def _cp():
    return pltpu.CompilerParams(dimension_semantics=("parallel",),
                                vmem_limit_bytes=_VMEM_LIMIT)


def _full_spec(shape):
    ndim = len(shape)
    return pl.BlockSpec(shape, lambda b, _n=ndim: (0,) * _n)


def self_attn_block(x, p, ln_g, ln_b, *, n_heads, causal, key_padding_mask):
    """LayerNorm(x + SelfAttention(x)) in a single pallas_call. x: (B, S, D)."""
    B, S, D = x.shape
    scale = 1.0 / math.sqrt(D // n_heads)
    xspec = pl.BlockSpec((1, S, D), lambda b: (b, 0, 0))
    in_specs = [
        xspec,
        _full_spec((D, 3 * D)), _full_spec((1, 3 * D)),
        _full_spec((D, D)), _full_spec((1, D)),
        _full_spec((1, D)), _full_spec((1, D)),
    ]
    args = [x, p["wqkv"], p["bqkv"].reshape(1, -1), p["wo"],
            p["bo"].reshape(1, -1), ln_g.reshape(1, -1), ln_b.reshape(1, -1)]
    if key_padding_mask is None:
        kern = functools.partial(_self_attn_kernel, n_heads=n_heads,
                                 scale=scale, causal=causal)
    else:
        pad = jnp.where(key_padding_mask, 1.0, 0.0).astype(jnp.float32)
        args.append(pad.reshape(B, 1, S))
        in_specs.append(pl.BlockSpec((1, 1, S), lambda b: (b, 0, 0)))
        kern = functools.partial(_self_attn_kernel_pad, n_heads=n_heads,
                                 scale=scale, causal=causal)
    return pl.pallas_call(
        kern,
        out_shape=jax.ShapeDtypeStruct((B, S, D), jnp.float32),
        grid=(B,), in_specs=in_specs, out_specs=xspec,
        compiler_params=_cp(),
    )(*args)


def cross_attn_block(x, memory, p, ln_g, ln_b, *, n_heads, key_padding_mask):
    """LayerNorm(x + CrossAttention(x, memory)). x: (B, Sq, D), memory: (B, Sk, D)."""
    B, Sq, D = x.shape
    Sk = memory.shape[1]
    scale = 1.0 / math.sqrt(D // n_heads)
    xspec = pl.BlockSpec((1, Sq, D), lambda b: (b, 0, 0))
    mspec = pl.BlockSpec((1, Sk, D), lambda b: (b, 0, 0))
    in_specs = [
        xspec, mspec,
        _full_spec((D, D)), _full_spec((1, D)),
        _full_spec((D, 2 * D)), _full_spec((1, 2 * D)),
        _full_spec((D, D)), _full_spec((1, D)),
        _full_spec((1, D)), _full_spec((1, D)),
    ]
    args = [x, memory, p["wq"], p["bq"].reshape(1, -1), p["wkv"],
            p["bkv"].reshape(1, -1), p["wo"], p["bo"].reshape(1, -1),
            ln_g.reshape(1, -1), ln_b.reshape(1, -1)]
    if key_padding_mask is None:
        kern = functools.partial(_cross_attn_kernel, n_heads=n_heads, scale=scale)
    else:
        pad = jnp.where(key_padding_mask, 1.0, 0.0).astype(jnp.float32)
        args.append(pad.reshape(B, 1, Sk))
        in_specs.append(pl.BlockSpec((1, 1, Sk), lambda b: (b, 0, 0)))
        kern = functools.partial(_cross_attn_kernel_pad, n_heads=n_heads, scale=scale)
    return pl.pallas_call(
        kern,
        out_shape=jax.ShapeDtypeStruct((B, Sq, D), jnp.float32),
        grid=(B,), in_specs=in_specs, out_specs=xspec,
        compiler_params=_cp(),
    )(*args)


def ffn_block(x, p, ln_g, ln_b):
    """LayerNorm(x + FFN(x)) in a single pallas_call. x: (B, S, D)."""
    B, S, D = x.shape
    F = p["w1"].shape[1]
    xspec = pl.BlockSpec((1, S, D), lambda b: (b, 0, 0))
    # TODO(synk): for realistic d_model/d_ff, tile the F (reduction) axis with a
    # VMEM accumulator instead of keeping both weight matrices fully resident.
    return pl.pallas_call(
        _ffn_block_kernel,
        out_shape=jax.ShapeDtypeStruct((B, S, D), jnp.float32),
        grid=(B,),
        in_specs=[
            xspec,
            _full_spec((D, F)), _full_spec((1, F)),
            _full_spec((F, D)), _full_spec((1, D)),
            _full_spec((1, D)), _full_spec((1, D)),
        ],
        out_specs=xspec,
        compiler_params=_cp(),
    )(x, p["w1"], p["b1"].reshape(1, F), p["w2"], p["b2"].reshape(1, D),
      ln_g.reshape(1, D), ln_b.reshape(1, D))


# ----------------------------------------------------------------------------
# Transformer layers (thin glue around the fused kernels)
# ----------------------------------------------------------------------------

def encoder_layer(x, p, n_heads, src_key_padding_mask):
    x = self_attn_block(x, p["self_attn"], p["ln1_g"], p["ln1_b"],
                        n_heads=n_heads, causal=False,
                        key_padding_mask=src_key_padding_mask)
    x = ffn_block(x, p["ffn"], p["ln2_g"], p["ln2_b"])
    return x


def decoder_layer(x, memory, p, n_heads, use_causal_mask,
                  tgt_key_padding_mask, src_key_padding_mask):
    x = self_attn_block(x, p["self_attn"], p["ln1_g"], p["ln1_b"],
                        n_heads=n_heads, causal=use_causal_mask,
                        key_padding_mask=tgt_key_padding_mask)
    x = cross_attn_block(x, memory, p["cross_attn"], p["ln2_g"], p["ln2_b"],
                         n_heads=n_heads, key_padding_mask=src_key_padding_mask)
    x = ffn_block(x, p["ffn"], p["ln3_g"], p["ln3_b"])
    return x


def sinusoidal_pe(max_len, d_model):
    pos = jnp.arange(max_len, dtype=jnp.float32)[:, None]
    i = jnp.arange(0, d_model, 2, dtype=jnp.float32)[None, :]
    div = jnp.exp(-math.log(10000.0) * i / d_model)
    pe = jnp.zeros((max_len, d_model), jnp.float32)
    pe = pe.at[:, 0::2].set(jnp.sin(pos * div))
    pe = pe.at[:, 1::2].set(jnp.cos(pos * div))
    return pe


def embedding(tokens, params, d_model):
    # Token embedding (scaled) + sinusoidal PE; dropout = identity (eval mode).
    emb = jnp.take(params["emb_table"], tokens, axis=0) * math.sqrt(d_model)
    S = tokens.shape[1]
    return emb + params["pe"][:S][None, :, :]


def transformer_forward(params, src_tokens, tgt_tokens, *, n_heads, d_model,
                        use_tgt_causal_mask=True,
                        src_key_padding_mask=None, tgt_key_padding_mask=None):
    # TODO(synk): arbitrary user-supplied additive attn_mask tensors are not plumbed;
    # the standard causal mask is generated in-kernel when use_tgt_causal_mask=True.
    src_embed = embedding(src_tokens, params["embedding"], d_model)
    tgt_embed = embedding(tgt_tokens, params["embedding"], d_model)

    memory = src_embed
    for lp in params["encoder"]:
        memory = encoder_layer(memory, lp, n_heads, src_key_padding_mask)

    out = tgt_embed
    for lp in params["decoder"]:
        out = decoder_layer(out, memory, lp, n_heads, use_tgt_causal_mask,
                            tgt_key_padding_mask, src_key_padding_mask)
    # NOTE: the reference module defines `lm_head` but does NOT apply it in forward();
    # we match that and return the decoder output of shape (B, T, d_model).
    return out


# ----------------------------------------------------------------------------
# Deterministic parameter initialization (fused projection layouts, bf16 weights)
# ----------------------------------------------------------------------------

def _bf16(x):
    return x.astype(jnp.bfloat16)


def _init_self_attn(key, d_model):
    k1, k2 = jax.random.split(key)
    s = 0.02
    return {
        "wqkv": _bf16(s * jax.random.normal(k1, (d_model, 3 * d_model), jnp.float32)),
        "bqkv": jnp.zeros((3 * d_model,), jnp.float32),
        "wo": _bf16(s * jax.random.normal(k2, (d_model, d_model), jnp.float32)),
        "bo": jnp.zeros((d_model,), jnp.float32),
    }


def _init_cross_attn(key, d_model):
    k1, k2, k3 = jax.random.split(key, 3)
    s = 0.02
    return {
        "wq": _bf16(s * jax.random.normal(k1, (d_model, d_model), jnp.float32)),
        "bq": jnp.zeros((d_model,), jnp.float32),
        "wkv": _bf16(s * jax.random.normal(k2, (d_model, 2 * d_model), jnp.float32)),
        "bkv": jnp.zeros((2 * d_model,), jnp.float32),
        "wo": _bf16(s * jax.random.normal(k3, (d_model, d_model), jnp.float32)),
        "bo": jnp.zeros((d_model,), jnp.float32),
    }


def _init_ffn(key, d_model, d_ff):
    k1, k2 = jax.random.split(key)
    s = 0.02
    return {
        "w1": _bf16(s * jax.random.normal(k1, (d_model, d_ff), jnp.float32)),
        "b1": jnp.zeros((d_ff,), jnp.float32),
        "w2": _bf16(s * jax.random.normal(k2, (d_ff, d_model), jnp.float32)),
        "b2": jnp.zeros((d_model,), jnp.float32),
    }


def init_params(key, vocab_size, d_model, num_layers, max_len=64):
    d_ff = 4 * d_model
    keys = jax.random.split(key, 2 + 2 * num_layers)
    params = {
        "embedding": {
            "emb_table": 0.02 * jax.random.normal(keys[0], (vocab_size, d_model), jnp.float32),
            "pe": sinusoidal_pe(max_len, d_model),
        },
        "encoder": [],
        "decoder": [],
        # lm_head params (defined but unused by forward, mirroring the PyTorch __init__):
        "lm_head_w": 0.02 * jax.random.normal(keys[1], (d_model, vocab_size), jnp.float32),
        "lm_head_b": jnp.zeros((vocab_size,), jnp.float32),
    }
    for l in range(num_layers):
        ka, kf = jax.random.split(keys[2 + l])
        params["encoder"].append({
            "self_attn": _init_self_attn(ka, d_model),
            "ffn": _init_ffn(kf, d_model, d_ff),
            "ln1_g": jnp.ones((d_model,), jnp.float32), "ln1_b": jnp.zeros((d_model,), jnp.float32),
            "ln2_g": jnp.ones((d_model,), jnp.float32), "ln2_b": jnp.zeros((d_model,), jnp.float32),
        })
    for l in range(num_layers):
        ka, kc, kf = jax.random.split(keys[2 + num_layers + l], 3)
        params["decoder"].append({
            "self_attn": _init_self_attn(ka, d_model),
            "cross_attn": _init_cross_attn(kc, d_model),
            "ffn": _init_ffn(kf, d_model, d_ff),
            "ln1_g": jnp.ones((d_model,), jnp.float32), "ln1_b": jnp.zeros((d_model,), jnp.float32),
            "ln2_g": jnp.ones((d_model,), jnp.float32), "ln2_b": jnp.zeros((d_model,), jnp.float32),
            "ln3_g": jnp.ones((d_model,), jnp.float32), "ln3_b": jnp.zeros((d_model,), jnp.float32),
        })
    return params


# ----------------------------------------------------------------------------
# Main
# ----------------------------------------------------------------------------

if __name__ == "__main__":
    vocab_size = 32
    d_model = 32
    n_heads = 4
    num_layers = 2
    batch = 2
    src_len = 8
    tgt_len = 8

    root = jax.random.PRNGKey(0)
    k_params, k_src, k_tgt = jax.random.split(root, 3)

    params = init_params(k_params, vocab_size, d_model, num_layers)

    src_tokens = jax.random.randint(k_src, (batch, src_len), 0, vocab_size, dtype=jnp.int32)
    tgt_tokens = jax.random.randint(k_tgt, (batch, tgt_len), 0, vocab_size, dtype=jnp.int32)

    # TODO(synk): dropout from the reference module is treated as identity (eval mode).
    fwd = jax.jit(functools.partial(
        transformer_forward, n_heads=n_heads, d_model=d_model,
        use_tgt_causal_mask=True,
        src_key_padding_mask=None, tgt_key_padding_mask=None))

    out = fwd(params, src_tokens, tgt_tokens)
    out = jax.block_until_ready(out)
    assert out.shape == (batch, tgt_len, d_model), out.shape
    assert bool(jnp.all(jnp.isfinite(out)))
    print("KERNEL_OK")
</pallas_src>

<mosaic_0001>
module attributes {stable_mosaic.version = 11 : i64} {
  func.func @_self_attn_kernel(%arg0: i32, %arg1: memref<1x8x32xf32, #tpu.memory_space<vmem>>, %arg2: memref<32x96xbf16, #tpu.memory_space<vmem>>, %arg3: memref<1x96xf32, #tpu.memory_space<vmem>>, %arg4: memref<32x32xbf16, #tpu.memory_space<vmem>>, %arg5: memref<1x32xf32, #tpu.memory_space<vmem>>, %arg6: memref<1x32xf32, #tpu.memory_space<vmem>>, %arg7: memref<1x32xf32, #tpu.memory_space<vmem>>, %arg8: memref<1x8x32xf32, #tpu.memory_space<vmem>>) attributes {dimension_semantics = [#tpu.dimension_semantics<parallel>], iteration_bounds = array<i64: 2>, scalar_prefetch = 0 : i64, scratch_operands = 0 : i64, tpu.core_type = #tpu.core_type<tc>, window_params = [{transform_indices = @transform_0, window_bounds = array<i64: 1, 8, 32>}, {pipeline_mode = #tpu.pipeline_mode<synchronous>, transform_indices = @transform_1, window_bounds = array<i64: 32, 96>}, {pipeline_mode = #tpu.pipeline_mode<synchronous>, transform_indices = @transform_2, window_bounds = array<i64: 1, 96>}, {pipeline_mode = #tpu.pipeline_mode<synchronous>, transform_indices = @transform_3, window_bounds = array<i64: 32, 32>}, {pipeline_mode = #tpu.pipeline_mode<synchronous>, transform_indices = @transform_4, window_bounds = array<i64: 1, 32>}, {pipeline_mode = #tpu.pipeline_mode<synchronous>, transform_indices = @transform_5, window_bounds = array<i64: 1, 32>}, {pipeline_mode = #tpu.pipeline_mode<synchronous>, transform_indices = @transform_6, window_bounds = array<i64: 1, 32>}, {transform_indices = @transform_7, window_bounds = array<i64: 1, 8, 32>}]} {
    %c0 = arith.constant 0 : index
    %c0_0 = arith.constant 0 : index
    %c0_1 = arith.constant 0 : index
    %0 = vector.load %arg1[%c0, %c0_0, %c0_1] : memref<1x8x32xf32, #tpu.memory_space<vmem>>, vector<1x8x32xf32>
    %1 = vector.shape_cast %0 : vector<1x8x32xf32> to vector<8x32xf32>
    %2 = arith.truncf %1 : vector<8x32xf32> to vector<8x32xbf16>
    %c0_2 = arith.constant 0 : index
    %c0_3 = arith.constant 0 : index
    %3 = vector.load %arg2[%c0_2, %c0_3] : memref<32x96xbf16, #tpu.memory_space<vmem>>, vector<32x96xbf16>
    %cst = arith.constant dense<0.000000e+00> : vector<8x96xf32>
    %4 = tpu.matmul %2, %3, %cst {dimension_numbers = #tpu.dot_dimension_numbers<[1], [0], [0], [1], [0, 0, 1, 1], [], []>} : vector<8x32xbf16>, vector<32x96xbf16>, vector<8x96xf32> -> vector<8x96xf32>
    %c0_4 = arith.constant 0 : index
    %c0_5 = arith.constant 0 : index
    %5 = vector.load %arg3[%c0_4, %c0_5] : memref<1x96xf32, #tpu.memory_space<vmem>>, vector<1x96xf32>
    %6 = vector.broadcast %5 : vector<1x96xf32> to vector<8x96xf32>
    %7 = arith.addf %4, %6 : vector<8x96xf32>
    %8 = vector.extract_strided_slice %7 {offsets = [0, 0], sizes = [8, 32], strides = [1, 1]} : vector<8x96xf32> to vector<8x32xf32>
    %9 = vector.extract_strided_slice %7 {offsets = [0, 32], sizes = [8, 32], strides = [1, 1]} : vector<8x96xf32> to vector<8x32xf32>
    %10 = vector.extract_strided_slice %7 {offsets = [0, 64], sizes = [8, 32], strides = [1, 1]} : vector<8x96xf32> to vector<8x32xf32>
    %11 = tpu.iota {dimensions = array<i32: 0>} : vector<8x8xi32>
    %12 = tpu.iota {dimensions = array<i32: 1>} : vector<8x8xi32>
    %13 = arith.cmpi sgt, %12, %11 : vector<8x8xi32>
    %14 = vector.extract_strided_slice %8 {offsets = [0, 0], sizes = [8, 8], strides = [1, 1]} : vector<8x32xf32> to vector<8x8xf32>
    %15 = arith.truncf %14 : vector<8x8xf32> to vector<8x8xbf16>
    %16 = vector.extract_strided_slice %9 {offsets = [0, 0], sizes = [8, 8], strides = [1, 1]} : vector<8x32xf32> to vector<8x8xf32>
    %17 = arith.truncf %16 : vector<8x8xf32> to vector<8x8xbf16>
    %18 = vector.extract_strided_slice %10 {offsets = [0, 0], sizes = [8, 8], strides = [1, 1]} : vector<8x32xf32> to vector<8x8xf32>
    %19 = arith.truncf %18 : vector<8x8xf32> to vector<8x8xbf16>
    %cst_6 = arith.constant dense<0.000000e+00> : vector<8x8xf32>
    %20 = tpu.matmul %15, %17, %cst_6 {dimension_numbers = #tpu.dot_dimension_numbers<[1], [1], [0], [0], [0, 0, 1, 0], [], []>} : vector<8x8xbf16>, vector<8x8xbf16>, vector<8x8xf32> -> vector<8x8xf32>
    %cst_7 = arith.constant 0.353553385 : f32
    %21 = vector.broadcast %cst_7 : f32 to vector<8x8xf32>
    %22 = arith.mulf %20, %21 : vector<8x8xf32>
    %cst_8 = arith.constant -1.000000e+30 : f32
    %23 = vector.broadcast %cst_8 : f32 to vector<8x8xf32>
    %24 = arith.select %13, %23, %22 : vector<8x8xi1>, vector<8x8xf32>
    %cst_9 = arith.constant dense<0xFF800000> : vector<8xf32>
    %25 = vector.multi_reduction <maximumf>, %24, %cst_9 [1] : vector<8x8xf32> to vector<8xf32>
    %26 = vector.shape_cast %25 : vector<8xf32> to vector<8x1xf32>
    %27 = vector.broadcast %26 : vector<8x1xf32> to vector<8x8xf32>
    %28 = arith.subf %24, %27 : vector<8x8xf32>
    %29 = math.exp %28 : vector<8x8xf32>
    %30 = arith.truncf %29 : vector<8x8xf32> to vector<8x8xbf16>
    %cst_10 = arith.constant dense<0.000000e+00> : vector<8x8xf32>
    %31 = tpu.matmul %30, %19, %cst_10 {dimension_numbers = #tpu.dot_dimension_numbers<[1], [0], [0], [1], [0, 0, 1, 1], [], []>} : vector<8x8xbf16>, vector<8x8xbf16>, vector<8x8xf32> -> vector<8x8xf32>
    %cst_11 = arith.constant dense<0.000000e+00> : vector<8xf32>
    %32 = vector.multi_reduction <add>, %29, %cst_11 [1] : vector<8x8xf32> to vector<8xf32>
    %33 = vector.shape_cast %32 : vector<8xf32> to vector<8x1xf32>
    %34 = tpu.reciprocal %33 {approx = true} : vector<8x1xf32> -> vector<8x1xf32>
    %35 = vector.broadcast %34 : vector<8x1xf32> to vector<8x8xf32>
    %36 = arith.mulf %31, %35 : vector<8x8xf32>
    %37 = vector.extract_strided_slice %8 {offsets = [0, 8], sizes = [8, 8], strides = [1, 1]} : vector<8x32xf32> to vector<8x8xf32>
    %38 = arith.truncf %37 : vector<8x8xf32> to vector<8x8xbf16>
    %39 = vector.extract_strided_slice %9 {offsets = [0, 8], sizes = [8, 8], strides = [1, 1]} : vector<8x32xf32> to vector<8x8xf32>
    %40 = arith.truncf %39 : vector<8x8xf32> to vector<8x8xbf16>
    %41 = vector.extract_strided_slice %10 {offsets = [0, 8], sizes = [8, 8], strides = [1, 1]} : vector<8x32xf32> to vector<8x8xf32>
    %42 = arith.truncf %41 : vector<8x8xf32> to vector<8x8xbf16>
    %cst_12 = arith.constant dense<0.000000e+00> : vector<8x8xf32>
    %43 = tpu.matmul %38, %40, %cst_12 {dimension_numbers = #tpu.dot_dimension_numbers<[1], [1], [0], [0], [0, 0, 1, 0], [], []>} : vector<8x8xbf16>, vector<8x8xbf16>, vector<8x8xf32> -> vector<8x8xf32>
    %cst_13 = arith.constant 0.353553385 : f32
    %44 = vector.broadcast %cst_13 : f32 to vector<8x8xf32>
    %45 = arith.mulf %43, %44 : vector<8x8xf32>
    %cst_14 = arith.constant -1.000000e+30 : f32
    %46 = vector.broadcast %cst_14 : f32 to vector<8x8xf32>
    %47 = arith.select %13, %46, %45 : vector<8x8xi1>, vector<8x8xf32>
    %cst_15 = arith.constant dense<0xFF800000> : vector<8xf32>
    %48 = vector.multi_reduction <maximumf>, %47, %cst_15 [1] : vector<8x8xf32> to vector<8xf32>
    %49 = vector.shape_cast %48 : vector<8xf32> to vector<8x1xf32>
    %50 = vector.broadcast %49 : vector<8x1xf32> to vector<8x8xf32>
    %51 = arith.subf %47, %50 : vector<8x8xf32>
    %52 = math.exp %51 : vector<8x8xf32>
    %53 = arith.truncf %52 : vector<8x8xf32> to vector<8x8xbf16>
    %cst_16 = arith.constant dense<0.000000e+00> : vector<8x8xf32>
    %54 = tpu.matmul %53, %42, %cst_16 {dimension_numbers = #tpu.dot_dimension_numbers<[1], [0], [0], [1], [0, 0, 1, 1], [], []>} : vector<8x8xbf16>, vector<8x8xbf16>, vector<8x8xf32> -> vector<8x8xf32>
    %cst_17 = arith.constant dense<0.000000e+00> : vector<8xf32>
    %55 = vector.multi_reduction <add>, %52, %cst_17 [1] : vector<8x8xf32> to vector<8xf32>
    %56 = vector.shape_cast %55 : vector<8xf32> to vector<8x1xf32>
    %57 = tpu.reciprocal %56 {approx = true} : vector<8x1xf32> -> vector<8x1xf32>
    %58 = vector.broadcast %57 : vector<8x1xf32> to vector<8x8xf32>
    %59 = arith.mulf %54, %58 : vector<8x8xf32>
    %60 = vector.extract_strided_slice %8 {offsets = [0, 16], sizes = [8, 8], strides = [1, 1]} : vector<8x32xf32> to vector<8x8xf32>
    %61 = arith.truncf %60 : vector<8x8xf32> to vector<8x8xbf16>
    %62 = vector.extract_strided_slice %9 {offsets = [0, 16], sizes = [8, 8], strides = [1, 1]} : vector<8x32xf32> to vector<8x8xf32>
    %63 = arith.truncf %62 : vector<8x8xf32> to vector<8x8xbf16>
    %64 = vector.extract_strided_slice %10 {offsets = [0, 16], sizes = [8, 8], strides = [1, 1]} : vector<8x32xf32> to vector<8x8xf32>
    %65 = arith.truncf %64 : vector<8x8xf32> to vector<8x8xbf16>
    %cst_18 = arith.constant dense<0.000000e+00> : vector<8x8xf32>
    %66 = tpu.matmul %61, %63, %cst_18 {dimension_numbers = #tpu.dot_dimension_numbers<[1], [1], [0], [0], [0, 0, 1, 0], [], []>} : vector<8x8xbf16>, vector<8x8xbf16>, vector<8x8xf32> -> vector<8x8xf32>
    %cst_19 = arith.constant 0.353553385 : f32
    %67 = vector.broadcast %cst_19 : f32 to vector<8x8xf32>
    %68 = arith.mulf %66, %67 : vector<8x8xf32>
    %cst_20 = arith.constant -1.000000e+30 : f32
    %69 = vector.broadcast %cst_20 : f32 to vector<8x8xf32>
    %70 = arith.select %13, %69, %68 : vector<8x8xi1>, vector<8x8xf32>
    %cst_21 = arith.constant dense<0xFF800000> : vector<8xf32>
    %71 = vector.multi_reduction <maximumf>, %70, %cst_21 [1] : vector<8x8xf32> to vector<8xf32>
    %72 = vector.shape_cast %71 : vector<8xf32> to vector<8x1xf32>
    %73 = vector.broadcast %72 : vector<8x1xf32> to vector<8x8xf32>
    %74 = arith.subf %70, %73 : vector<8x8xf32>
    %75 = math.exp %74 : vector<8x8xf32>
    %76 = arith.truncf %75 : vector<8x8xf32> to vector<8x8xbf16>
    %cst_22 = arith.constant dense<0.000000e+00> : vector<8x8xf32>
    %77 = tpu.matmul %76, %65, %cst_22 {dimension_numbers = #tpu.dot_dimension_numbers<[1], [0], [0], [1], [0, 0, 1, 1], [], []>} : vector<8x8xbf16>, vector<8x8xbf16>, vector<8x8xf32> -> vector<8x8xf32>
    %cst_23 = arith.constant dense<0.000000e+00> : vector<8xf32>
    %78 = vector.multi_reduction <add>, %75, %cst_23 [1] : vector<8x8xf32> to vector<8xf32>
    %79 = vector.shape_cast %78 : vector<8xf32> to vector<8x1xf32>
    %80 = tpu.reciprocal %79 {approx = true} : vector<8x1xf32> -> vector<8x1xf32>
    %81 = vector.broadcast %80 : vector<8x1xf32> to vector<8x8xf32>
    %82 = arith.mulf %77, %81 : vector<8x8xf32>
    %83 = vector.extract_strided_slice %8 {offsets = [0, 24], sizes = [8, 8], strides = [1, 1]} : vector<8x32xf32> to vector<8x8xf32>
    %84 = arith.truncf %83 : vector<8x8xf32> to vector<8x8xbf16>
    %85 = vector.extract_strided_slice %9 {offsets = [0, 24], sizes = [8, 8], strides = [1, 1]} : vector<8x32xf32> to vector<8x8xf32>
    %86 = arith.truncf %85 : vector<8x8xf32> to vector<8x8xbf16>
    %87 = vector.extract_strided_slice %10 {offsets = [0, 24], sizes = [8, 8], strides = [1, 1]} : vector<8x32xf32> to vector<8x8xf32>
    %88 = arith.truncf %87 : vector<8x8xf32> to vector<8x8xbf16>
    %cst_24 = arith.constant dense<0.000000e+00> : vector<8x8xf32>
    %89 = tpu.matmul %84, %86, %cst_24 {dimension_numbers = #tpu.dot_dimension_numbers<[1], [1], [0], [0], [0, 0, 1, 0], [], []>} : vector<8x8xbf16>, vector<8x8xbf16>, vector<8x8xf32> -> vector<8x8xf32>
    %cst_25 = arith.constant 0.353553385 : f32
    %90 = vector.broadcast %cst_25 : f32 to vector<8x8xf32>
    %91 = arith.mulf %89, %90 : vector<8x8xf32>
    %cst_26 = arith.constant -1.000000e+30 : f32
    %92 = vector.broadcast %cst_26 : f32 to vector<8x8xf32>
    %93 = arith.select %13, %92, %91 : vector<8x8xi1>, vector<8x8xf32>
    %cst_27 = arith.constant dense<0xFF800000> : vector<8xf32>
    %94 = vector.multi_reduction <maximumf>, %93, %cst_27 [1] : vector<8x8xf32> to vector<8xf32>
    %95 = vector.shape_cast %94 : vector<8xf32> to vector<8x1xf32>
    %96 = vector.broadcast %95 : vector<8x1xf32> to vector<8x8xf32>
    %97 = arith.subf %93, %96 : vector<8x8xf32>
    %98 = math.exp %97 : vector<8x8xf32>
    %99 = arith.truncf %98 : vector<8x8xf32> to vector<8x8xbf16>
    %cst_28 = arith.constant dense<0.000000e+00> : vector<8x8xf32>
    %100 = tpu.matmul %99, %88, %cst_28 {dimension_numbers = #tpu.dot_dimension_numbers<[1], [0], [0], [1], [0, 0, 1, 1], [], []>} : vector<8x8xbf16>, vector<8x8xbf16>, vector<8x8xf32> -> vector<8x8xf32>
    %cst_29 = arith.constant dense<0.000000e+00> : vector<8xf32>
    %101 = vector.multi_reduction <add>, %98, %cst_29 [1] : vector<8x8xf32> to vector<8xf32>
    %102 = vector.shape_cast %101 : vector<8xf32> to vector<8x1xf32>
    %103 = tpu.reciprocal %102 {approx = true} : vector<8x1xf32> -> vector<8x1xf32>
    %104 = vector.broadcast %103 : vector<8x1xf32> to vector<8x8xf32>
    %105 = arith.mulf %100, %104 : vector<8x8xf32>
    %106 = tpu.concatenate %36, %59, %82, %105 in 1 : vector<8x8xf32>, vector<8x8xf32>, vector<8x8xf32>, vector<8x8xf32> -> vector<8x32xf32>
    %107 = arith.truncf %106 : vector<8x32xf32> to vector<8x32xbf16>
    %c0_30 = arith.constant 0 : index
    %c0_31 = arith.constant 0 : index
    %108 = vector.load %arg4[%c0_30, %c0_31] : memref<32x32xbf16, #tpu.memory_space<vmem>>, vector<32x32xbf16>
    %cst_32 = arith.constant dense<0.000000e+00> : vector<8x32xf32>
    %109 = tpu.matmul %107, %108, %cst_32 {dimension_numbers = #tpu.dot_dimension_numbers<[1], [0], [0], [1], [0, 0, 1, 1], [], []>} : vector<8x32xbf16>, vector<32x32xbf16>, vector<8x32xf32> -> vector<8x32xf32>
    %c0_33 = arith.constant 0 : index
    %c0_34 = arith.constant 0 : index
    %110 = vector.load %arg5[%c0_33, %c0_34] : memref<1x32xf32, #tpu.memory_space<vmem>>, vector<1x32xf32>
    %111 = vector.broadcast %110 : vector<1x32xf32> to vector<8x32xf32>
    %112 = arith.addf %109, %111 : vector<8x32xf32>
    %113 = arith.addf %1, %112 : vector<8x32xf32>
    %c0_35 = arith.constant 0 : index
    %c0_36 = arith.constant 0 : index
    %114 = vector.load %arg6[%c0_35, %c0_36] : memref<1x32xf32, #tpu.memory_space<vmem>>, vector<1x32xf32>
    %c0_37 = arith.constant 0 : index
    %c0_38 = arith.constant 0 : index
    %115 = vector.load %arg7[%c0_37, %c0_38] : memref<1x32xf32, #tpu.memory_space<vmem>>, vector<1x32xf32>
    %cst_39 = arith.constant dense<0.000000e+00> : vector<8xf32>
    %116 = vector.multi_reduction <add>, %113, %cst_39 [1] : vector<8x32xf32> to vector<8xf32>
    %117 = vector.shape_cast %116 : vector<8xf32> to vector<8x1xf32>
    %cst_40 = arith.constant 3.200000e+01 : f32
    %118 = vector.broadcast %cst_40 : f32 to vector<8x1xf32>
    %119 = arith.divf %117, %118 : vector<8x1xf32>
    %120 = vector.broadcast %119 : vector<8x1xf32> to vector<8x32xf32>
    %121 = arith.subf %113, %120 : vector<8x32xf32>
    %122 = arith.mulf %121, %121 : vector<8x32xf32>
    %cst_41 = arith.constant dense<0.000000e+00> : vector<8xf32>
    %123 = vector.multi_reduction <add>, %122, %cst_41 [1] : vector<8x32xf32> to vector<8xf32>
    %124 = vector.shape_cast %123 : vector<8xf32> to vector<8x1xf32>
    %cst_42 = arith.constant 3.200000e+01 : f32
    %125 = vector.broadcast %cst_42 : f32 to vector<8x1xf32>
    %126 = arith.divf %124, %125 : vector<8x1xf32>
    %cst_43 = arith.constant 9.99999974E-6 : f32
    %127 = vector.broadcast %cst_43 : f32 to vector<8x1xf32>
    %128 = arith.addf %126, %127 : vector<8x1xf32>
    %129 = math.rsqrt %128 : vector<8x1xf32>
    %130 = vector.broadcast %129 : vector<8x1xf32> to vector<8x32xf32>
    %131 = arith.mulf %121, %130 : vector<8x32xf32>
    %132 = vector.broadcast %114 : vector<1x32xf32> to vector<8x32xf32>
    %133 = arith.mulf %131, %132 : vector<8x32xf32>
    %134 = vector.broadcast %115 : vector<1x32xf32> to vector<8x32xf32>
    %135 = arith.addf %133, %134 : vector<8x32xf32>
    %c0_44 = arith.constant 0 : index
    %c0_45 = arith.constant 0 : index
    %c0_46 = arith.constant 0 : index
    %136 = vector.load %arg8[%c0_44, %c0_45, %c0_46] : memref<1x8x32xf32, #tpu.memory_space<vmem>>, vector<1x8x32xf32>
    %137 = vector.shape_cast %136 : vector<1x8x32xf32> to vector<8x32xf32>
    %138 = vector.shape_cast %135 : vector<8x32xf32> to vector<1x8x32xf32>
    tpu.vector_store %arg8[%c0_44, %c0_45, %c0_46], %138 {strides = array<i32>} : memref<1x8x32xf32, #tpu.memory_space<vmem>>, vector<1x8x32xf32>,
    return
  }
  func.func @transform_0(%arg0: i32) -> (i32, i32, i32) {
    %c0_i32 = arith.constant 0 : i32
    %c0_i32_0 = arith.constant 0 : i32
    %c0_i32_1 = arith.constant 0 : i32
    return %arg0, %c0_i32, %c0_i32_0 : i32, i32, i32
  }
  func.func @transform_1(%arg0: i32) -> (i32, i32) {
    %c0_i32 = arith.constant 0 : i32
    %c0_i32_0 = arith.constant 0 : i32
    %c0_i32_1 = arith.constant 0 : i32
    return %c0_i32, %c0_i32_0 : i32, i32
  }
  func.func @transform_2(%arg0: i32) -> (i32, i32) {
    %c0_i32 = arith.constant 0 : i32
    %c0_i32_0 = arith.constant 0 : i32
    %c0_i32_1 = arith.constant 0 : i32
    return %c0_i32, %c0_i32_0 : i32, i32
  }
  func.func @transform_3(%arg0: i32) -> (i32, i32) {
    %c0_i32 = arith.constant 0 : i32
    %c0_i32_0 = arith.constant 0 : i32
    %c0_i32_1 = arith.constant 0 : i32
    return %c0_i32, %c0_i32_0 : i32, i32
  }
  func.func @transform_4(%arg0: i32) -> (i32, i32) {
    %c0_i32 = arith.constant 0 : i32
    %c0_i32_0 = arith.constant 0 : i32
    %c0_i32_1 = arith.constant 0 : i32
    return %c0_i32, %c0_i32_0 : i32, i32
  }
  func.func @transform_5(%arg0: i32) -> (i32, i32) {
    %c0_i32 = arith.constant 0 : i32
    %c0_i32_0 = arith.constant 0 : i32
    %c0_i32_1 = arith.constant 0 : i32
    return %c0_i32, %c0_i32_0 : i32, i32
  }
  func.func @transform_6(%arg0: i32) -> (i32, i32) {
    %c0_i32 = arith.constant 0 : i32
    %c0_i32_0 = arith.constant 0 : i32
    %c0_i32_1 = arith.constant 0 : i32
    return %c0_i32, %c0_i32_0 : i32, i32
  }
  func.func @transform_7(%arg0: i32) -> (i32, i32, i32) {
    %c0_i32 = arith.constant 0 : i32
    %c0_i32_0 = arith.constant 0 : i32
    %c0_i32_1 = arith.constant 0 : i32
    return %arg0, %c0_i32, %c0_i32_0 : i32, i32, i32
  }
}

module attributes {stable_mosaic.version = 11 : i64} {
  func.func @_ffn_block_kernel(%arg0: i32, %arg1: memref<1x8x32xf32, #tpu.memory_space<vmem>>, %arg2: memref<32x128xbf16, #tpu.memory_space<vmem>>, %arg3: memref<1x128xf32, #tpu.memory_space<vmem>>, %arg4: memref<128x32xbf16, #tpu.memory_space<vmem>>, %arg5: memref<1x32xf32, #tpu.memory_space<vmem>>, %arg6: memref<1x32xf32, #tpu.memory_space<vmem>>, %arg7: memref<1x32xf32, #tpu.memory_space<vmem>>, %arg8: memref<1x8x32xf32, #tpu.memory_space<vmem>>) attributes {dimension_semantics = [#tpu.dimension_semantics<parallel>], iteration_bounds = array<i64: 2>, scalar_prefetch = 0 : i64, scratch_operands = 0 : i64, tpu.core_type = #tpu.core_type<tc>, window_params = [{transform_indices = @transform_0, window_bounds = array<i64: 1, 8, 32>}, {pipeline_mode = #tpu.pipeline_mode<synchronous>, transform_indices = @transform_1, window_bounds = array<i64: 32, 128>}, {pipeline_mode = #tpu.pipeline_mode<synchronous>, transform_indices = @transform_2, window_bounds = array<i64: 1, 128>}, {pipeline_mode = #tpu.pipeline_mode<synchronous>, transform_indices = @transform_3, window_bounds = array<i64: 128, 32>}, {pipeline_mode = #tpu.pipeline_mode<synchronous>, transform_indices = @transform_4, window_bounds = array<i64: 1, 32>}, {pipeline_mode = #tpu.pipeline_mode<synchronous>, transform_indices = @transform_5, window_bounds = array<i64: 1, 32>}, {pipeline_mode = #tpu.pipeline_mode<synchronous>, transform_indices = @transform_6, window_bounds = array<i64: 1, 32>}, {transform_indices = @transform_7, window_bounds = array<i64: 1, 8, 32>}]} {
    %c0 = arith.constant 0 : index
    %c0_0 = arith.constant 0 : index
    %c0_1 = arith.constant 0 : index
    %0 = vector.load %arg1[%c0, %c0_0, %c0_1] : memref<1x8x32xf32, #tpu.memory_space<vmem>>, vector<1x8x32xf32>
    %1 = vector.shape_cast %0 : vector<1x8x32xf32> to vector<8x32xf32>
    %2 = arith.truncf %1 : vector<8x32xf32> to vector<8x32xbf16>
    %c0_2 = arith.constant 0 : index
    %c0_3 = arith.constant 0 : index
    %3 = vector.load %arg2[%c0_2, %c0_3] : memref<32x128xbf16, #tpu.memory_space<vmem>>, vector<32x128xbf16>
    %cst = arith.constant dense<0.000000e+00> : vector<8x128xf32>
    %4 = tpu.matmul %2, %3, %cst {dimension_numbers = #tpu.dot_dimension_numbers<[1], [0], [0], [1], [0, 0, 1, 1], [], []>} : vector<8x32xbf16>, vector<32x128xbf16>, vector<8x128xf32> -> vector<8x128xf32>
    %c0_4 = arith.constant 0 : index
    %c0_5 = arith.constant 0 : index
    %5 = vector.load %arg3[%c0_4, %c0_5] : memref<1x128xf32, #tpu.memory_space<vmem>>, vector<1x128xf32>
    %6 = vector.broadcast %5 : vector<1x128xf32> to vector<8x128xf32>
    %7 = arith.addf %4, %6 : vector<8x128xf32>
    %cst_6 = arith.constant 0.000000e+00 : f32
    %8 = vector.broadcast %cst_6 : f32 to vector<8x128xf32>
    %9 = arith.maximumf %7, %8 : vector<8x128xf32>
    %10 = arith.truncf %9 : vector<8x128xf32> to vector<8x128xbf16>
    %c0_7 = arith.constant 0 : index
    %c0_8 = arith.constant 0 : index
    %11 = vector.load %arg4[%c0_7, %c0_8] : memref<128x32xbf16, #tpu.memory_space<vmem>>, vector<128x32xbf16>
    %cst_9 = arith.constant dense<0.000000e+00> : vector<8x32xf32>
    %12 = tpu.matmul %10, %11, %cst_9 {dimension_numbers = #tpu.dot_dimension_numbers<[1], [0], [0], [1], [0, 0, 1, 1], [], []>} : vector<8x128xbf16>, vector<128x32xbf16>, vector<8x32xf32> -> vector<8x32xf32>
    %c0_10 = arith.constant 0 : index
    %c0_11 = arith.constant 0 : index
    %13 = vector.load %arg5[%c0_10, %c0_11] : memref<1x32xf32, #tpu.memory_space<vmem>>, vector<1x32xf32>
    %14 = vector.broadcast %13 : vector<1x32xf32> to vector<8x32xf32>
    %15 = arith.addf %12, %14 : vector<8x32xf32>
    %16 = arith.addf %1, %15 : vector<8x32xf32>
    %c0_12 = arith.constant 0 : index
    %c0_13 = arith.constant 0 : index
    %17 = vector.load %arg6[%c0_12, %c0_13] : memref<1x32xf32, #tpu.memory_space<vmem>>, vector<1x32xf32>
    %c0_14 = arith.constant 0 : index
    %c0_15 = arith.constant 0 : index
    %18 = vector.load %arg7[%c0_14, %c0_15] : memref<1x32xf32, #tpu.memory_space<vmem>>, vector<1x32xf32>
    %cst_16 = arith.constant dense<0.000000e+00> : vector<8xf32>
    %19 = vector.multi_reduction <add>, %16, %cst_16 [1] : vector<8x32xf32> to vector<8xf32>
    %20 = vector.shape_cast %19 : vector<8xf32> to vector<8x1xf32>
    %cst_17 = arith.constant 3.200000e+01 : f32
    %21 = vector.broadcast %cst_17 : f32 to vector<8x1xf32>
    %22 = arith.divf %20, %21 : vector<8x1xf32>
    %23 = vector.broadcast %22 : vector<8x1xf32> to vector<8x32xf32>
    %24 = arith.subf %16, %23 : vector<8x32xf32>
    %25 = arith.mulf %24, %24 : vector<8x32xf32>
    %cst_18 = arith.constant dense<0.000000e+00> : vector<8xf32>
    %26 = vector.multi_reduction <add>, %25, %cst_18 [1] : vector<8x32xf32> to vector<8xf32>
    %27 = vector.shape_cast %26 : vector<8xf32> to vector<8x1xf32>
    %cst_19 = arith.constant 3.200000e+01 : f32
    %28 = vector.broadcast %cst_19 : f32 to vector<8x1xf32>
    %29 = arith.divf %27, %28 : vector<8x1xf32>
    %cst_20 = arith.constant 9.99999974E-6 : f32
    %30 = vector.broadcast %cst_20 : f32 to vector<8x1xf32>
    %31 = arith.addf %29, %30 : vector<8x1xf32>
    %32 = math.rsqrt %31 : vector<8x1xf32>
    %33 = vector.broadcast %32 : vector<8x1xf32> to vector<8x32xf32>
    %34 = arith.mulf %24, %33 : vector<8x32xf32>
    %35 = vector.broadcast %17 : vector<1x32xf32> to vector<8x32xf32>
    %36 = arith.mulf %34, %35 : vector<8x32xf32>
    %37 = vector.broadcast %18 : vector<1x32xf32> to vector<8x32xf32>
    %38 = arith.addf %36, %37 : vector<8x32xf32>
    %c0_21 = arith.constant 0 : index
    %c0_22 = arith.constant 0 : index
    %c0_23 = arith.constant 0 : index
    %39 = vector.load %arg8[%c0_21, %c0_22, %c0_23] : memref<1x8x32xf32, #tpu.memory_space<vmem>>, vector<1x8x32xf32>
    %40 = vector.shape_cast %39 : vector<1x8x32xf32> to vector<8x32xf32>
    %41 = vector.shape_cast %38 : vector<8x32xf32> to vector<1x8x32xf32>
    tpu.vector_store %arg8[%c0_21, %c0_22, %c0_23], %41 {strides = array<i32>} : memref<1x8x32xf32, #tpu.memory_space<vmem>>, vector<1x8x32xf32>,
    return
  }
  func.func @transform_0(%arg0: i32) -> (i32, i32, i32) {
    %c0_i32 = arith.constant 0 : i32
    %c0_i32_0 = arith.constant 0 : i32
    %c0_i32_1 = arith.constant 0 : i32
    return %arg0, %c0_i32, %c0_i32_0 : i32, i32, i32
  }
  func.func @transform_1(%arg0: i32) -> (i32, i32) {
    %c0_i32 = arith.constant 0 : i32
    %c0_i32_0 = arith.constant 0 : i32
    %c0_i32_1 = arith.constant 0 : i32
    return %c0_i32, %c0_i32_0 : i32, i32
  }
  func.func @transform_2(%arg0: i32) -> (i32, i32) {
    %c0_i32 = arith.constant 0 : i32
    %c0_i32_0 = arith.constant 0 : i32
    %c0_i32_1 = arith.constant 0 : i32
    return %c0_i32, %c0_i32_0 : i32, i32
  }
  func.func @transform_3(%arg0: i32) -> (i32, i32) {
    %c0_i32 = arith.constant 0 : i32
    %c0_i32_0 = arith.constant 0 : i32
    %c0_i32_1 = arith.constant 0 : i32
    return %c0_i32, %c0_i32_0 : i32, i32
  }
  func.func @transform_4(%arg0: i32) -> (i32, i32) {
    %c0_i32 = arith.constant 0 : i32
    %c0_i32_0 = arith.constant 0 : i32
    %c0_i32_1 = arith.constant 0 : i32
    return %c0_i32, %c0_i32_0 : i32, i32
  }
  func.func @transform_5(%arg0: i32) -> (i32, i32) {
    %c0_i32 = arith.constant 0 : i32
    %c0_i32_0 = arith.constant 0 : i32
    %c0_i32_1 = arith.constant 0 : i32
    return %c0_i32, %c0_i32_0 : i32, i32
  }
  func.func @transform_6(%arg0: i32) -> (i32, i32) {
    %c0_i32 = arith.constant 0 : i32
    %c0_i32_0 = arith.constant 0 : i32
    %c0_i32_1 = arith.constant 0 : i32
    return %c0_i32, %c0_i32_0 : i32, i32
  }
  func.func @transform_7(%arg0: i32) -> (i32, i32, i32) {
    %c0_i32 = arith.constant 0 : i32
    %c0_i32_0 = arith.constant 0 : i32
    %c0_i32_1 = arith.constant 0 : i32
    return %arg0, %c0_i32, %c0_i32_0 : i32, i32, i32
  }
}

module attributes {stable_mosaic.version = 11 : i64} {
  func.func @_self_attn_kernel(%arg0: i32, %arg1: memref<1x8x32xf32, #tpu.memory_space<vmem>>, %arg2: memref<32x96xbf16, #tpu.memory_space<vmem>>, %arg3: memref<1x96xf32, #tpu.memory_space<vmem>>, %arg4: memref<32x32xbf16, #tpu.memory_space<vmem>>, %arg5: memref<1x32xf32, #tpu.memory_space<vmem>>, %arg6: memref<1x32xf32, #tpu.memory_space<vmem>>, %arg7: memref<1x32xf32, #tpu.memory_space<vmem>>, %arg8: memref<1x8x32xf32, #tpu.memory_space<vmem>>) attributes {dimension_semantics = [#tpu.dimension_semantics<parallel>], iteration_bounds = array<i64: 2>, scalar_prefetch = 0 : i64, scratch_operands = 0 : i64, tpu.core_type = #tpu.core_type<tc>, window_params = [{transform_indices = @transform_0, window_bounds = array<i64: 1, 8, 32>}, {pipeline_mode = #tpu.pipeline_mode<synchronous>, transform_indices = @transform_1, window_bounds = array<i64: 32, 96>}, {pipeline_mode = #tpu.pipeline_mode<synchronous>, transform_indices = @transform_2, window_bounds = array<i64: 1, 96>}, {pipeline_mode = #tpu.pipeline_mode<synchronous>, transform_indices = @transform_3, window_bounds = array<i64: 32, 32>}, {pipeline_mode = #tpu.pipeline_mode<synchronous>, transform_indices = @transform_4, window_bounds = array<i64: 1, 32>}, {pipeline_mode = #tpu.pipeline_mode<synchronous>, transform_indices = @transform_5, window_bounds = array<i64: 1, 32>}, {pipeline_mode = #tpu.pipeline_mode<synchronous>, transform_indices = @transform_6, window_bounds = array<i64: 1, 32>}, {transform_indices = @transform_7, window_bounds = array<i64: 1, 8, 32>}]} {
    %c0 = arith.constant 0 : index
    %c0_0 = arith.constant 0 : index
    %c0_1 = arith.constant 0 : index
    %0 = vector.load %arg1[%c0, %c0_0, %c0_1] : memref<1x8x32xf32, #tpu.memory_space<vmem>>, vector<1x8x32xf32>
    %1 = vector.shape_cast %0 : vector<1x8x32xf32> to vector<8x32xf32>
    %2 = arith.truncf %1 : vector<8x32xf32> to vector<8x32xbf16>
    %c0_2 = arith.constant 0 : index
    %c0_3 = arith.constant 0 : index
    %3 = vector.load %arg2[%c0_2, %c0_3] : memref<32x96xbf16, #tpu.memory_space<vmem>>, vector<32x96xbf16>
    %cst = arith.constant dense<0.000000e+00> : vector<8x96xf32>
    %4 = tpu.matmul %2, %3, %cst {dimension_numbers = #tpu.dot_dimension_numbers<[1], [0], [0], [1], [0, 0, 1, 1], [], []>} : vector<8x32xbf16>, vector<32x96xbf16>, vector<8x96xf32> -> vector<8x96xf32>
    %c0_4 = arith.constant 0 : index
    %c0_5 = arith.constant 0 : index
    %5 = vector.load %arg3[%c0_4, %c0_5] : memref<1x96xf32, #tpu.memory_space<vmem>>, vector<1x96xf32>
    %6 = vector.broadcast %5 : vector<1x96xf32> to vector<8x96xf32>
    %7 = arith.addf %4, %6 : vector<8x96xf32>
    %8 = vector.extract_strided_slice %7 {offsets = [0, 0], sizes = [8, 32], strides = [1, 1]} : vector<8x96xf32> to vector<8x32xf32>
    %9 = vector.extract_strided_slice %7 {offsets = [0, 32], sizes = [8, 32], strides = [1, 1]} : vector<8x96xf32> to vector<8x32xf32>
    %10 = vector.extract_strided_slice %7 {offsets = [0, 64], sizes = [8, 32], strides = [1, 1]} : vector<8x96xf32> to vector<8x32xf32>
    %11 = vector.extract_strided_slice %8 {offsets = [0, 0], sizes = [8, 8], strides = [1, 1]} : vector<8x32xf32> to vector<8x8xf32>
    %12 = arith.truncf %11 : vector<8x8xf32> to vector<8x8xbf16>
    %13 = vector.extract_strided_slice %9 {offsets = [0, 0], sizes = [8, 8], strides = [1, 1]} : vector<8x32xf32> to vector<8x8xf32>
    %14 = arith.truncf %13 : vector<8x8xf32> to vector<8x8xbf16>
    %15 = vector.extract_strided_slice %10 {offsets = [0, 0], sizes = [8, 8], strides = [1, 1]} : vector<8x32xf32> to vector<8x8xf32>
    %16 = arith.truncf %15 : vector<8x8xf32> to vector<8x8xbf16>
    %cst_6 = arith.constant dense<0.000000e+00> : vector<8x8xf32>
    %17 = tpu.matmul %12, %14, %cst_6 {dimension_numbers = #tpu.dot_dimension_numbers<[1], [1], [0], [0], [0, 0, 1, 0], [], []>} : vector<8x8xbf16>, vector<8x8xbf16>, vector<8x8xf32> -> vector<8x8xf32>
    %cst_7 = arith.constant 0.353553385 : f32
    %18 = vector.broadcast %cst_7 : f32 to vector<8x8xf32>
    %19 = arith.mulf %17, %18 : vector<8x8xf32>
    %cst_8 = arith.constant dense<0xFF800000> : vector<8xf32>
    %20 = vector.multi_reduction <maximumf>, %19, %cst_8 [1] : vector<8x8xf32> to vector<8xf32>
    %21 = vector.shape_cast %20 : vector<8xf32> to vector<8x1xf32>
    %22 = vector.broadcast %21 : vector<8x1xf32> to vector<8x8xf32>
    %23 = arith.subf %19, %22 : vector<8x8xf32>
    %24 = math.exp %23 : vector<8x8xf32>
    %25 = arith.truncf %24 : vector<8x8xf32> to vector<8x8xbf16>
    %cst_9 = arith.constant dense<0.000000e+00> : vector<8x8xf32>
    %26 = tpu.matmul %25, %16, %cst_9 {dimension_numbers = #tpu.dot_dimension_numbers<[1], [0], [0], [1], [0, 0, 1, 1], [], []>} : vector<8x8xbf16>, vector<8x8xbf16>, vector<8x8xf32> -> vector<8x8xf32>
    %cst_10 = arith.constant dense<0.000000e+00> : vector<8xf32>
    %27 = vector.multi_reduction <add>, %24, %cst_10 [1] : vector<8x8xf32> to vector<8xf32>
    %28 = vector.shape_cast %27 : vector<8xf32> to vector<8x1xf32>
    %29 = tpu.reciprocal %28 {approx = true} : vector<8x1xf32> -> vector<8x1xf32>
    %30 = vector.broadcast %29 : vector<8x1xf32> to vector<8x8xf32>
    %31 = arith.mulf %26, %30 : vector<8x8xf32>
    %32 = vector.extract_strided_slice %8 {offsets = [0, 8], sizes = [8, 8], strides = [1, 1]} : vector<8x32xf32> to vector<8x8xf32>
    %33 = arith.truncf %32 : vector<8x8xf32> to vector<8x8xbf16>
    %34 = vector.extract_strided_slice %9 {offsets = [0, 8], sizes = [8, 8], strides = [1, 1]} : vector<8x32xf32> to vector<8x8xf32>
    %35 = arith.truncf %34 : vector<8x8xf32> to vector<8x8xbf16>
    %36 = vector.extract_strided_slice %10 {offsets = [0, 8], sizes = [8, 8], strides = [1, 1]} : vector<8x32xf32> to vector<8x8xf32>
    %37 = arith.truncf %36 : vector<8x8xf32> to vector<8x8xbf16>
    %cst_11 = arith.constant dense<0.000000e+00> : vector<8x8xf32>
    %38 = tpu.matmul %33, %35, %cst_11 {dimension_numbers = #tpu.dot_dimension_numbers<[1], [1], [0], [0], [0, 0, 1, 0], [], []>} : vector<8x8xbf16>, vector<8x8xbf16>, vector<8x8xf32> -> vector<8x8xf32>
    %cst_12 = arith.constant 0.353553385 : f32
    %39 = vector.broadcast %cst_12 : f32 to vector<8x8xf32>
    %40 = arith.mulf %38, %39 : vector<8x8xf32>
    %cst_13 = arith.constant dense<0xFF800000> : vector<8xf32>
    %41 = vector.multi_reduction <maximumf>, %40, %cst_13 [1] : vector<8x8xf32> to vector<8xf32>
    %42 = vector.shape_cast %41 : vector<8xf32> to vector<8x1xf32>
    %43 = vector.broadcast %42 : vector<8x1xf32> to vector<8x8xf32>
    %44 = arith.subf %40, %43 : vector<8x8xf32>
    %45 = math.exp %44 : vector<8x8xf32>
    %46 = arith.truncf %45 : vector<8x8xf32> to vector<8x8xbf16>
    %cst_14 = arith.constant dense<0.000000e+00> : vector<8x8xf32>
    %47 = tpu.matmul %46, %37, %cst_14 {dimension_numbers = #tpu.dot_dimension_numbers<[1], [0], [0], [1], [0, 0, 1, 1], [], []>} : vector<8x8xbf16>, vector<8x8xbf16>, vector<8x8xf32> -> vector<8x8xf32>
    %cst_15 = arith.constant dense<0.000000e+00> : vector<8xf32>
    %48 = vector.multi_reduction <add>, %45, %cst_15 [1] : vector<8x8xf32> to vector<8xf32>
    %49 = vector.shape_cast %48 : vector<8xf32> to vector<8x1xf32>
    %50 = tpu.reciprocal %49 {approx = true} : vector<8x1xf32> -> vector<8x1xf32>
    %51 = vector.broadcast %50 : vector<8x1xf32> to vector<8x8xf32>
    %52 = arith.mulf %47, %51 : vector<8x8xf32>
    %53 = vector.extract_strided_slice %8 {offsets = [0, 16], sizes = [8, 8], strides = [1, 1]} : vector<8x32xf32> to vector<8x8xf32>
    %54 = arith.truncf %53 : vector<8x8xf32> to vector<8x8xbf16>
    %55 = vector.extract_strided_slice %9 {offsets = [0, 16], sizes = [8, 8], strides = [1, 1]} : vector<8x32xf32> to vector<8x8xf32>
    %56 = arith.truncf %55 : vector<8x8xf32> to vector<8x8xbf16>
    %57 = vector.extract_strided_slice %10 {offsets = [0, 16], sizes = [8, 8], strides = [1, 1]} : vector<8x32xf32> to vector<8x8xf32>
    %58 = arith.truncf %57 : vector<8x8xf32> to vector<8x8xbf16>
    %cst_16 = arith.constant dense<0.000000e+00> : vector<8x8xf32>
    %59 = tpu.matmul %54, %56, %cst_16 {dimension_numbers = #tpu.dot_dimension_numbers<[1], [1], [0], [0], [0, 0, 1, 0], [], []>} : vector<8x8xbf16>, vector<8x8xbf16>, vector<8x8xf32> -> vector<8x8xf32>
    %cst_17 = arith.constant 0.353553385 : f32
    %60 = vector.broadcast %cst_17 : f32 to vector<8x8xf32>
    %61 = arith.mulf %59, %60 : vector<8x8xf32>
    %cst_18 = arith.constant dense<0xFF800000> : vector<8xf32>
    %62 = vector.multi_reduction <maximumf>, %61, %cst_18 [1] : vector<8x8xf32> to vector<8xf32>
    %63 = vector.shape_cast %62 : vector<8xf32> to vector<8x1xf32>
    %64 = vector.broadcast %63 : vector<8x1xf32> to vector<8x8xf32>
    %65 = arith.subf %61, %64 : vector<8x8xf32>
    %66 = math.exp %65 : vector<8x8xf32>
    %67 = arith.truncf %66 : vector<8x8xf32> to vector<8x8xbf16>
    %cst_19 = arith.constant dense<0.000000e+00> : vector<8x8xf32>
    %68 = tpu.matmul %67, %58, %cst_19 {dimension_numbers = #tpu.dot_dimension_numbers<[1], [0], [0], [1], [0, 0, 1, 1], [], []>} : vector<8x8xbf16>, vector<8x8xbf16>, vector<8x8xf32> -> vector<8x8xf32>
    %cst_20 = arith.constant dense<0.000000e+00> : vector<8xf32>
    %69 = vector.multi_reduction <add>, %66, %cst_20 [1] : vector<8x8xf32> to vector<8xf32>
    %70 = vector.shape_cast %69 : vector<8xf32> to vector<8x1xf32>
    %71 = tpu.reciprocal %70 {approx = true} : vector<8x1xf32> -> vector<8x1xf32>
    %72 = vector.broadcast %71 : vector<8x1xf32> to vector<8x8xf32>
    %73 = arith.mulf %68, %72 : vector<8x8xf32>
    %74 = vector.extract_strided_slice %8 {offsets = [0, 24], sizes = [8, 8], strides = [1, 1]} : vector<8x32xf32> to vector<8x8xf32>
    %75 = arith.truncf %74 : vector<8x8xf32> to vector<8x8xbf16>
    %76 = vector.extract_strided_slice %9 {offsets = [0, 24], sizes = [8, 8], strides = [1, 1]} : vector<8x32xf32> to vector<8x8xf32>
    %77 = arith.truncf %76 : vector<8x8xf32> to vector<8x8xbf16>
    %78 = vector.extract_strided_slice %10 {offsets = [0, 24], sizes = [8, 8], strides = [1, 1]} : vector<8x32xf32> to vector<8x8xf32>
    %79 = arith.truncf %78 : vector<8x8xf32> to vector<8x8xbf16>
    %cst_21 = arith.constant dense<0.000000e+00> : vector<8x8xf32>
    %80 = tpu.matmul %75, %77, %cst_21 {dimension_numbers = #tpu.dot_dimension_numbers<[1], [1], [0], [0], [0, 0, 1, 0], [], []>} : vector<8x8xbf16>, vector<8x8xbf16>, vector<8x8xf32> -> vector<8x8xf32>
    %cst_22 = arith.constant 0.353553385 : f32
    %81 = vector.broadcast %cst_22 : f32 to vector<8x8xf32>
    %82 = arith.mulf %80, %81 : vector<8x8xf32>
    %cst_23 = arith.constant dense<0xFF800000> : vector<8xf32>
    %83 = vector.multi_reduction <maximumf>, %82, %cst_23 [1] : vector<8x8xf32> to vector<8xf32>
    %84 = vector.shape_cast %83 : vector<8xf32> to vector<8x1xf32>
    %85 = vector.broadcast %84 : vector<8x1xf32> to vector<8x8xf32>
    %86 = arith.subf %82, %85 : vector<8x8xf32>
    %87 = math.exp %86 : vector<8x8xf32>
    %88 = arith.truncf %87 : vector<8x8xf32> to vector<8x8xbf16>
    %cst_24 = arith.constant dense<0.000000e+00> : vector<8x8xf32>
    %89 = tpu.matmul %88, %79, %cst_24 {dimension_numbers = #tpu.dot_dimension_numbers<[1], [0], [0], [1], [0, 0, 1, 1], [], []>} : vector<8x8xbf16>, vector<8x8xbf16>, vector<8x8xf32> -> vector<8x8xf32>
    %cst_25 = arith.constant dense<0.000000e+00> : vector<8xf32>
    %90 = vector.multi_reduction <add>, %87, %cst_25 [1] : vector<8x8xf32> to vector<8xf32>
    %91 = vector.shape_cast %90 : vector<8xf32> to vector<8x1xf32>
    %92 = tpu.reciprocal %91 {approx = true} : vector<8x1xf32> -> vector<8x1xf32>
    %93 = vector.broadcast %92 : vector<8x1xf32> to vector<8x8xf32>
    %94 = arith.mulf %89, %93 : vector<8x8xf32>
    %95 = tpu.concatenate %31, %52, %73, %94 in 1 : vector<8x8xf32>, vector<8x8xf32>, vector<8x8xf32>, vector<8x8xf32> -> vector<8x32xf32>
    %96 = arith.truncf %95 : vector<8x32xf32> to vector<8x32xbf16>
    %c0_26 = arith.constant 0 : index
    %c0_27 = arith.constant 0 : index
    %97 = vector.load %arg4[%c0_26, %c0_27] : memref<32x32xbf16, #tpu.memory_space<vmem>>, vector<32x32xbf16>
    %cst_28 = arith.constant dense<0.000000e+00> : vector<8x32xf32>
    %98 = tpu.matmul %96, %97, %cst_28 {dimension_numbers = #tpu.dot_dimension_numbers<[1], [0], [0], [1], [0, 0, 1, 1], [], []>} : vector<8x32xbf16>, vector<32x32xbf16>, vector<8x32xf32> -> vector<8x32xf32>
    %c0_29 = arith.constant 0 : index
    %c0_30 = arith.constant 0 : index
    %99 = vector.load %arg5[%c0_29, %c0_30] : memref<1x32xf32, #tpu.memory_space<vmem>>, vector<1x32xf32>
    %100 = vector.broadcast %99 : vector<1x32xf32> to vector<8x32xf32>
    %101 = arith.addf %98, %100 : vector<8x32xf32>
    %102 = arith.addf %1, %101 : vector<8x32xf32>
    %c0_31 = arith.constant 0 : index
    %c0_32 = arith.constant 0 : index
    %103 = vector.load %arg6[%c0_31, %c0_32] : memref<1x32xf32, #tpu.memory_space<vmem>>, vector<1x32xf32>
    %c0_33 = arith.constant 0 : index
    %c0_34 = arith.constant 0 : index
    %104 = vector.load %arg7[%c0_33, %c0_34] : memref<1x32xf32, #tpu.memory_space<vmem>>, vector<1x32xf32>
    %cst_35 = arith.constant dense<0.000000e+00> : vector<8xf32>
    %105 = vector.multi_reduction <add>, %102, %cst_35 [1] : vector<8x32xf32> to vector<8xf32>
    %106 = vector.shape_cast %105 : vector<8xf32> to vector<8x1xf32>
    %cst_36 = arith.constant 3.200000e+01 : f32
    %107 = vector.broadcast %cst_36 : f32 to vector<8x1xf32>
    %108 = arith.divf %106, %107 : vector<8x1xf32>
    %109 = vector.broadcast %108 : vector<8x1xf32> to vector<8x32xf32>
    %110 = arith.subf %102, %109 : vector<8x32xf32>
    %111 = arith.mulf %110, %110 : vector<8x32xf32>
    %cst_37 = arith.constant dense<0.000000e+00> : vector<8xf32>
    %112 = vector.multi_reduction <add>, %111, %cst_37 [1] : vector<8x32xf32> to vector<8xf32>
    %113 = vector.shape_cast %112 : vector<8xf32> to vector<8x1xf32>
    %cst_38 = arith.constant 3.200000e+01 : f32
    %114 = vector.broadcast %cst_38 : f32 to vector<8x1xf32>
    %115 = arith.divf %113, %114 : vector<8x1xf32>
    %cst_39 = arith.constant 9.99999974E-6 : f32
    %116 = vector.broadcast %cst_39 : f32 to vector<8x1xf32>
    %117 = arith.addf %115, %116 : vector<8x1xf32>
    %118 = math.rsqrt %117 : vector<8x1xf32>
    %119 = vector.broadcast %118 : vector<8x1xf32> to vector<8x32xf32>
    %120 = arith.mulf %110, %119 : vector<8x32xf32>
    %121 = vector.broadcast %103 : vector<1x32xf32> to vector<8x32xf32>
    %122 = arith.mulf %120, %121 : vector<8x32xf32>
    %123 = vector.broadcast %104 : vector<1x32xf32> to vector<8x32xf32>
    %124 = arith.addf %122, %123 : vector<8x32xf32>
    %c0_40 = arith.constant 0 : index
    %c0_41 = arith.constant 0 : index
    %c0_42 = arith.constant 0 : index
    %125 = vector.load %arg8[%c0_40, %c0_41, %c0_42] : memref<1x8x32xf32, #tpu.memory_space<vmem>>, vector<1x8x32xf32>
    %126 = vector.shape_cast %125 : vector<1x8x32xf32> to vector<8x32xf32>
    %127 = vector.shape_cast %124 : vector<8x32xf32> to vector<1x8x32xf32>
    tpu.vector_store %arg8[%c0_40, %c0_41, %c0_42], %127 {strides = array<i32>} : memref<1x8x32xf32, #tpu.memory_space<vmem>>, vector<1x8x32xf32>,
    return
  }
  func.func @transform_0(%arg0: i32) -> (i32, i32, i32) {
    %c0_i32 = arith.constant 0 : i32
    %c0_i32_0 = arith.constant 0 : i32
    %c0_i32_1 = arith.constant 0 : i32
    return %arg0, %c0_i32, %c0_i32_0 : i32, i32, i32
  }
  func.func @transform_1(%arg0: i32) -> (i32, i32) {
    %c0_i32 = arith.constant 0 : i32
    %c0_i32_0 = arith.constant 0 : i32
    %c0_i32_1 = arith.constant 0 : i32
    return %c0_i32, %c0_i32_0 : i32, i32
  }
  func.func @transform_2(%arg0: i32) -> (i32, i32) {
    %c0_i32 = arith.constant 0 : i32
    %c0_i32_0 = arith.constant 0 : i32
    %c0_i32_1 = arith.constant 0 : i32
    return %c0_i32, %c0_i32_0 : i32, i32
  }
  func.func @transform_3(%arg0: i32) -> (i32, i32) {
    %c0_i32 = arith.constant 0 : i32
    %c0_i32_0 = arith.constant 0 : i32
    %c0_i32_1 = arith.constant 0 : i32
    return %c0_i32, %c0_i32_0 : i32, i32
  }
  func.func @transform_4(%arg0: i32) -> (i32, i32) {
    %c0_i32 = arith.constant 0 : i32
    %c0_i32_0 = arith.constant 0 : i32
    %c0_i32_1 = arith.constant 0 : i32
    return %c0_i32, %c0_i32_0 : i32, i32
  }
  func.func @transform_5(%arg0: i32) -> (i32, i32) {
    %c0_i32 = arith.constant 0 : i32
    %c0_i32_0 = arith.constant 0 : i32
    %c0_i32_1 = arith.constant 0 : i32
    return %c0_i32, %c0_i32_0 : i32, i32
  }
  func.func @transform_6(%arg0: i32) -> (i32, i32) {
    %c0_i32 = arith.constant 0 : i32
    %c0_i32_0 = arith.constant 0 : i32
    %c0_i32_1 = arith.constant 0 : i32
    return %c0_i32, %c0_i32_0 : i32, i32
  }
  func.func @transform_7(%arg0: i32) -> (i32, i32, i32) {
    %c0_i32 = arith.constant 0 : i32
    %c0_i32_0 = arith.constant 0 : i32
    %c0_i32_1 = arith.constant 0 : i32
    return %arg0, %c0_i32, %c0_i32_0 : i32, i32, i32
  }
}

module attributes {stable_mosaic.version = 11 : i64} {
  func.func @_cross_attn_kernel(%arg0: i32, %arg1: memref<1x8x32xf32, #tpu.memory_space<vmem>>, %arg2: memref<1x8x32xf32, #tpu.memory_space<vmem>>, %arg3: memref<32x32xbf16, #tpu.memory_space<vmem>>, %arg4: memref<1x32xf32, #tpu.memory_space<vmem>>, %arg5: memref<32x64xbf16, #tpu.memory_space<vmem>>, %arg6: memref<1x64xf32, #tpu.memory_space<vmem>>, %arg7: memref<32x32xbf16, #tpu.memory_space<vmem>>, %arg8: memref<1x32xf32, #tpu.memory_space<vmem>>, %arg9: memref<1x32xf32, #tpu.memory_space<vmem>>, %arg10: memref<1x32xf32, #tpu.memory_space<vmem>>, %arg11: memref<1x8x32xf32, #tpu.memory_space<vmem>>) attributes {dimension_semantics = [#tpu.dimension_semantics<parallel>], iteration_bounds = array<i64: 2>, scalar_prefetch = 0 : i64, scratch_operands = 0 : i64, tpu.core_type = #tpu.core_type<tc>, window_params = [{transform_indices = @transform_0, window_bounds = array<i64: 1, 8, 32>}, {transform_indices = @transform_1, window_bounds = array<i64: 1, 8, 32>}, {pipeline_mode = #tpu.pipeline_mode<synchronous>, transform_indices = @transform_2, window_bounds = array<i64: 32, 32>}, {pipeline_mode = #tpu.pipeline_mode<synchronous>, transform_indices = @transform_3, window_bounds = array<i64: 1, 32>}, {pipeline_mode = #tpu.pipeline_mode<synchronous>, transform_indices = @transform_4, window_bounds = array<i64: 32, 64>}, {pipeline_mode = #tpu.pipeline_mode<synchronous>, transform_indices = @transform_5, window_bounds = array<i64: 1, 64>}, {pipeline_mode = #tpu.pipeline_mode<synchronous>, transform_indices = @transform_6, window_bounds = array<i64: 32, 32>}, {pipeline_mode = #tpu.pipeline_mode<synchronous>, transform_indices = @transform_7, window_bounds = array<i64: 1, 32>}, {pipeline_mode = #tpu.pipeline_mode<synchronous>, transform_indices = @transform_8, window_bounds = array<i64: 1, 32>}, {pipeline_mode = #tpu.pipeline_mode<synchronous>, transform_indices = @transform_9, window_bounds = array<i64: 1, 32>}, {transform_indices = @transform_10, window_bounds = array<i64: 1, 8, 32>}]} {
    %c0 = arith.constant 0 : index
    %c0_0 = arith.constant 0 : index
    %c0_1 = arith.constant 0 : index
    %0 = vector.load %arg1[%c0, %c0_0, %c0_1] : memref<1x8x32xf32, #tpu.memory_space<vmem>>, vector<1x8x32xf32>
    %1 = vector.shape_cast %0 : vector<1x8x32xf32> to vector<8x32xf32>
    %c0_2 = arith.constant 0 : index
    %c0_3 = arith.constant 0 : index
    %c0_4 = arith.constant 0 : index
    %2 = vector.load %arg2[%c0_2, %c0_3, %c0_4] : memref<1x8x32xf32, #tpu.memory_space<vmem>>, vector<1x8x32xf32>
    %3 = vector.shape_cast %2 : vector<1x8x32xf32> to vector<8x32xf32>
    %4 = arith.truncf %1 : vector<8x32xf32> to vector<8x32xbf16>
    %c0_5 = arith.constant 0 : index
    %c0_6 = arith.constant 0 : index
    %5 = vector.load %arg3[%c0_5, %c0_6] : memref<32x32xbf16, #tpu.memory_space<vmem>>, vector<32x32xbf16>
    %cst = arith.constant dense<0.000000e+00> : vector<8x32xf32>
    %6 = tpu.matmul %4, %5, %cst {dimension_numbers = #tpu.dot_dimension_numbers<[1], [0], [0], [1], [0, 0, 1, 1], [], []>} : vector<8x32xbf16>, vector<32x32xbf16>, vector<8x32xf32> -> vector<8x32xf32>
    %c0_7 = arith.constant 0 : index
    %c0_8 = arith.constant 0 : index
    %7 = vector.load %arg4[%c0_7, %c0_8] : memref<1x32xf32, #tpu.memory_space<vmem>>, vector<1x32xf32>
    %8 = vector.broadcast %7 : vector<1x32xf32> to vector<8x32xf32>
    %9 = arith.addf %6, %8 : vector<8x32xf32>
    %10 = arith.truncf %3 : vector<8x32xf32> to vector<8x32xbf16>
    %c0_9 = arith.constant 0 : index
    %c0_10 = arith.constant 0 : index
    %11 = vector.load %arg5[%c0_9, %c0_10] : memref<32x64xbf16, #tpu.memory_space<vmem>>, vector<32x64xbf16>
    %cst_11 = arith.constant dense<0.000000e+00> : vector<8x64xf32>
    %12 = tpu.matmul %10, %11, %cst_11 {dimension_numbers = #tpu.dot_dimension_numbers<[1], [0], [0], [1], [0, 0, 1, 1], [], []>} : vector<8x32xbf16>, vector<32x64xbf16>, vector<8x64xf32> -> vector<8x64xf32>
    %c0_12 = arith.constant 0 : index
    %c0_13 = arith.constant 0 : index
    %13 = vector.load %arg6[%c0_12, %c0_13] : memref<1x64xf32, #tpu.memory_space<vmem>>, vector<1x64xf32>
    %14 = vector.broadcast %13 : vector<1x64xf32> to vector<8x64xf32>
    %15 = arith.addf %12, %14 : vector<8x64xf32>
    %16 = vector.extract_strided_slice %15 {offsets = [0, 0], sizes = [8, 32], strides = [1, 1]} : vector<8x64xf32> to vector<8x32xf32>
    %17 = vector.extract_strided_slice %15 {offsets = [0, 32], sizes = [8, 32], strides = [1, 1]} : vector<8x64xf32> to vector<8x32xf32>
    %18 = vector.extract_strided_slice %9 {offsets = [0, 0], sizes = [8, 8], strides = [1, 1]} : vector<8x32xf32> to vector<8x8xf32>
    %19 = arith.truncf %18 : vector<8x8xf32> to vector<8x8xbf16>
    %20 = vector.extract_strided_slice %16 {offsets = [0, 0], sizes = [8, 8], strides = [1, 1]} : vector<8x32xf32> to vector<8x8xf32>
    %21 = arith.truncf %20 : vector<8x8xf32> to vector<8x8xbf16>
    %22 = vector.extract_strided_slice %17 {offsets = [0, 0], sizes = [8, 8], strides = [1, 1]} : vector<8x32xf32> to vector<8x8xf32>
    %23 = arith.truncf %22 : vector<8x8xf32> to vector<8x8xbf16>
    %cst_14 = arith.constant dense<0.000000e+00> : vector<8x8xf32>
    %24 = tpu.matmul %19, %21, %cst_14 {dimension_numbers = #tpu.dot_dimension_numbers<[1], [1], [0], [0], [0, 0, 1, 0], [], []>} : vector<8x8xbf16>, vector<8x8xbf16>, vector<8x8xf32> -> vector<8x8xf32>
    %cst_15 = arith.constant 0.353553385 : f32
    %25 = vector.broadcast %cst_15 : f32 to vector<8x8xf32>
    %26 = arith.mulf %24, %25 : vector<8x8xf32>
    %cst_16 = arith.constant dense<0xFF800000> : vector<8xf32>
    %27 = vector.multi_reduction <maximumf>, %26, %cst_16 [1] : vector<8x8xf32> to vector<8xf32>
    %28 = vector.shape_cast %27 : vector<8xf32> to vector<8x1xf32>
    %29 = vector.broadcast %28 : vector<8x1xf32> to vector<8x8xf32>
    %30 = arith.subf %26, %29 : vector<8x8xf32>
    %31 = math.exp %30 : vector<8x8xf32>
    %32 = arith.truncf %31 : vector<8x8xf32> to vector<8x8xbf16>
    %cst_17 = arith.constant dense<0.000000e+00> : vector<8x8xf32>
    %33 = tpu.matmul %32, %23, %cst_17 {dimension_numbers = #tpu.dot_dimension_numbers<[1], [0], [0], [1], [0, 0, 1, 1], [], []>} : vector<8x8xbf16>, vector<8x8xbf16>, vector<8x8xf32> -> vector<8x8xf32>
    %cst_18 = arith.constant dense<0.000000e+00> : vector<8xf32>
    %34 = vector.multi_reduction <add>, %31, %cst_18 [1] : vector<8x8xf32> to vector<8xf32>
    %35 = vector.shape_cast %34 : vector<8xf32> to vector<8x1xf32>
    %36 = tpu.reciprocal %35 {approx = true} : vector<8x1xf32> -> vector<8x1xf32>
    %37 = vector.broadcast %36 : vector<8x1xf32> to vector<8x8xf32>
    %38 = arith.mulf %33, %37 : vector<8x8xf32>
    %39 = vector.extract_strided_slice %9 {offsets = [0, 8], sizes = [8, 8], strides = [1, 1]} : vector<8x32xf32> to vector<8x8xf32>
    %40 = arith.truncf %39 : vector<8x8xf32> to vector<8x8xbf16>
    %41 = vector.extract_strided_slice %16 {offsets = [0, 8], sizes = [8, 8], strides = [1, 1]} : vector<8x32xf32> to vector<8x8xf32>
    %42 = arith.truncf %41 : vector<8x8xf32> to vector<8x8xbf16>
    %43 = vector.extract_strided_slice %17 {offsets = [0, 8], sizes = [8, 8], strides = [1, 1]} : vector<8x32xf32> to vector<8x8xf32>
    %44 = arith.truncf %43 : vector<8x8xf32> to vector<8x8xbf16>
    %cst_19 = arith.constant dense<0.000000e+00> : vector<8x8xf32>
    %45 = tpu.matmul %40, %42, %cst_19 {dimension_numbers = #tpu.dot_dimension_numbers<[1], [1], [0], [0], [0, 0, 1, 0], [], []>} : vector<8x8xbf16>, vector<8x8xbf16>, vector<8x8xf32> -> vector<8x8xf32>
    %cst_20 = arith.constant 0.353553385 : f32
    %46 = vector.broadcast %cst_20 : f32 to vector<8x8xf32>
    %47 = arith.mulf %45, %46 : vector<8x8xf32>
    %cst_21 = arith.constant dense<0xFF800000> : vector<8xf32>
    %48 = vector.multi_reduction <maximumf>, %47, %cst_21 [1] : vector<8x8xf32> to vector<8xf32>
    %49 = vector.shape_cast %48 : vector<8xf32> to vector<8x1xf32>
    %50 = vector.broadcast %49 : vector<8x1xf32> to vector<8x8xf32>
    %51 = arith.subf %47, %50 : vector<8x8xf32>
    %52 = math.exp %51 : vector<8x8xf32>
    %53 = arith.truncf %52 : vector<8x8xf32> to vector<8x8xbf16>
    %cst_22 = arith.constant dense<0.000000e+00> : vector<8x8xf32>
    %54 = tpu.matmul %53, %44, %cst_22 {dimension_numbers = #tpu.dot_dimension_numbers<[1], [0], [0], [1], [0, 0, 1, 1], [], []>} : vector<8x8xbf16>, vector<8x8xbf16>, vector<8x8xf32> -> vector<8x8xf32>
    %cst_23 = arith.constant dense<0.000000e+00> : vector<8xf32>
    %55 = vector.multi_reduction <add>, %52, %cst_23 [1] : vector<8x8xf32> to vector<8xf32>
    %56 = vector.shape_cast %55 : vector<8xf32> to vector<8x1xf32>
    %57 = tpu.reciprocal %56 {approx = true} : vector<8x1xf32> -> vector<8x1xf32>
    %58 = vector.broadcast %57 : vector<8x1xf32> to vector<8x8xf32>
    %59 = arith.mulf %54, %58 : vector<8x8xf32>
    %60 = vector.extract_strided_slice %9 {offsets = [0, 16], sizes = [8, 8], strides = [1, 1]} : vector<8x32xf32> to vector<8x8xf32>
    %61 = arith.truncf %60 : vector<8x8xf32> to vector<8x8xbf16>
    %62 = vector.extract_strided_slice %16 {offsets = [0, 16], sizes = [8, 8], strides = [1, 1]} : vector<8x32xf32> to vector<8x8xf32>
    %63 = arith.truncf %62 : vector<8x8xf32> to vector<8x8xbf16>
    %64 = vector.extract_strided_slice %17 {offsets = [0, 16], sizes = [8, 8], strides = [1, 1]} : vector<8x32xf32> to vector<8x8xf32>
    %65 = arith.truncf %64 : vector<8x8xf32> to vector<8x8xbf16>
    %cst_24 = arith.constant dense<0.000000e+00> : vector<8x8xf32>
    %66 = tpu.matmul %61, %63, %cst_24 {dimension_numbers = #tpu.dot_dimension_numbers<[1], [1], [0], [0], [0, 0, 1, 0], [], []>} : vector<8x8xbf16>, vector<8x8xbf16>, vector<8x8xf32> -> vector<8x8xf32>
    %cst_25 = arith.constant 0.353553385 : f32
    %67 = vector.broadcast %cst_25 : f32 to vector<8x8xf32>
    %68 = arith.mulf %66, %67 : vector<8x8xf32>
    %cst_26 = arith.constant dense<0xFF800000> : vector<8xf32>
    %69 = vector.multi_reduction <maximumf>, %68, %cst_26 [1] : vector<8x8xf32> to vector<8xf32>
    %70 = vector.shape_cast %69 : vector<8xf32> to vector<8x1xf32>
    %71 = vector.broadcast %70 : vector<8x1xf32> to vector<8x8xf32>
    %72 = arith.subf %68, %71 : vector<8x8xf32>
    %73 = math.exp %72 : vector<8x8xf32>
    %74 = arith.truncf %73 : vector<8x8xf32> to vector<8x8xbf16>
    %cst_27 = arith.constant dense<0.000000e+00> : vector<8x8xf32>
    %75 = tpu.matmul %74, %65, %cst_27 {dimension_numbers = #tpu.dot_dimension_numbers<[1], [0], [0], [1], [0, 0, 1, 1], [], []>} : vector<8x8xbf16>, vector<8x8xbf16>, vector<8x8xf32> -> vector<8x8xf32>
    %cst_28 = arith.constant dense<0.000000e+00> : vector<8xf32>
    %76 = vector.multi_reduction <add>, %73, %cst_28 [1] : vector<8x8xf32> to vector<8xf32>
    %77 = vector.shape_cast %76 : vector<8xf32> to vector<8x1xf32>
    %78 = tpu.reciprocal %77 {approx = true} : vector<8x1xf32> -> vector<8x1xf32>
    %79 = vector.broadcast %78 : vector<8x1xf32> to vector<8x8xf32>
    %80 = arith.mulf %75, %79 : vector<8x8xf32>
    %81 = vector.extract_strided_slice %9 {offsets = [0, 24], sizes = [8, 8], strides = [1, 1]} : vector<8x32xf32> to vector<8x8xf32>
    %82 = arith.truncf %81 : vector<8x8xf32> to vector<8x8xbf16>
    %83 = vector.extract_strided_slice %16 {offsets = [0, 24], sizes = [8, 8], strides = [1, 1]} : vector<8x32xf32> to vector<8x8xf32>
    %84 = arith.truncf %83 : vector<8x8xf32> to vector<8x8xbf16>
    %85 = vector.extract_strided_slice %17 {offsets = [0, 24], sizes = [8, 8], strides = [1, 1]} : vector<8x32xf32> to vector<8x8xf32>
    %86 = arith.truncf %85 : vector<8x8xf32> to vector<8x8xbf16>
    %cst_29 = arith.constant dense<0.000000e+00> : vector<8x8xf32>
    %87 = tpu.matmul %82, %84, %cst_29 {dimension_numbers = #tpu.dot_dimension_numbers<[1], [1], [0], [0], [0, 0, 1, 0], [], []>} : vector<8x8xbf16>, vector<8x8xbf16>, vector<8x8xf32> -> vector<8x8xf32>
    %cst_30 = arith.constant 0.353553385 : f32
    %88 = vector.broadcast %cst_30 : f32 to vector<8x8xf32>
    %89 = arith.mulf %87, %88 : vector<8x8xf32>
    %cst_31 = arith.constant dense<0xFF800000> : vector<8xf32>
    %90 = vector.multi_reduction <maximumf>, %89, %cst_31 [1] : vector<8x8xf32> to vector<8xf32>
    %91 = vector.shape_cast %90 : vector<8xf32> to vector<8x1xf32>
    %92 = vector.broadcast %91 : vector<8x1xf32> to vector<8x8xf32>
    %93 = arith.subf %89, %92 : vector<8x8xf32>
    %94 = math.exp %93 : vector<8x8xf32>
    %95 = arith.truncf %94 : vector<8x8xf32> to vector<8x8xbf16>
    %cst_32 = arith.constant dense<0.000000e+00> : vector<8x8xf32>
    %96 = tpu.matmul %95, %86, %cst_32 {dimension_numbers = #tpu.dot_dimension_numbers<[1], [0], [0], [1], [0, 0, 1, 1], [], []>} : vector<8x8xbf16>, vector<8x8xbf16>, vector<8x8xf32> -> vector<8x8xf32>
    %cst_33 = arith.constant dense<0.000000e+00> : vector<8xf32>
    %97 = vector.multi_reduction <add>, %94, %cst_33 [1] : vector<8x8xf32> to vector<8xf32>
    %98 = vector.shape_cast %97 : vector<8xf32> to vector<8x1xf32>
    %99 = tpu.reciprocal %98 {approx = true} : vector<8x1xf32> -> vector<8x1xf32>
    %100 = vector.broadcast %99 : vector<8x1xf32> to vector<8x8xf32>
    %101 = arith.mulf %96, %100 : vector<8x8xf32>
    %102 = tpu.concatenate %38, %59, %80, %101 in 1 : vector<8x8xf32>, vector<8x8xf32>, vector<8x8xf32>, vector<8x8xf32> -> vector<8x32xf32>
    %103 = arith.truncf %102 : vector<8x32xf32> to vector<8x32xbf16>
    %c0_34 = arith.constant 0 : index
    %c0_35 = arith.constant 0 : index
    %104 = vector.load %arg7[%c0_34, %c0_35] : memref<32x32xbf16, #tpu.memory_space<vmem>>, vector<32x32xbf16>
    %cst_36 = arith.constant dense<0.000000e+00> : vector<8x32xf32>
    %105 = tpu.matmul %103, %104, %cst_36 {dimension_numbers = #tpu.dot_dimension_numbers<[1], [0], [0], [1], [0, 0, 1, 1], [], []>} : vector<8x32xbf16>, vector<32x32xbf16>, vector<8x32xf32> -> vector<8x32xf32>
    %c0_37 = arith.constant 0 : index
    %c0_38 = arith.constant 0 : index
    %106 = vector.load %arg8[%c0_37, %c0_38] : memref<1x32xf32, #tpu.memory_space<vmem>>, vector<1x32xf32>
    %107 = vector.broadcast %106 : vector<1x32xf32> to vector<8x32xf32>
    %108 = arith.addf %105, %107 : vector<8x32xf32>
    %109 = arith.addf %1, %108 : vector<8x32xf32>
    %c0_39 = arith.constant 0 : index
    %c0_40 = arith.constant 0 : index
    %110 = vector.load %arg9[%c0_39, %c0_40] : memref<1x32xf32, #tpu.memory_space<vmem>>, vector<1x32xf32>
    %c0_41 = arith.constant 0 : index
    %c0_42 = arith.constant 0 : index
    %111 = vector.load %arg10[%c0_41, %c0_42] : memref<1x32xf32, #tpu.memory_space<vmem>>, vector<1x32xf32>
    %cst_43 = arith.constant dense<0.000000e+00> : vector<8xf32>
    %112 = vector.multi_reduction <add>, %109, %cst_43 [1] : vector<8x32xf32> to vector<8xf32>
    %113 = vector.shape_cast %112 : vector<8xf32> to vector<8x1xf32>
    %cst_44 = arith.constant 3.200000e+01 : f32
    %114 = vector.broadcast %cst_44 : f32 to vector<8x1xf32>
    %115 = arith.divf %113, %114 : vector<8x1xf32>
    %116 = vector.broadcast %115 : vector<8x1xf32> to vector<8x32xf32>
    %117 = arith.subf %109, %116 : vector<8x32xf32>
    %118 = arith.mulf %117, %117 : vector<8x32xf32>
    %cst_45 = arith.constant dense<0.000000e+00> : vector<8xf32>
    %119 = vector.multi_reduction <add>, %118, %cst_45 [1] : vector<8x32xf32> to vector<8xf32>
    %120 = vector.shape_cast %119 : vector<8xf32> to vector<8x1xf32>
    %cst_46 = arith.constant 3.200000e+01 : f32
    %121 = vector.broadcast %cst_46 : f32 to vector<8x1xf32>
    %122 = arith.divf %120, %121 : vector<8x1xf32>
    %cst_47 = arith.constant 9.99999974E-6 : f32
    %123 = vector.broadcast %cst_47 : f32 to vector<8x1xf32>
    %124 = arith.addf %122, %123 : vector<8x1xf32>
    %125 = math.rsqrt %124 : vector<8x1xf32>
    %126 = vector.broadcast %125 : vector<8x1xf32> to vector<8x32xf32>
    %127 = arith.mulf %117, %126 : vector<8x32xf32>
    %128 = vector.broadcast %110 : vector<1x32xf32> to vector<8x32xf32>
    %129 = arith.mulf %127, %128 : vector<8x32xf32>
    %130 = vector.broadcast %111 : vector<1x32xf32> to vector<8x32xf32>
    %131 = arith.addf %129, %130 : vector<8x32xf32>
    %c0_48 = arith.constant 0 : index
    %c0_49 = arith.constant 0 : index
    %c0_50 = arith.constant 0 : index
    %132 = vector.load %arg11[%c0_48, %c0_49, %c0_50] : memref<1x8x32xf32, #tpu.memory_space<vmem>>, vector<1x8x32xf32>
    %133 = vector.shape_cast %132 : vector<1x8x32xf32> to vector<8x32xf32>
    %134 = vector.shape_cast %131 : vector<8x32xf32> to vector<1x8x32xf32>
    tpu.vector_store %arg11[%c0_48, %c0_49, %c0_50], %134 {strides = array<i32>} : memref<1x8x32xf32, #tpu.memory_space<vmem>>, vector<1x8x32xf32>,
    return
  }
  func.func @transform_0(%arg0: i32) -> (i32, i32, i32) {
    %c0_i32 = arith.constant 0 : i32
    %c0_i32_0 = arith.constant 0 : i32
    %c0_i32_1 = arith.constant 0 : i32
    return %arg0, %c0_i32, %c0_i32_0 : i32, i32, i32
  }
  func.func @transform_1(%arg0: i32) -> (i32, i32, i32) {
    %c0_i32 = arith.constant 0 : i32
    %c0_i32_0 = arith.constant 0 : i32
    %c0_i32_1 = arith.constant 0 : i32
    return %arg0, %c0_i32, %c0_i32_0 : i32, i32, i32
  }
  func.func @transform_2(%arg0: i32) -> (i32, i32) {
    %c0_i32 = arith.constant 0 : i32
    %c0_i32_0 = arith.constant 0 : i32
    %c0_i32_1 = arith.constant 0 : i32
    return %c0_i32, %c0_i32_0 : i32, i32
  }
  func.func @transform_3(%arg0: i32) -> (i32, i32) {
    %c0_i32 = arith.constant 0 : i32
    %c0_i32_0 = arith.constant 0 : i32
    %c0_i32_1 = arith.constant 0 : i32
    return %c0_i32, %c0_i32_0 : i32, i32
  }
  func.func @transform_4(%arg0: i32) -> (i32, i32) {
    %c0_i32 = arith.constant 0 : i32
    %c0_i32_0 = arith.constant 0 : i32
    %c0_i32_1 = arith.constant 0 : i32
    return %c0_i32, %c0_i32_0 : i32, i32
  }
  func.func @transform_5(%arg0: i32) -> (i32, i32) {
    %c0_i32 = arith.constant 0 : i32
    %c0_i32_0 = arith.constant 0 : i32
    %c0_i32_1 = arith.constant 0 : i32
    return %c0_i32, %c0_i32_0 : i32, i32
  }
  func.func @transform_6(%arg0: i32) -> (i32, i32) {
    %c0_i32 = arith.constant 0 : i32
    %c0_i32_0 = arith.constant 0 : i32
    %c0_i32_1 = arith.constant 0 : i32
    return %c0_i32, %c0_i32_0 : i32, i32
  }
  func.func @transform_7(%arg0: i32) -> (i32, i32) {
    %c0_i32 = arith.constant 0 : i32
    %c0_i32_0 = arith.constant 0 : i32
    %c0_i32_1 = arith.constant 0 : i32
    return %c0_i32, %c0_i32_0 : i32, i32
  }
  func.func @transform_8(%arg0: i32) -> (i32, i32) {
    %c0_i32 = arith.constant 0 : i32
    %c0_i32_0 = arith.constant 0 : i32
    %c0_i32_1 = arith.constant 0 : i32
    return %c0_i32, %c0_i32_0 : i32, i32
  }
  func.func @transform_9(%arg0: i32) -> (i32, i32) {
    %c0_i32 = arith.constant 0 : i32
    %c0_i32_0 = arith.constant 0 : i32
    %c0_i32_1 = arith.constant 0 : i32
    return %c0_i32, %c0_i32_0 : i32, i32
  }
  func.func @transform_10(%arg0: i32) -> (i32, i32, i32) {
    %c0_i32 = arith.constant 0 : i32
    %c0_i32_0 = arith.constant 0 : i32
    %c0_i32_1 = arith.constant 0 : i32
    return %arg0, %c0_i32, %c0_i32_0 : i32, i32, i32
  }
}

module attributes {stable_mosaic.version = 11 : i64} {
  func.func @_ffn_block_kernel(%arg0: i32, %arg1: memref<1x8x32xf32, #tpu.memory_space<vmem>>, %arg2: memref<32x128xbf16, #tpu.memory_space<vmem>>, %arg3: memref<1x128xf32, #tpu.memory_space<vmem>>, %arg4: memref<128x32xbf16, #tpu.memory_space<vmem>>, %arg5: memref<1x32xf32, #tpu.memory_space<vmem>>, %arg6: memref<1x32xf32, #tpu.memory_space<vmem>>, %arg7: memref<1x32xf32, #tpu.memory_space<vmem>>, %arg8: memref<1x8x32xf32, #tpu.memory_space<vmem>>) attributes {dimension_semantics = [#tpu.dimension_semantics<parallel>], iteration_bounds = array<i64: 2>, scalar_prefetch = 0 : i64, scratch_operands = 0 : i64, tpu.core_type = #tpu.core_type<tc>, window_params = [{transform_indices = @transform_0, window_bounds = array<i64: 1, 8, 32>}, {pipeline_mode = #tpu.pipeline_mode<synchronous>, transform_indices = @transform_1, window_bounds = array<i64: 32, 128>}, {pipeline_mode = #tpu.pipeline_mode<synchronous>, transform_indices = @transform_2, window_bounds = array<i64: 1, 128>}, {pipeline_mode = #tpu.pipeline_mode<synchronous>, transform_indices = @transform_3, window_bounds = array<i64: 128, 32>}, {pipeline_mode = #tpu.pipeline_mode<synchronous>, transform_indices = @transform_4, window_bounds = array<i64: 1, 32>}, {pipeline_mode = #tpu.pipeline_mode<synchronous>, transform_indices = @transform_5, window_bounds = array<i64: 1, 32>}, {pipeline_mode = #tpu.pipeline_mode<synchronous>, transform_indices = @transform_6, window_bounds = array<i64: 1, 32>}, {transform_indices = @transform_7, window_bounds = array<i64: 1, 8, 32>}]} {
    %c0 = arith.constant 0 : index
    %c0_0 = arith.constant 0 : index
    %c0_1 = arith.constant 0 : index
    %0 = vector.load %arg1[%c0, %c0_0, %c0_1] : memref<1x8x32xf32, #tpu.memory_space<vmem>>, vector<1x8x32xf32>
    %1 = vector.shape_cast %0 : vector<1x8x32xf32> to vector<8x32xf32>
    %2 = arith.truncf %1 : vector<8x32xf32> to vector<8x32xbf16>
    %c0_2 = arith.constant 0 : index
    %c0_3 = arith.constant 0 : index
    %3 = vector.load %arg2[%c0_2, %c0_3] : memref<32x128xbf16, #tpu.memory_space<vmem>>, vector<32x128xbf16>
    %cst = arith.constant dense<0.000000e+00> : vector<8x128xf32>
    %4 = tpu.matmul %2, %3, %cst {dimension_numbers = #tpu.dot_dimension_numbers<[1], [0], [0], [1], [0, 0, 1, 1], [], []>} : vector<8x32xbf16>, vector<32x128xbf16>, vector<8x128xf32> -> vector<8x128xf32>
    %c0_4 = arith.constant 0 : index
    %c0_5 = arith.constant 0 : index
    %5 = vector.load %arg3[%c0_4, %c0_5] : memref<1x128xf32, #tpu.memory_space<vmem>>, vector<1x128xf32>
    %6 = vector.broadcast %5 : vector<1x128xf32> to vector<8x128xf32>
    %7 = arith.addf %4, %6 : vector<8x128xf32>
    %cst_6 = arith.constant 0.000000e+00 : f32
    %8 = vector.broadcast %cst_6 : f32 to vector<8x128xf32>
    %9 = arith.maximumf %7, %8 : vector<8x128xf32>
    %10 = arith.truncf %9 : vector<8x128xf32> to vector<8x128xbf16>
    %c0_7 = arith.constant 0 : index
    %c0_8 = arith.constant 0 : index
    %11 = vector.load %arg4[%c0_7, %c0_8] : memref<128x32xbf16, #tpu.memory_space<vmem>>, vector<128x32xbf16>
    %cst_9 = arith.constant dense<0.000000e+00> : vector<8x32xf32>
    %12 = tpu.matmul %10, %11, %cst_9 {dimension_numbers = #tpu.dot_dimension_numbers<[1], [0], [0], [1], [0, 0, 1, 1], [], []>} : vector<8x128xbf16>, vector<128x32xbf16>, vector<8x32xf32> -> vector<8x32xf32>
    %c0_10 = arith.constant 0 : index
    %c0_11 = arith.constant 0 : index
    %13 = vector.load %arg5[%c0_10, %c0_11] : memref<1x32xf32, #tpu.memory_space<vmem>>, vector<1x32xf32>
    %14 = vector.broadcast %13 : vector<1x32xf32> to vector<8x32xf32>
    %15 = arith.addf %12, %14 : vector<8x32xf32>
    %16 = arith.addf %1, %15 : vector<8x32xf32>
    %c0_12 = arith.constant 0 : index
    %c0_13 = arith.constant 0 : index
    %17 = vector.load %arg6[%c0_12, %c0_13] : memref<1x32xf32, #tpu.memory_space<vmem>>, vector<1x32xf32>
    %c0_14 = arith.constant 0 : index
    %c0_15 = arith.constant 0 : index
    %18 = vector.load %arg7[%c0_14, %c0_15] : memref<1x32xf32, #tpu.memory_space<vmem>>, vector<1x32xf32>
    %cst_16 = arith.constant dense<0.000000e+00> : vector<8xf32>
    %19 = vector.multi_reduction <add>, %16, %cst_16 [1] : vector<8x32xf32> to vector<8xf32>
    %20 = vector.shape_cast %19 : vector<8xf32> to vector<8x1xf32>
    %cst_17 = arith.constant 3.200000e+01 : f32
    %21 = vector.broadcast %cst_17 : f32 to vector<8x1xf32>
    %22 = arith.divf %20, %21 : vector<8x1xf32>
    %23 = vector.broadcast %22 : vector<8x1xf32> to vector<8x32xf32>
    %24 = arith.subf %16, %23 : vector<8x32xf32>
    %25 = arith.mulf %24, %24 : vector<8x32xf32>
    %cst_18 = arith.constant dense<0.000000e+00> : vector<8xf32>
    %26 = vector.multi_reduction <add>, %25, %cst_18 [1] : vector<8x32xf32> to vector<8xf32>
    %27 = vector.shape_cast %26 : vector<8xf32> to vector<8x1xf32>
    %cst_19 = arith.constant 3.200000e+01 : f32
    %28 = vector.broadcast %cst_19 : f32 to vector<8x1xf32>
    %29 = arith.divf %27, %28 : vector<8x1xf32>
    %cst_20 = arith.constant 9.99999974E-6 : f32
    %30 = vector.broadcast %cst_20 : f32 to vector<8x1xf32>
    %31 = arith.addf %29, %30 : vector<8x1xf32>
    %32 = math.rsqrt %31 : vector<8x1xf32>
    %33 = vector.broadcast %32 : vector<8x1xf32> to vector<8x32xf32>
    %34 = arith.mulf %24, %33 : vector<8x32xf32>
    %35 = vector.broadcast %17 : vector<1x32xf32> to vector<8x32xf32>
    %36 = arith.mulf %34, %35 : vector<8x32xf32>
    %37 = vector.broadcast %18 : vector<1x32xf32> to vector<8x32xf32>
    %38 = arith.addf %36, %37 : vector<8x32xf32>
    %c0_21 = arith.constant 0 : index
    %c0_22 = arith.constant 0 : index
    %c0_23 = arith.constant 0 : index
    %39 = vector.load %arg8[%c0_21, %c0_22, %c0_23] : memref<1x8x32xf32, #tpu.memory_space<vmem>>, vector<1x8x32xf32>
    %40 = vector.shape_cast %39 : vector<1x8x32xf32> to vector<8x32xf32>
    %41 = vector.shape_cast %38 : vector<8x32xf32> to vector<1x8x32xf32>
    tpu.vector_store %arg8[%c0_21, %c0_22, %c0_23], %41 {strides = array<i32>} : memref<1x8x32xf32, #tpu.memory_space<vmem>>, vector<1x8x32xf32>,
    return
  }
  func.func @transform_0(%arg0: i32) -> (i32, i32, i32) {
    %c0_i32 = arith.constant 0 : i32
    %c0_i32_0 = arith.constant 0 : i32
    %c0_i32_1 = arith.constant 0 : i32
    return %arg0, %c0_i32, %c0_i32_0 : i32, i32, i32
  }
  func.func @transform_1(%arg0: i32) -> (i32, i32) {
    %c0_i32 = arith.constant 0 : i32
    %c0_i32_0 = arith.constant 0 : i32
    %c0_i32_1 = arith.constant 0 : i32
    return %c0_i32, %c0_i32_0 : i32, i32
  }
  func.func @transform_2(%arg0: i32) -> (i32, i32) {
    %c0_i32 = arith.constant 0 : i32
    %c0_i32_0 = arith.constant 0 : i32
    %c0_i32_1 = arith.constant 0 : i32
    return %c0_i32, %c0_i32_0 : i32, i32
  }
  func.func @transform_3(%arg0: i32) -> (i32, i32) {
    %c0_i32 = arith.constant 0 : i32
    %c0_i32_0 = arith.constant 0 : i32
    %c0_i32_1 = arith.constant 0 : i32
    return %c0_i32, %c0_i32_0 : i32, i32
  }
  func.func @transform_4(%arg0: i32) -> (i32, i32) {
    %c0_i32 = arith.constant 0 : i32
    %c0_i32_0 = arith.constant 0 : i32
    %c0_i32_1 = arith.constant 0 : i32
    return %c0_i32, %c0_i32_0 : i32, i32
  }
  func.func @transform_5(%arg0: i32) -> (i32, i32) {
    %c0_i32 = arith.constant 0 : i32
    %c0_i32_0 = arith.constant 0 : i32
    %c0_i32_1 = arith.constant 0 : i32
    return %c0_i32, %c0_i32_0 : i32, i32
  }
  func.func @transform_6(%arg0: i32) -> (i32, i32) {
    %c0_i32 = arith.constant 0 : i32
    %c0_i32_0 = arith.constant 0 : i32
    %c0_i32_1 = arith.constant 0 : i32
    return %c0_i32, %c0_i32_0 : i32, i32
  }
  func.func @transform_7(%arg0: i32) -> (i32, i32, i32) {
    %c0_i32 = arith.constant 0 : i32
    %c0_i32_0 = arith.constant 0 : i32
    %c0_i32_1 = arith.constant 0 : i32
    return %arg0, %c0_i32, %c0_i32_0 : i32, i32, i32
  }
}

</mosaic_0001>

<bundles_post_ra>
// kernel: transformer_forward.11
= control target key start
LH: loop header
LB: loop body
LE: loop exit
PB: predicated region body
PF: predicated region fallthrough
CT: control target
= control target key end

     0   :  { %s678_s24 = smov 0   ;;  %s748_s0 = inlined_call_operand.vmem [shape: f32[2,8,32], index: 0, kind: input, shape index: {}]   ;;  %s749_s1 = inlined_call_operand.vmem [shape: bf16[32,128], index: 1, kind: input, shape index: {}]   ;;  %s750_s2 = inlined_call_operand.vmem [shape: f32[1,128], index: 2, kind: input, shape index: {}]   ;;  %s751_s3 = inlined_call_operand.vmem [shape: bf16[128,32], index: 3, kind: input, shape index: {}]   ;;  %s752_s4 = inlined_call_operand.vmem [shape: f32[1,32], index: 4, kind: input, shape index: {}]   ;;  %s753_s5 = inlined_call_operand.vmem [shape: f32[1,32], index: 5, kind: input, shape index: {}]   ;;  %s754_s6 = inlined_call_operand.vmem [shape: f32[1,32], index: 6, kind: input, shape index: {}]   ;;  %s755_s7 = inlined_call_operand.vmem [shape: f32[2,8,32], index: 7, kind: output, shape index: {}]  }
   0x1 LB: > { %s542_s25 = sadd.s32 4294967295, %s634_s24   ;;  %p546_p0 = scmp.ge.s32.totalorder %s634_s24, 1  ;;  %s634_s24 = sphi %s678_s24, %s17_s24  }
   0x2   : > { %p236_p1 = scmp.lt.s32.totalorder %s634_s24, 3 }
   0x4   : > { %p237_p2 = pnand %p546_p0, %p236_p1 }
   0x5   : > { %v616_v0 = vld [vmem:[%s749_s1] sm:$0xff] (!%p237_p2)   ;;  %v636_v1 = vmov (!%p237_p2), 0.0   ;;  %v617_v2 = vld [vmem:[%s749_s1 + $0x8] sm:$0xff] (!%p237_p2)   ;;  %vm637_vm0 = vmmov (!%p237_p2), 0   ;;  %p266_p3 = scmp.lt.s32.totalorder (!%p237_p2), %s542_s25, 1  ;;  %vm300_vm1 = vcmask (!%p237_p2), 261120  }
   0x6   : > { %240 = sbr.rel (%p237_p2) target bundleno = 767 (0x2ff), region = 48  ;;  %578 = vmatprep.subr.bf16.mxu0 (!%p237_p2), %v636_v1  ;;  %586 = vmatprep.subr.bf16.mxu1 (!%p237_p2), %v636_v1  ;;  %v618_v3 = vld [vmem:[%s751_s3] sm:$0xff] (!%p237_p2)   ;;  %v619_v4 = vld [vmem:[%s751_s3 + $0x8] sm:$0xff] (!%p237_p2)   ;;  %v620_v6 = vld [vmem:[%s751_s3 + $0x10] sm:$0xff] (!%p237_p2)  }
   0x7   : > { %579 = vmatpush3.bf16.msra.mxu0 (!%p237_p2), %v616_v0  ;;  %582 = vmatprep.mubr.msk.bf16.mxu0 (!%p237_p2), %vm637_vm0, %v636_v1  ;;  %v621_v8 = vld [vmem:[%s751_s3 + $0x18] sm:$0xff] (!%p237_p2)   ;;  %v622_v9 = vld [vmem:[%s751_s3 + $0x20] sm:$0xff] (!%p237_p2)   ;;  %v623_v10 = vld [vmem:[%s751_s3 + $0x28] sm:$0xff] (!%p237_p2)  }
   0x8   : > { %580 = vmatprep.subr.bf16.mxu0 (!%p237_p2), %v636_v1  ;;  %602 = vmatprep.mubr.msk.bf16.mxu1 (!%p237_p2), %vm637_vm0, %v636_v1  ;;  %v624_v11 = vld [vmem:[%s751_s3 + $0x30] sm:$0xff] (!%p237_p2)   ;;  %v625_v12 = vld [vmem:[%s751_s3 + $0x38] sm:$0xff] (!%p237_p2)   ;;  %v549_v13 = vld [vmem:[%s750_s2] ss:$0 sm:$0xff] (!%p237_p2) }
   0x9   : > { %587 = vmatpush3.bf16.msra.mxu1 (!%p237_p2), %v618_v3  ;;  %v553_v21 = vld [vmem:[%s752_s4] ss:$0 sm:$0xff] (!%p237_p2) }
   0xa   : > { %588 = vmatprep.subr.bf16.mxu1 (!%p237_p2), %v636_v1  ;;  %v562_v38 = vld [vmem:[%s753_s5] ss:$0 sm:$0xff] (!%p237_p2) }
   0xb   : > { %581 = vmatpush3.bf16.msra.mxu0 (!%p237_p2), %v617_v2  ;;  %v563_v40 = vld [vmem:[%s754_s6] ss:$0 sm:$0xff] (!%p237_p2) }
   0xd   : > { %s757_s25 = smov (!%p266_p3, %s542_s25), 1  ;;  %589 = vmatpush3.bf16.msra.mxu1 %v619_v4 }
   0xe   : > { %s547_s11 = sshll.u32 %s757_s25, 3  ;;  %590 = vmatprep.subr.bf16.mxu1 %v636_v1 }
   0xf   : > { %s269_s14 = scalar_lea.vmem %s748_s0, %s547_s11  ;;  %s273_s17 = scalar_lea.vmem %s755_s7, %s547_s11 }
  0x10   : > { %v275_v5 = vld [vmem:[%s269_s14] sm:$0xff] }
  0x11   : > { %v276_v7 = vpack.c.bf16 %v275_v5, %v275_v5  ;;  %591 = vmatpush3.bf16.msra.mxu1 %v620_v6 }
  0x12   : > { %592 = vmatprep.subr.bf16.mxu1 %v636_v1 }
  0x13   : > { %583 = vmatmul.mubr.msk.bf16.vlgmr.msra.gmra.mrb[0].mxu0 %vm300_vm1, %v276_v7 }
  0x15   : > { %593 = vmatpush3.bf16.msra.mxu1 %v621_v8 }
  0x16   : > { %594 = vmatprep.subr.bf16.mxu1 %v636_v1 }
  0x19   : > { %595 = vmatpush3.bf16.msra.mxu1 %v622_v9 }
  0x1a   : > { %596 = vmatprep.subr.bf16.mxu1 %v636_v1 }
  0x1d   : > { %597 = vmatpush3.bf16.msra.mxu1 %v623_v10 }
  0x1e   : > { %598 = vmatprep.subr.bf16.mxu1 %v636_v1 }
  0x21   : > { %599 = vmatpush3.bf16.msra.mxu1 %v624_v11 }
  0x22   : > { %600 = vmatprep.subr.bf16.mxu1 %v636_v1 }
  0x25   : > { %601 = vmatpush3.bf16.msra.mxu1 %v625_v12 }
  0xe6   : > { %v338_v14 = vpop.f32.mrb[0].mxu0 }
  0xe7   : > { %v339_v15 = vadd.f32 %v549_v13, %v338_v14  ;;  %v584_v16 = vpop.f32.mrb[1].mxu0 }
  0xe8   : > { %v341_v17 = vpop.f32.mrb[2].mxu0 }
  0xe9   : > { %v344_v18 = vmax.f32 %v339_v15, 0.0  ;;  %v585_v19 = vpop.f32.mrb[3].mxu0 }
  0xeb   : > { %v345_v20 = vpack.c.bf16 %v344_v18, %v344_v18 }
  0xed   : > { %603 = vmatmul.mubr.bf16.vlgmr.msra.gmra.mrb[0].mxu1 %v345_v20 }
 0x1c0   : > { %v451_v22 = vpop.f32.mrb[0].mxu1 }
 0x1c1   : > { %v452_v23 = vadd.f32 %v553_v21, %v451_v22  ;;  %v604_v24 = vpop.f32.mrb[1].mxu1 }
 0x1c2   : > { %v454_v25 = vpop.f32.mrb[2].mxu1 }
 0x1c3   : > { %v605_v26 = vpop.f32.mrb[3].mxu1  ;;  %v457_v27 = vadd.f32 %v452_v23, %v275_v5 }
 0x1c5   : > { %v460_v28 = vsel %vm300_vm1, %v457_v27, 0.0 }
 0x1c6   : > { %461 = vadd.xlane.f32.xlu0 %v460_v28 }
 0x253   : > { %v462_v29 = vpop.xlane.xlu0 %461 }
 0x254   : > { %v464_v30 = vmul.f32 0.03125, %v462_v29 }
 0x256   : > { %v465_v31 = vsub.f32 %v457_v27, %v464_v30 }
 0x258   : > { %v466_v32 = vmul.f32 %v465_v31, %v465_v31 }
 0x25a   : > { %v467_v33 = vsel %vm300_vm1, %v466_v32, 0.0 }
 0x25b   : > { %468 = vadd.xlane.f32.xlu0 %v467_v33 }
 0x2e8   : > { %v469_v34 = vpop.xlane.xlu0 %468 }
 0x2e9   : > { %v470_v35 = vmul.f32 0.03125, %v469_v34 }
 0x2eb   : > { %v471_v36 = vadd.f32 1e-05, %v470_v35 }
 0x2ed   : > { %626 = vrsqrt.f32 %v471_v36 }
 0x2f7   : > { %v627_v37 = vpop.eup %626 }
 0x2f8   : > { %v473_v39 = vmul.f32 %v627_v37, %v465_v31 }
 0x2fa   : > { %v480_v41 = vmul.f32 %v562_v38, %v473_v39 }
 0x2fc   : > { %v487_v42 = vadd.f32 %v563_v40, %v480_v41 }
 0x2fe   : > { %488 = vst.msk [vmem:[%s273_s17] sm:$0xff] %vm300_vm1, %v487_v42 }
 0x2ff PF: > { %s17_s24 = sadd.s32 1, %s634_s24  }
 0x300   : > { %p14_p4 = scmp.ge.s32.totalorder %s17_s24, 4  }
 0x302   :  { %16 = sbr.rel (!%p14_p4) target bundleno = 1 (0x1), region = 78 }

// kernel: transformer_forward.14
= control target key start
LH: loop header
LB: loop body
LE: loop exit
PB: predicated region body
PF: predicated region fallthrough
CT: control target
= control target key end

     0   :  { %s1191_s24 = smov 0   ;;  %s1324_s0 = inlined_call_operand.vmem [shape: f32[2,8,32], index: 0, kind: input, shape index: {}]   ;;  %s1325_s1 = inlined_call_operand.vmem [shape: bf16[32,96], index: 1, kind: input, shape index: {}]   ;;  %s1326_s2 = inlined_call_operand.vmem [shape: f32[1,96], index: 2, kind: input, shape index: {}]   ;;  %s1327_s3 = inlined_call_operand.vmem [shape: bf16[32,32], index: 3, kind: input, shape index: {}]   ;;  %s1328_s4 = inlined_call_operand.vmem [shape: f32[1,32], index: 4, kind: input, shape index: {}]   ;;  %s1329_s5 = inlined_call_operand.vmem [shape: f32[1,32], index: 5, kind: input, shape index: {}]   ;;  %s1330_s6 = inlined_call_operand.vmem [shape: f32[1,32], index: 6, kind: input, shape index: {}]   ;;  %s1331_s7 = inlined_call_operand.vmem [shape: f32[2,8,32], index: 7, kind: output, shape index: {}]  }
   0x1 LB: > { %s968_s25 = sadd.s32 4294967295, %s1133_s24   ;;  %p972_p0 = scmp.ge.s32.totalorder %s1133_s24, 1  ;;  %s1133_s24 = sphi %s1191_s24, %s17_s24  }
   0x2   : > { %p236_p1 = scmp.lt.s32.totalorder %s1133_s24, 3 }
   0x4   : > { %p237_p2 = pnand %p972_p0, %p236_p1 }
   0x5   : > { %v1105_v0 = vld [vmem:[%s1325_s1] sm:$0xff] (!%p237_p2)   ;;  %v1135_v1 = vmov (!%p237_p2), 0.0   ;;  %v1106_v2 = vld [vmem:[%s1325_s1 + $0x8] sm:$0xff] (!%p237_p2)   ;;  %vm1136_vm0 = vmmov (!%p237_p2), 0   ;;  %p266_p3 = scmp.lt.s32.totalorder (!%p237_p2), %s968_s25, 1  ;;  %vm300_vm1 = vcmask (!%p237_p2), 261120   ;;  %v344_v23 = vlaneseq (!%p237_p2) }
   0x6   : > { %240 = sbr.rel (%p237_p2) target bundleno = 1648 (0x670), region = 48  ;;  %1017 = vmatprep.subr.bf16.mxu0 (!%p237_p2), %v1135_v1  ;;  %1025 = vmatprep.subr.bf16.mxu1 (!%p237_p2), %v1135_v1  ;;  %v975_v5 = vld [vmem:[%s1326_s2] ss:$0 sm:$0xff] (!%p237_p2)  ;;  %s1137_s13 = smov (!%p237_p2), 120   ;;  %vm353_vm2 = vcmask (!%p237_p2), 64512   ;;  %vm414_vm4 = vcmask (!%p237_p2), 1043456  }
   0x7   : > { %1018 = vmatpush3.bf16.msra.mxu0 (!%p237_p2), %v1105_v0  ;;  %1021 = vmatprep.mubr.msk.bf16.mxu0 (!%p237_p2), %vm1136_vm0, %v1135_v1  ;;  %s1138_s14 = smov (!%p237_p2), 96   ;;  %s1139_s15 = smov (!%p237_p2), 80   ;;  %v345_v24 = vshrl.u32 (!%p237_p2), %v344_v23, 7  ;;  %v347_v25 = vand.u32 (!%p237_p2), 127, %v344_v23  ;;  %vm812_vm5 = vcmask (!%p237_p2), 130048   ;;  %vm814_vm6 = vcmask (!%p237_p2), 195584  }
   0x8   : > { %1019 = vmatprep.subr.bf16.mxu0 (!%p237_p2), %v1135_v1  ;;  %1027 = vmatprep.mubr.msk.bf16.mxu1 (!%p237_p2), %vm1136_vm0, %v1135_v1  ;;  %s1140_s16 = smov (!%p237_p2), 88   ;;  %s1141_s17 = smov (!%p237_p2), 72  }
   0x9   : > { %s1142_s18 = smov (!%p237_p2), 112   ;;  %s1143_s19 = smov (!%p237_p2), 104   ;;  %vm348_vm3 = vcmp.gt.s32.totalorder (!%p237_p2), %v347_v25, %v345_v24 }
   0xa   : > { %s1144_s20 = smov (!%p237_p2), 56   ;;  %s1145_s21 = smov (!%p237_p2), 64  }
   0xb   : > { %1020 = vmatpush3.bf16.msra.mxu0 (!%p237_p2), %v1106_v2  ;;  %s1146_s22 = smov (!%p237_p2), 40   ;;  %s1147_s23 = smov (!%p237_p2), 48  }
   0xc   : > { %1031 = vmatprep.subr.bf16.mxu0 (!%p237_p2), %v1135_v1  ;;  %s1148_s26 = smov (!%p237_p2), 8   ;;  %s1149_s9 = smov (!%p237_p2), 16  }
   0xd   : > { %s1333_s25 = smov (!%p266_p3, %s968_s25), 1 }
   0xe   : > { %s973_s30 = sshll.u32 %s1333_s25, 3 }
   0xf   : > { %s269_s10 = scalar_lea.vmem %s1324_s0, %s973_s30 }
  0x10   : > { %v1221_v3 = vld [vmem:[%s269_s10] sm:$0xff]  ;;  %s1150_s10 = smov 24  }
  0x11   : > { %v276_v4 = vpack.c.bf16 %v1221_v3, %v1221_v3 }
  0x13   : > { %1022 = vmatmul.mubr.msk.bf16.vlgmr.msra.gmra.mrb[0].mxu0 %vm300_vm1, %v276_v4 }
  0x14   : > { %1033 = vmatprep.mubr.msk.bf16.mxu0 %vm1136_vm0, %v1135_v1 }
  0xe6   : > { %v338_v6 = vpop.f32.mrb[0].mxu0 }
  0xe7   : > { %v339_v7 = vadd.f32 %v975_v5, %v338_v6  ;;  %v1023_v8 = vpop.f32.mrb[1].mxu0 }
  0xe8   : > { %v341_v9 = vpop.f32.mrb[2].mxu0 }
  0xe9   : > { %v1231_v10 = vpack.c.bf16 %v339_v7, %v339_v7  ;;  %v1024_v11 = vpop.f32.mrb[3].mxu0 }
  0xeb   : > { %463 = vrot.lane.b32.xlu1 %v1231_v10, %s1137_s13  ;;  %351 = vrot.lane.b32.xlu0 %v1231_v10, %s1138_s14 }
  0xef   : > { %577 = vrot.lane.b32.xlu1 %v1231_v10, %s1139_s15  ;;  %465 = vrot.lane.b32.xlu0 %v1231_v10, %s1140_s16 }
  0xf3   : > { %689 = vrot.lane.b32.xlu1 %v1231_v10, %s1141_s17  ;;  %575 = vrot.lane.b32.xlu0 %v1231_v10, %s1142_s18 }
  0xf7   : > { %687 = vrot.lane.b32.xlu0 %v1231_v10, %s1143_s19  ;;  %s273_s19 = scalar_lea.vmem %s1331_s7, %s973_s30 }
 0x15d   : > { %v352_v12 = vpop.permute.xlu0 %351  ;;  %v464_v15 = vpop.permute.xlu1 %463 }
 0x15e   : > { %v358_v13 = vsel %vm353_vm2, %v352_v12, 0 }
 0x15f   : > { %1026 = vmatpush3.bf16.xpose.msra.mxu1 %v358_v13 }
 0x160   : > { %1037 = vmatprep.subr.bf16.mxu1 %v1135_v1 }
 0x161   : > { %v466_v14 = vpop.permute.xlu0 %465  ;;  %v578_v17 = vpop.permute.xlu1 %577 }
 0x162   : > { %v471_v16 = vsel %vm353_vm2, %v466_v14, 0  ;;  %v583_v18 = vsel %vm353_vm2, %v578_v17, 0 }
 0x165   : > { %v690_v19 = vpop.permute.xlu1 %689  ;;  %v576_v20 = vpop.permute.xlu0 %575 }
 0x166   : > { %1028 = vmatmul.mubr.msk.bf16.vlgmr.msra.gmra.mrb[0].mxu1 %vm353_vm2, %v1231_v10  ;;  %v695_v21 = vsel %vm353_vm2, %v690_v19, 0 }
 0x167   : > { %1038 = vmatpush3.bf16.xpose.msra.mxu1 %v471_v16  ;;  %1039 = vmatprep.mubr.msk.bf16.mxu1 %vm1136_vm0, %v1135_v1 }
 0x168   : > { %1049 = vmatprep.subr.bf16.mxu1 %v1135_v1 }
 0x169   : > { %v688_v22 = vpop.permute.xlu0 %687 }
 0x16e   : > { %1040 = vmatmul.mubr.msk.bf16.vlgmr.msra.gmra.mrb[4].mxu1 %vm353_vm2, %v464_v15 }
 0x16f   : > { %1050 = vmatpush3.bf16.xpose.msra.mxu1 %v583_v18  ;;  %1051 = vmatprep.mubr.msk.bf16.mxu1 %vm1136_vm0, %v1135_v1 }
 0x170   : > { %1061 = vmatprep.subr.bf16.mxu1 %v1135_v1 }
 0x176   : > { %1052 = vmatmul.mubr.msk.bf16.vlgmr.msra.gmra.mrb[8].mxu1 %vm353_vm2, %v576_v20 }
 0x177   : > { %1062 = vmatpush3.bf16.xpose.msra.mxu1 %v695_v21  ;;  %1063 = vmatprep.mubr.msk.bf16.mxu1 %vm1136_vm0, %v1135_v1 }
 0x178   : > { %1073 = vmatprep.subr.bf16.mxu1 %v1135_v1 }
 0x17e   : > { %1064 = vmatmul.mubr.msk.bf16.vlgmr.msra.gmra.mrb[12].mxu1 %vm353_vm2, %v688_v22 }
 0x17f   : > { %1077 = vmatprep.mubr.msk.bf16.mxu1 %vm1136_vm0, %v1135_v1 }
 0x239   : > { %v394_v26 = vpop.f32.mrb[0].mxu1 }
 0x23a   : > { %v400_v27 = vmul.f32 0.35355338, %v394_v26  ;;  %v1029_v28 = vpop.f32.mrb[1].mxu1 }
 0x23b   : > { %v397_v29 = vpop.f32.mrb[2].mxu1 }
 0x23c   : > { %v1030_v30 = vpop.f32.mrb[3].mxu1  ;;  %v401_v31 = vsel %vm348_vm3, -1e+30, %v400_v27 }
 0x23d   : > { %v402_v32 = vsel %vm353_vm2, %v401_v31, -inf }
 0x23e   : > { %403 = vmax.xlane.f32.xlu1 %v402_v32 }
 0x241   : > { %v507_v33 = vpop.f32.mrb[4].mxu1 }
 0x242   : > { %v513_v34 = vmul.f32 0.35355338, %v507_v33  ;;  %v1041_v35 = vpop.f32.mrb[5].mxu1 }
 0x243   : > { %v510_v36 = vpop.f32.mrb[6].mxu1 }
 0x244   : > { %v1042_v37 = vpop.f32.mrb[7].mxu1  ;;  %v514_v38 = vsel %vm348_vm3, -1e+30, %v513_v34  ;;  %v1107_v36 = vld [vmem:[%s1327_s3] sm:$0xff]  }
 0x245   : > { %v515_v39 = vsel %vm353_vm2, %v514_v38, -inf  ;;  %1074 = vmatpush3.bf16.msra.mxu1 %v1107_v36 }
 0x246   : > { %516 = vmax.xlane.f32.xlu0 %v515_v39  ;;  %1075 = vmatprep.subr.bf16.mxu1 %v1135_v1 }
 0x249   : > { %v619_v40 = vpop.f32.mrb[8].mxu1 }
 0x24a   : > { %v625_v41 = vmul.f32 0.35355338, %v619_v40  ;;  %v1053_v42 = vpop.f32.mrb[9].mxu1 }
 0x24b   : > { %v622_v43 = vpop.f32.mrb[10].mxu1 }
 0x24c   : > { %v1054_v44 = vpop.f32.mrb[11].mxu1  ;;  %v626_v45 = vsel %vm348_vm3, -1e+30, %v625_v41 }
 0x24d   : > { %v627_v46 = vsel %vm353_vm2, %v626_v45, -inf }
 0x24e   : > { %628 = vmax.xlane.f32.xlu0 %v627_v46 }
 0x24f   : > { %522 = vrot.lane.b32.xlu1 %v1231_v10, %s1144_s20 }
 0x251   : > { %v731_v47 = vpop.f32.mrb[12].mxu1 }
 0x252   : > { %v1065_v48 = vpop.f32.mrb[13].mxu1  ;;  %v737_v51 = vmul.f32 0.35355338, %v731_v47 }
 0x253   : > { %v734_v49 = vpop.f32.mrb[14].mxu1 }
 0x254   : > { %v1066_v50 = vpop.f32.mrb[15].mxu1  ;;  %v738_v52 = vsel %vm348_vm3, -1e+30, %v737_v51 }
 0x255   : > { %v739_v53 = vsel %vm353_vm2, %v738_v52, -inf }
 0x264   : > { %409 = vrot.lane.b32.xlu0 %v1231_v10, %s1145_s21 }
 0x268   : > { %746 = vrot.lane.b32.xlu0 %v1231_v10, %s1146_s22 }
 0x273   : > { %740 = vmax.xlane.f32.xlu1 %v739_v53 }
 0x284   : > { %634 = vrot.lane.b32.xlu1 %v1231_v10, %s1147_s23 }
 0x2cb   : > { %v404_v54 = vpop.xlane.xlu1 %403 }
 0x2cc   : > { %v405_v55 = vsub.f32 %v401_v31, %v404_v54 }
 0x2ce   : > { %v406_v56 = vmul.f32 1.442695, %v405_v55 }
 0x2cf   : > { %v523_v4 = vpop.permute.xlu1 %522 }
 0x2d0   : > { %1109 = vpow2.f32 %v406_v56  ;;  %v528_v8 = vsel %vm414_vm4, %v523_v4, 0 }
 0x2d3   : > { %v517_v57 = vpop.xlane.xlu0 %516 }
 0x2d4   : > { %v518_v58 = vsub.f32 %v514_v38, %v517_v57  ;;  %v1108_v38 = vld [vmem:[%s1327_s3 + $0x8] sm:$0xff]  }
 0x2d5   : > { %1076 = vmatpush3.bf16.msra.mxu1 %v1108_v38 }
 0x2d6   : > { %v519_v59 = vmul.f32 1.442695, %v518_v58 }
 0x2d8   : > { %1111 = vpow2.f32 %v519_v59 }
 0x2da   : > { %v1110_v63 = vpop.eup %1109 }
 0x2db   : > { %v629_v60 = vpop.xlane.xlu0 %628  ;;  %v408_v6 = vpack.c.bf16 %v1110_v63, %v1110_v63  ;;  %v458_v9 = vsel %vm353_vm2, %v1110_v63, 0.0 }
 0x2dc   : > { %v630_v61 = vsub.f32 %v626_v45, %v629_v60  ;;  %v987_v60 = vld [vmem:[%s1328_s4] ss:$0 sm:$0xff] }
 0x2de   : > { %v631_v62 = vmul.f32 1.442695, %v630_v61 }
 0x2df   : > { %v410_v0 = vpop.permute.xlu0 %409 }
 0x2e0   : > { %1113 = vpow2.f32 %v631_v62  ;;  %v416_v2 = vsel %vm414_vm4, %v410_v0, 0 }
 0x2e1   : > { %1032 = vmatpush3.bf16.msra.mxu0 %v416_v2 }
 0x2e2   : > { %v1112_v5 = vpop.eup %1111  ;;  %1043 = vmatprep.subr.bf16.mxu0 %v1135_v1 }
 0x2e3   : > { %v570_v7 = vsel %vm353_vm2, %v1112_v5, 0.0  ;;  %v521_v11 = vpack.c.bf16 %v1112_v5, %v1112_v5  ;;  %v747_v18 = vpop.permute.xlu0 %746 }
 0x2e4   : > { %571 = vadd.xlane.f32.xlu1 %v570_v7  ;;  %1034 = vmatmul.mubr.msk.bf16.vlgmr.msra.gmra.mrb[4].mxu0 %vm353_vm2, %v408_v6  ;;  %v752_v20 = vsel %vm414_vm4, %v747_v18, 0 }
 0x2e5   : > { %1044 = vmatpush3.bf16.msra.mxu0 %v528_v8  ;;  %1045 = vmatprep.mubr.msk.bf16.mxu0 %vm1136_vm0, %v1135_v1 }
 0x2e6   : > { %1055 = vmatprep.subr.bf16.mxu0 %v1135_v1 }
 0x2e8   : > { %459 = vadd.xlane.f32.xlu1 %v458_v9 }
 0x2ea   : > { %v1114_v10 = vpop.eup %1113 }
 0x2eb   : > { %v682_v12 = vsel %vm353_vm2, %v1114_v10, 0.0  ;;  %v633_v19 = vpack.c.bf16 %v1114_v10, %v1114_v10 }
 0x2ec   : > { %683 = vadd.xlane.f32.xlu0 %v682_v12  ;;  %1046 = vmatmul.mubr.msk.bf16.vlgmr.msra.gmra.mrb[8].mxu0 %vm353_vm2, %v521_v11 }
 0x2ed   : > { %1057 = vmatprep.mubr.msk.bf16.mxu0 %vm1136_vm0, %v1135_v1 }
 0x300   : > { %v741_v13 = vpop.xlane.xlu1 %740 }
 0x301   : > { %v742_v14 = vsub.f32 %v738_v52, %v741_v13 }
 0x303   : > { %v743_v15 = vmul.f32 1.442695, %v742_v14 }
 0x304   : > { %v635_v16 = vpop.permute.xlu1 %634 }
 0x305   : > { %1115 = vpow2.f32 %v743_v15  ;;  %v640_v17 = vsel %vm414_vm4, %v635_v16, 0  ;;  %v992_v16 = vld [vmem:[%s1330_s6] ss:$0 sm:$0xff] }
 0x306   : > { %1056 = vmatpush3.bf16.msra.mxu0 %v640_v17 }
 0x307   : > { %1067 = vmatprep.subr.bf16.mxu0 %v1135_v1 }
 0x309   : > { %1058 = vmatmul.mubr.msk.bf16.vlgmr.msra.gmra.mrb[12].mxu0 %vm353_vm2, %v633_v19 }
 0x30a   : > { %1068 = vmatpush3.bf16.msra.mxu0 %v752_v20  ;;  %1069 = vmatprep.mubr.msk.bf16.mxu0 %vm1136_vm0, %v1135_v1 }
 0x30f   : > { %v1116_v21 = vpop.eup %1115 }
 0x310   : > { %v794_v22 = vsel %vm353_vm2, %v1116_v21, 0.0  ;;  %v745_v23 = vpack.c.bf16 %v1116_v21, %v1116_v21 }
 0x311   : > { %795 = vadd.xlane.f32.xlu0 %v794_v22 }
 0x312   : > { %1070 = vmatmul.mubr.msk.bf16.vlgmr.msra.gmra.mrb[16].mxu0 %vm353_vm2, %v745_v23 }
 0x371   : > { %v572_v24 = vpop.xlane.xlu1 %571 }
 0x372   : > { %1117 = vrcp.f32 %v572_v24 }
 0x375   : > { %v460_v50 = vpop.xlane.xlu1 %459 }
 0x379   : > { %v684_v35 = vpop.xlane.xlu0 %683 }
 0x37a   : > { %1119 = vrcp.f32 %v684_v35 }
 0x37c   : > { %v1118_v29 = vpop.eup %1117 }
 0x384   : > { %v1120_v39 = vpop.eup %1119 }
 0x39e   : > { %v796_v37 = vpop.xlane.xlu0 %795 }
 0x39f   : > { %1121 = vrcp.f32 %v796_v37 }
 0x3a0   : > { %1123 = vrcp.f32 %v460_v50 }
 0x3a9   : > { %v1122_v45 = vpop.eup %1121 }
 0x3aa   : > { %v1124_v51 = vpop.eup %1123 }
 0x3b7   : > { %v452_v25 = vpop.f32.mrb[4].mxu0 }
 0x3b8   : > { %v1035_v26 = vpop.f32.mrb[5].mxu0  ;;  %v462_v54 = vmul.f32 %v1124_v51, %v452_v25 }
 0x3b9   : > { %v455_v27 = vpop.f32.mrb[6].mxu0 }
 0x3ba   : > { %v1036_v28 = vpop.f32.mrb[7].mxu0 }
 0x3bf   : > { %v564_v30 = vpop.f32.mrb[8].mxu0 }
 0x3c0   : > { %v574_v31 = vmul.f32 %v1118_v29, %v564_v30  ;;  %v1047_v32 = vpop.f32.mrb[9].mxu0 }
 0x3c1   : > { %v567_v33 = vpop.f32.mrb[10].mxu0 }
 0x3c2   : > { %800 = vrot.lane.b32.xlu0 %v574_v31, %s1148_s26  ;;  %v1048_v34 = vpop.f32.mrb[11].mxu0 }
 0x3dc   : > { %v676_v40 = vpop.f32.mrb[12].mxu0 }
 0x3dd   : > { %v686_v41 = vmul.f32 %v1120_v39, %v676_v40  ;;  %v1059_v42 = vpop.f32.mrb[13].mxu0 }
 0x3de   : > { %v679_v43 = vpop.f32.mrb[14].mxu0 }
 0x3df   : > { %804 = vrot.lane.b32.xlu1 %v686_v41, %s1149_s9  ;;  %v1060_v44 = vpop.f32.mrb[15].mxu0 }
 0x3e5   : > { %v788_v46 = vpop.f32.mrb[16].mxu0 }
 0x3e6   : > { %v798_v47 = vmul.f32 %v1122_v45, %v788_v46  ;;  %v1071_v48 = vpop.f32.mrb[17].mxu0 }
 0x3e7   : > { %v791_v1 = vpop.f32.mrb[18].mxu0 }
 0x3e8   : > { %808 = vrot.lane.b32.xlu1 %v798_v47, %s1150_s10  ;;  %v1072_v49 = vpop.f32.mrb[19].mxu0 }
 0x434   : > { %v801_v52 = vpop.permute.xlu0 %800 }
 0x435   : > { %v811_v55 = vsel %vm353_vm2, %v462_v54, %v801_v52 }
 0x451   : > { %v805_v53 = vpop.permute.xlu1 %804 }
 0x452   : > { %v813_v56 = vsel %vm812_vm5, %v811_v55, %v805_v53 }
 0x45a   : > { %v809_v57 = vpop.permute.xlu1 %808 }
 0x45b   : > { %v815_v58 = vsel %vm814_vm6, %v813_v56, %v809_v57 }
 0x45c   : > { %v816_v59 = vpack.c.bf16 %v815_v58, %v815_v58 }
 0x45e   : > { %1078 = vmatmul.mubr.msk.bf16.vlgmr.msra.gmra.mrb[16].mxu1 %vm300_vm1, %v816_v59 }
 0x531   : > { %v877_v61 = vpop.f32.mrb[16].mxu1 }
 0x532   : > { %v878_v62 = vadd.f32 %v987_v60, %v877_v61  ;;  %v1079_v63 = vpop.f32.mrb[17].mxu1 }
 0x533   : > { %v880_v0 = vpop.f32.mrb[18].mxu1 }
 0x534   : > { %v1080_v2 = vpop.f32.mrb[19].mxu1  ;;  %v883_v4 = vadd.f32 %v878_v62, %v1221_v3  ;;  %v991_v3 = vld [vmem:[%s1329_s5] ss:$0 sm:$0xff] }
 0x536   : > { %v886_v5 = vsel %vm300_vm1, %v883_v4, 0.0 }
 0x537   : > { %887 = vadd.xlane.f32.xlu0 %v886_v5 }
 0x5c4   : > { %v888_v6 = vpop.xlane.xlu0 %887 }
 0x5c5   : > { %v890_v7 = vmul.f32 0.03125, %v888_v6 }
 0x5c7   : > { %v891_v8 = vsub.f32 %v883_v4, %v890_v7 }
 0x5c9   : > { %v892_v9 = vmul.f32 %v891_v8, %v891_v8 }
 0x5cb   : > { %v893_v10 = vsel %vm300_vm1, %v892_v9, 0.0 }
 0x5cc   : > { %894 = vadd.xlane.f32.xlu1 %v893_v10 }
 0x659   : > { %v895_v11 = vpop.xlane.xlu1 %894 }
 0x65a   : > { %v896_v12 = vmul.f32 0.03125, %v895_v11 }
 0x65c   : > { %v897_v13 = vadd.f32 1e-05, %v896_v12 }
 0x65e   : > { %1125 = vrsqrt.f32 %v897_v13 }
 0x668   : > { %v1126_v14 = vpop.eup %1125 }
 0x669   : > { %v899_v15 = vmul.f32 %v1126_v14, %v891_v8 }
 0x66b   : > { %v906_v17 = vmul.f32 %v991_v3, %v899_v15 }
 0x66d   : > { %v913_v18 = vadd.f32 %v992_v16, %v906_v17 }
 0x66f   : > { %914 = vst.msk [vmem:[%s273_s19] sm:$0xff] %vm300_vm1, %v913_v18 }
 0x670 PF: > { %s17_s24 = sadd.s32 1, %s1133_s24  }
 0x671   : > { %p14_p4 = scmp.ge.s32.totalorder %s17_s24, 4  }
 0x673   :  { %16 = sbr.rel (!%p14_p4) target bundleno = 1 (0x1), region = 78 }

// kernel: transformer_forward.10
= control target key start
LH: loop header
LB: loop body
LE: loop exit
PB: predicated region body
PF: predicated region fallthrough
CT: control target
= control target key end

     0   :  { %s1182_s24 = smov 0   ;;  %s1311_s0 = inlined_call_operand.vmem [shape: f32[2,8,32], index: 0, kind: input, shape index: {}]   ;;  %s1312_s1 = inlined_call_operand.vmem [shape: bf16[32,96], index: 1, kind: input, shape index: {}]   ;;  %s1313_s2 = inlined_call_operand.vmem [shape: f32[1,96], index: 2, kind: input, shape index: {}]   ;;  %s1314_s3 = inlined_call_operand.vmem [shape: bf16[32,32], index: 3, kind: input, shape index: {}]   ;;  %s1315_s4 = inlined_call_operand.vmem [shape: f32[1,32], index: 4, kind: input, shape index: {}]   ;;  %s1316_s5 = inlined_call_operand.vmem [shape: f32[1,32], index: 5, kind: input, shape index: {}]   ;;  %s1317_s6 = inlined_call_operand.vmem [shape: f32[1,32], index: 6, kind: input, shape index: {}]   ;;  %s1318_s7 = inlined_call_operand.vmem [shape: f32[2,8,32], index: 7, kind: output, shape index: {}]  }
   0x1 LB: > { %s959_s25 = sadd.s32 4294967295, %s1124_s24   ;;  %p963_p0 = scmp.ge.s32.totalorder %s1124_s24, 1  ;;  %s1124_s24 = sphi %s1182_s24, %s17_s24  }
   0x2   : > { %p236_p1 = scmp.lt.s32.totalorder %s1124_s24, 3 }
   0x4   : > { %p237_p2 = pnand %p963_p0, %p236_p1 }
   0x5   : > { %v1096_v0 = vld [vmem:[%s1312_s1] sm:$0xff] (!%p237_p2)   ;;  %v1126_v1 = vmov (!%p237_p2), 0.0   ;;  %v1097_v2 = vld [vmem:[%s1312_s1 + $0x8] sm:$0xff] (!%p237_p2)   ;;  %vm1127_vm0 = vmmov (!%p237_p2), 0   ;;  %p266_p3 = scmp.lt.s32.totalorder (!%p237_p2), %s959_s25, 1  ;;  %vm300_vm1 = vcmask (!%p237_p2), 261120  }
   0x6   : > { %240 = sbr.rel (%p237_p2) target bundleno = 1647 (0x66f), region = 48  ;;  %1008 = vmatprep.subr.bf16.mxu0 (!%p237_p2), %v1126_v1  ;;  %1016 = vmatprep.subr.bf16.mxu1 (!%p237_p2), %v1126_v1  ;;  %v966_v5 = vld [vmem:[%s1313_s2] ss:$0 sm:$0xff] (!%p237_p2)  ;;  %s1128_s13 = smov (!%p237_p2), 120   ;;  %vm348_vm2 = vcmask (!%p237_p2), 64512   ;;  %vm408_vm3 = vcmask (!%p237_p2), 1043456  }
   0x7   : > { %1009 = vmatpush3.bf16.msra.mxu0 (!%p237_p2), %v1096_v0  ;;  %1012 = vmatprep.mubr.msk.bf16.mxu0 (!%p237_p2), %vm1127_vm0, %v1126_v1  ;;  %s1129_s14 = smov (!%p237_p2), 96   ;;  %s1130_s15 = smov (!%p237_p2), 80   ;;  %vm803_vm4 = vcmask (!%p237_p2), 130048   ;;  %vm805_vm5 = vcmask (!%p237_p2), 195584  }
   0x8   : > { %1010 = vmatprep.subr.bf16.mxu0 (!%p237_p2), %v1126_v1  ;;  %1018 = vmatprep.mubr.msk.bf16.mxu1 (!%p237_p2), %vm1127_vm0, %v1126_v1  ;;  %s1131_s16 = smov (!%p237_p2), 88   ;;  %s1132_s17 = smov (!%p237_p2), 72  }
   0x9   : > { %s1133_s18 = smov (!%p237_p2), 112   ;;  %s1134_s19 = smov (!%p237_p2), 104  }
   0xa   : > { %s1135_s20 = smov (!%p237_p2), 56   ;;  %s1136_s21 = smov (!%p237_p2), 64  }
   0xb   : > { %1011 = vmatpush3.bf16.msra.mxu0 (!%p237_p2), %v1097_v2  ;;  %s1137_s22 = smov (!%p237_p2), 40   ;;  %s1138_s23 = smov (!%p237_p2), 48  }
   0xc   : > { %1022 = vmatprep.subr.bf16.mxu0 (!%p237_p2), %v1126_v1  ;;  %s1139_s26 = smov (!%p237_p2), 8   ;;  %s1140_s9 = smov (!%p237_p2), 16  }
   0xd   : > { %s1320_s25 = smov (!%p266_p3, %s959_s25), 1 }
   0xe   : > { %s964_s30 = sshll.u32 %s1320_s25, 3 }
   0xf   : > { %s269_s10 = scalar_lea.vmem %s1311_s0, %s964_s30 }
  0x10   : > { %v1212_v3 = vld [vmem:[%s269_s10] sm:$0xff]  ;;  %s1141_s10 = smov 24  }
  0x11   : > { %v276_v4 = vpack.c.bf16 %v1212_v3, %v1212_v3 }
  0x13   : > { %1013 = vmatmul.mubr.msk.bf16.vlgmr.msra.gmra.mrb[0].mxu0 %vm300_vm1, %v276_v4 }
  0x14   : > { %1024 = vmatprep.mubr.msk.bf16.mxu0 %vm1127_vm0, %v1126_v1 }
  0xe6   : > { %v338_v6 = vpop.f32.mrb[0].mxu0 }
  0xe7   : > { %v339_v7 = vadd.f32 %v966_v5, %v338_v6  ;;  %v1014_v8 = vpop.f32.mrb[1].mxu0 }
  0xe8   : > { %v341_v9 = vpop.f32.mrb[2].mxu0 }
  0xe9   : > { %v1222_v10 = vpack.c.bf16 %v339_v7, %v339_v7  ;;  %v1015_v11 = vpop.f32.mrb[3].mxu0 }
  0xeb   : > { %457 = vrot.lane.b32.xlu1 %v1222_v10, %s1128_s13  ;;  %346 = vrot.lane.b32.xlu0 %v1222_v10, %s1129_s14 }
  0xef   : > { %570 = vrot.lane.b32.xlu1 %v1222_v10, %s1130_s15  ;;  %459 = vrot.lane.b32.xlu0 %v1222_v10, %s1131_s16 }
  0xf3   : > { %681 = vrot.lane.b32.xlu1 %v1222_v10, %s1132_s17  ;;  %568 = vrot.lane.b32.xlu0 %v1222_v10, %s1133_s18 }
  0xf7   : > { %679 = vrot.lane.b32.xlu0 %v1222_v10, %s1134_s19  ;;  %s273_s19 = scalar_lea.vmem %s1318_s7, %s964_s30 }
 0x15d   : > { %v347_v12 = vpop.permute.xlu0 %346  ;;  %v458_v15 = vpop.permute.xlu1 %457 }
 0x15e   : > { %v353_v13 = vsel %vm348_vm2, %v347_v12, 0 }
 0x15f   : > { %1017 = vmatpush3.bf16.xpose.msra.mxu1 %v353_v13 }
 0x160   : > { %1028 = vmatprep.subr.bf16.mxu1 %v1126_v1 }
 0x161   : > { %v460_v14 = vpop.permute.xlu0 %459  ;;  %v571_v17 = vpop.permute.xlu1 %570 }
 0x162   : > { %v465_v16 = vsel %vm348_vm2, %v460_v14, 0  ;;  %v576_v18 = vsel %vm348_vm2, %v571_v17, 0 }
 0x165   : > { %v682_v19 = vpop.permute.xlu1 %681  ;;  %v569_v20 = vpop.permute.xlu0 %568 }
 0x166   : > { %1019 = vmatmul.mubr.msk.bf16.vlgmr.msra.gmra.mrb[0].mxu1 %vm348_vm2, %v1222_v10  ;;  %v687_v21 = vsel %vm348_vm2, %v682_v19, 0 }
 0x167   : > { %1029 = vmatpush3.bf16.xpose.msra.mxu1 %v465_v16  ;;  %1030 = vmatprep.mubr.msk.bf16.mxu1 %vm1127_vm0, %v1126_v1 }
 0x168   : > { %1040 = vmatprep.subr.bf16.mxu1 %v1126_v1 }
 0x169   : > { %v680_v22 = vpop.permute.xlu0 %679 }
 0x16e   : > { %1031 = vmatmul.mubr.msk.bf16.vlgmr.msra.gmra.mrb[4].mxu1 %vm348_vm2, %v458_v15 }
 0x16f   : > { %1041 = vmatpush3.bf16.xpose.msra.mxu1 %v576_v18  ;;  %1042 = vmatprep.mubr.msk.bf16.mxu1 %vm1127_vm0, %v1126_v1 }
 0x170   : > { %1052 = vmatprep.subr.bf16.mxu1 %v1126_v1 }
 0x176   : > { %1043 = vmatmul.mubr.msk.bf16.vlgmr.msra.gmra.mrb[8].mxu1 %vm348_vm2, %v569_v20 }
 0x177   : > { %1053 = vmatpush3.bf16.xpose.msra.mxu1 %v687_v21  ;;  %1054 = vmatprep.mubr.msk.bf16.mxu1 %vm1127_vm0, %v1126_v1 }
 0x178   : > { %1064 = vmatprep.subr.bf16.mxu1 %v1126_v1 }
 0x17e   : > { %1055 = vmatmul.mubr.msk.bf16.vlgmr.msra.gmra.mrb[12].mxu1 %vm348_vm2, %v680_v22 }
 0x17f   : > { %1068 = vmatprep.mubr.msk.bf16.mxu1 %vm1127_vm0, %v1126_v1 }
 0x239   : > { %v389_v23 = vpop.f32.mrb[0].mxu1 }
 0x23a   : > { %v395_v24 = vmul.f32 0.35355338, %v389_v23  ;;  %v1020_v25 = vpop.f32.mrb[1].mxu1 }
 0x23b   : > { %v392_v26 = vpop.f32.mrb[2].mxu1 }
 0x23c   : > { %v1021_v27 = vpop.f32.mrb[3].mxu1  ;;  %v396_v28 = vsel %vm348_vm2, %v395_v24, -inf }
 0x23d   : > { %397 = vmax.xlane.f32.xlu1 %v396_v28 }
 0x241   : > { %v501_v29 = vpop.f32.mrb[4].mxu1 }
 0x242   : > { %v507_v30 = vmul.f32 0.35355338, %v501_v29  ;;  %v1032_v31 = vpop.f32.mrb[5].mxu1  ;;  %v1098_v29 = vld [vmem:[%s1314_s3] sm:$0xff]  }
 0x243   : > { %v504_v32 = vpop.f32.mrb[6].mxu1  ;;  %1065 = vmatpush3.bf16.msra.mxu1 %v1098_v29  ;;  %v1099_v31 = vld [vmem:[%s1314_s3 + $0x8] sm:$0xff]  }
 0x244   : > { %v1033_v33 = vpop.f32.mrb[7].mxu1  ;;  %v508_v34 = vsel %vm348_vm2, %v507_v30, -inf  ;;  %1066 = vmatprep.subr.bf16.mxu1 %v1126_v1 }
 0x245   : > { %509 = vmax.xlane.f32.xlu0 %v508_v34 }
 0x247   : > { %1067 = vmatpush3.bf16.msra.mxu1 %v1099_v31 }
 0x249   : > { %v612_v35 = vpop.f32.mrb[8].mxu1 }
 0x24a   : > { %v618_v36 = vmul.f32 0.35355338, %v612_v35  ;;  %v1044_v37 = vpop.f32.mrb[9].mxu1 }
 0x24b   : > { %v615_v38 = vpop.f32.mrb[10].mxu1 }
 0x24c   : > { %v1045_v39 = vpop.f32.mrb[11].mxu1  ;;  %v619_v40 = vsel %vm348_vm2, %v618_v36, -inf }
 0x24d   : > { %620 = vmax.xlane.f32.xlu0 %v619_v40 }
 0x24e   : > { %515 = vrot.lane.b32.xlu1 %v1222_v10, %s1135_s20 }
 0x251   : > { %v723_v41 = vpop.f32.mrb[12].mxu1 }
 0x252   : > { %v1056_v42 = vpop.f32.mrb[13].mxu1  ;;  %v729_v45 = vmul.f32 0.35355338, %v723_v41 }
 0x253   : > { %v726_v43 = vpop.f32.mrb[14].mxu1 }
 0x254   : > { %v1057_v44 = vpop.f32.mrb[15].mxu1  ;;  %v730_v46 = vsel %vm348_vm2, %v729_v45, -inf }
 0x263   : > { %403 = vrot.lane.b32.xlu0 %v1222_v10, %s1136_s21 }
 0x267   : > { %737 = vrot.lane.b32.xlu0 %v1222_v10, %s1137_s22 }
 0x272   : > { %731 = vmax.xlane.f32.xlu1 %v730_v46 }
 0x283   : > { %626 = vrot.lane.b32.xlu1 %v1222_v10, %s1138_s23 }
 0x2ca   : > { %v398_v47 = vpop.xlane.xlu1 %397 }
 0x2cb   : > { %v399_v48 = vsub.f32 %v395_v24, %v398_v47 }
 0x2cd   : > { %v400_v49 = vmul.f32 1.442695, %v399_v48 }
 0x2ce   : > { %v516_v59 = vpop.permute.xlu1 %515 }
 0x2cf   : > { %1100 = vpow2.f32 %v400_v49  ;;  %v521_v63 = vsel %vm408_vm3, %v516_v59, 0 }
 0x2d2   : > { %v510_v50 = vpop.xlane.xlu0 %509 }
 0x2d3   : > { %v511_v51 = vsub.f32 %v507_v30, %v510_v50 }
 0x2d5   : > { %v512_v52 = vmul.f32 1.442695, %v511_v51 }
 0x2d7   : > { %1102 = vpow2.f32 %v512_v52 }
 0x2d9   : > { %v1101_v56 = vpop.eup %1100 }
 0x2da   : > { %v621_v53 = vpop.xlane.xlu0 %620  ;;  %v402_v61 = vpack.c.bf16 %v1101_v56, %v1101_v56  ;;  %v452_v0 = vsel %vm348_vm2, %v1101_v56, 0.0 }
 0x2db   : > { %v622_v54 = vsub.f32 %v618_v36, %v621_v53  ;;  %v978_v53 = vld [vmem:[%s1315_s4] ss:$0 sm:$0xff] }
 0x2dd   : > { %v623_v55 = vmul.f32 1.442695, %v622_v54 }
 0x2de   : > { %v404_v57 = vpop.permute.xlu0 %403 }
 0x2df   : > { %1104 = vpow2.f32 %v623_v55  ;;  %v410_v58 = vsel %vm408_vm3, %v404_v57, 0 }
 0x2e0   : > { %1023 = vmatpush3.bf16.msra.mxu0 %v410_v58 }
 0x2e1   : > { %v1103_v60 = vpop.eup %1102  ;;  %1034 = vmatprep.subr.bf16.mxu0 %v1126_v1 }
 0x2e2   : > { %v563_v62 = vsel %vm348_vm2, %v1103_v60, 0.0  ;;  %v514_v4 = vpack.c.bf16 %v1103_v60, %v1103_v60  ;;  %v738_v11 = vpop.permute.xlu0 %737 }
 0x2e3   : > { %564 = vadd.xlane.f32.xlu1 %v563_v62  ;;  %1025 = vmatmul.mubr.msk.bf16.vlgmr.msra.gmra.mrb[4].mxu0 %vm348_vm2, %v402_v61  ;;  %v743_v13 = vsel %vm408_vm3, %v738_v11, 0 }
 0x2e4   : > { %1035 = vmatpush3.bf16.msra.mxu0 %v521_v63  ;;  %1036 = vmatprep.mubr.msk.bf16.mxu0 %vm1127_vm0, %v1126_v1 }
 0x2e5   : > { %1046 = vmatprep.subr.bf16.mxu0 %v1126_v1 }
 0x2e7   : > { %453 = vadd.xlane.f32.xlu1 %v452_v0 }
 0x2e9   : > { %v1105_v2 = vpop.eup %1104 }
 0x2ea   : > { %v674_v5 = vsel %vm348_vm2, %v1105_v2, 0.0  ;;  %v625_v12 = vpack.c.bf16 %v1105_v2, %v1105_v2 }
 0x2eb   : > { %675 = vadd.xlane.f32.xlu0 %v674_v5  ;;  %1037 = vmatmul.mubr.msk.bf16.vlgmr.msra.gmra.mrb[8].mxu0 %vm348_vm2, %v514_v4 }
 0x2ec   : > { %1048 = vmatprep.mubr.msk.bf16.mxu0 %vm1127_vm0, %v1126_v1 }
 0x2ff   : > { %v732_v6 = vpop.xlane.xlu1 %731 }
 0x300   : > { %v733_v7 = vsub.f32 %v729_v45, %v732_v6 }
 0x302   : > { %v734_v8 = vmul.f32 1.442695, %v733_v7 }
 0x303   : > { %v627_v9 = vpop.permute.xlu1 %626 }
 0x304   : > { %1106 = vpow2.f32 %v734_v8  ;;  %v632_v10 = vsel %vm408_vm3, %v627_v9, 0  ;;  %v983_v9 = vld [vmem:[%s1317_s6] ss:$0 sm:$0xff] }
 0x305   : > { %1047 = vmatpush3.bf16.msra.mxu0 %v632_v10 }
 0x306   : > { %1058 = vmatprep.subr.bf16.mxu0 %v1126_v1 }
 0x308   : > { %1049 = vmatmul.mubr.msk.bf16.vlgmr.msra.gmra.mrb[12].mxu0 %vm348_vm2, %v625_v12 }
 0x309   : > { %1059 = vmatpush3.bf16.msra.mxu0 %v743_v13  ;;  %1060 = vmatprep.mubr.msk.bf16.mxu0 %vm1127_vm0, %v1126_v1 }
 0x30e   : > { %v1107_v14 = vpop.eup %1106 }
 0x30f   : > { %v785_v15 = vsel %vm348_vm2, %v1107_v14, 0.0  ;;  %v736_v16 = vpack.c.bf16 %v1107_v14, %v1107_v14 }
 0x310   : > { %786 = vadd.xlane.f32.xlu0 %v785_v15 }
 0x311   : > { %1061 = vmatmul.mubr.msk.bf16.vlgmr.msra.gmra.mrb[16].mxu0 %vm348_vm2, %v736_v16 }
 0x370   : > { %v565_v17 = vpop.xlane.xlu1 %564 }
 0x371   : > { %1108 = vrcp.f32 %v565_v17 }
 0x374   : > { %v454_v43 = vpop.xlane.xlu1 %453 }
 0x378   : > { %v676_v28 = vpop.xlane.xlu0 %675 }
 0x379   : > { %1110 = vrcp.f32 %v676_v28 }
 0x37b   : > { %v1109_v22 = vpop.eup %1108 }
 0x383   : > { %v1111_v32 = vpop.eup %1110 }
 0x39d   : > { %v787_v30 = vpop.xlane.xlu0 %786 }
 0x39e   : > { %1112 = vrcp.f32 %v787_v30 }
 0x39f   : > { %1114 = vrcp.f32 %v454_v43 }
 0x3a8   : > { %v1113_v38 = vpop.eup %1112 }
 0x3a9   : > { %v1115_v44 = vpop.eup %1114 }
 0x3b6   : > { %v446_v18 = vpop.f32.mrb[4].mxu0 }
 0x3b7   : > { %v1026_v19 = vpop.f32.mrb[5].mxu0  ;;  %v456_v47 = vmul.f32 %v1115_v44, %v446_v18 }
 0x3b8   : > { %v449_v20 = vpop.f32.mrb[6].mxu0 }
 0x3b9   : > { %v1027_v21 = vpop.f32.mrb[7].mxu0 }
 0x3be   : > { %v557_v23 = vpop.f32.mrb[8].mxu0 }
 0x3bf   : > { %v567_v24 = vmul.f32 %v1109_v22, %v557_v23  ;;  %v1038_v25 = vpop.f32.mrb[9].mxu0 }
 0x3c0   : > { %v560_v26 = vpop.f32.mrb[10].mxu0 }
 0x3c1   : > { %791 = vrot.lane.b32.xlu0 %v567_v24, %s1139_s26  ;;  %v1039_v27 = vpop.f32.mrb[11].mxu0 }
 0x3db   : > { %v668_v33 = vpop.f32.mrb[12].mxu0 }
 0x3dc   : > { %v678_v34 = vmul.f32 %v1111_v32, %v668_v33  ;;  %v1050_v35 = vpop.f32.mrb[13].mxu0 }
 0x3dd   : > { %v671_v36 = vpop.f32.mrb[14].mxu0 }
 0x3de   : > { %795 = vrot.lane.b32.xlu1 %v678_v34, %s1140_s9  ;;  %v1051_v37 = vpop.f32.mrb[15].mxu0 }
 0x3e4   : > { %v779_v39 = vpop.f32.mrb[16].mxu0 }
 0x3e5   : > { %v789_v40 = vmul.f32 %v1113_v38, %v779_v39  ;;  %v1062_v41 = vpop.f32.mrb[17].mxu0 }
 0x3e6   : > { %v782_v1 = vpop.f32.mrb[18].mxu0 }
 0x3e7   : > { %799 = vrot.lane.b32.xlu1 %v789_v40, %s1141_s10  ;;  %v1063_v42 = vpop.f32.mrb[19].mxu0 }
 0x433   : > { %v792_v45 = vpop.permute.xlu0 %791 }
 0x434   : > { %v802_v48 = vsel %vm348_vm2, %v456_v47, %v792_v45 }
 0x450   : > { %v796_v46 = vpop.permute.xlu1 %795 }
 0x451   : > { %v804_v49 = vsel %vm803_vm4, %v802_v48, %v796_v46 }
 0x459   : > { %v800_v50 = vpop.permute.xlu1 %799 }
 0x45a   : > { %v806_v51 = vsel %vm805_vm5, %v804_v49, %v800_v50 }
 0x45b   : > { %v807_v52 = vpack.c.bf16 %v806_v51, %v806_v51 }
 0x45d   : > { %1069 = vmatmul.mubr.msk.bf16.vlgmr.msra.gmra.mrb[16].mxu1 %vm300_vm1, %v807_v52 }
 0x530   : > { %v868_v54 = vpop.f32.mrb[16].mxu1 }
 0x531   : > { %v869_v55 = vadd.f32 %v978_v53, %v868_v54  ;;  %v1070_v56 = vpop.f32.mrb[17].mxu1 }
 0x532   : > { %v871_v57 = vpop.f32.mrb[18].mxu1 }
 0x533   : > { %v1071_v58 = vpop.f32.mrb[19].mxu1  ;;  %v874_v59 = vadd.f32 %v869_v55, %v1212_v3  ;;  %v982_v3 = vld [vmem:[%s1316_s5] ss:$0 sm:$0xff] }
 0x535   : > { %v877_v60 = vsel %vm300_vm1, %v874_v59, 0.0 }
 0x536   : > { %878 = vadd.xlane.f32.xlu0 %v877_v60 }
 0x5c3   : > { %v879_v61 = vpop.xlane.xlu0 %878 }
 0x5c4   : > { %v881_v62 = vmul.f32 0.03125, %v879_v61 }
 0x5c6   : > { %v882_v63 = vsub.f32 %v874_v59, %v881_v62 }
 0x5c8   : > { %v883_v0 = vmul.f32 %v882_v63, %v882_v63 }
 0x5ca   : > { %v884_v2 = vsel %vm300_vm1, %v883_v0, 0.0 }
 0x5cb   : > { %885 = vadd.xlane.f32.xlu1 %v884_v2 }
 0x658   : > { %v886_v4 = vpop.xlane.xlu1 %885 }
 0x659   : > { %v887_v5 = vmul.f32 0.03125, %v886_v4 }
 0x65b   : > { %v888_v6 = vadd.f32 1e-05, %v887_v5 }
 0x65d   : > { %1116 = vrsqrt.f32 %v888_v6 }
 0x667   : > { %v1117_v7 = vpop.eup %1116 }
 0x668   : > { %v890_v8 = vmul.f32 %v1117_v7, %v882_v63 }
 0x66a   : > { %v897_v10 = vmul.f32 %v982_v3, %v890_v8 }
 0x66c   : > { %v904_v11 = vadd.f32 %v983_v9, %v897_v10 }
 0x66e   : > { %905 = vst.msk [vmem:[%s273_s19] sm:$0xff] %vm300_vm1, %v904_v11 }
 0x66f PF: > { %s17_s24 = sadd.s32 1, %s1124_s24  }
 0x670   : > { %p14_p4 = scmp.ge.s32.totalorder %s17_s24, 4  }
 0x672   :  { %16 = sbr.rel (!%p14_p4) target bundleno = 1 (0x1), region = 78 }

// kernel: transformer_forward.15
= control target key start
LH: loop header
LB: loop body
LE: loop exit
PB: predicated region body
PF: predicated region fallthrough
CT: control target
= control target key end

     0   :  { %s1385_s13 = smov 0   ;;  %s1525_s0 = inlined_call_operand.vmem [shape: f32[2,8,32], index: 0, kind: input, shape index: {}]   ;;  %s1526_s1 = inlined_call_operand.vmem [shape: f32[2,8,32], index: 1, kind: input, shape index: {}]   ;;  %s1527_s2 = inlined_call_operand.vmem [shape: bf16[32,32], index: 2, kind: input, shape index: {}]   ;;  %s1528_s3 = inlined_call_operand.vmem [shape: f32[1,32], index: 3, kind: input, shape index: {}]   ;;  %s1529_s4 = inlined_call_operand.vmem [shape: bf16[32,64], index: 4, kind: input, shape index: {}]   ;;  %s1530_s5 = inlined_call_operand.vmem [shape: f32[1,64], index: 5, kind: input, shape index: {}]   ;;  %s1531_s6 = inlined_call_operand.vmem [shape: bf16[32,32], index: 6, kind: input, shape index: {}]   ;;  %s1532_s7 = inlined_call_operand.vmem [shape: f32[1,32], index: 7, kind: input, shape index: {}]   ;;  %s1533_s8 = inlined_call_operand.vmem [shape: f32[1,32], index: 8, kind: input, shape index: {}]   ;;  %s1534_s9 = inlined_call_operand.vmem [shape: f32[1,32], index: 9, kind: input, shape index: {}]   ;;  %s1535_s10 = inlined_call_operand.vmem [shape: f32[2,8,32], index: 10, kind: output, shape index: {}]  }
   0x1 LB: > { %s1137_s14 = sadd.s32 4294967295, %s1316_s13   ;;  %p1141_p0 = scmp.ge.s32.totalorder %s1316_s13, 1  ;;  %s1316_s13 = sphi %s1385_s13, %s20_s13  }
   0x2   : > { %p320_p1 = scmp.lt.s32.totalorder %s1316_s13, 3 }
   0x4   : > { %p321_p2 = pnand %p1141_p0, %p320_p1 }
   0x5   : > { %v1286_v0 = vld [vmem:[%s1529_s4] sm:$0xff] (!%p321_p2)   ;;  %v1318_v1 = vmov (!%p321_p2), 0.0   ;;  %v1288_v3 = vld [vmem:[%s1529_s4 + $0x8] sm:$0xff] (!%p321_p2)   ;;  %vm1319_vm0 = vmmov (!%p321_p2), 0   ;;  %p360_p3 = scmp.lt.s32.totalorder (!%p321_p2), %s1137_s14, 1  ;;  %vm399_vm1 = vcmask (!%p321_p2), 261120  }
   0x6   : > { %324 = sbr.rel (%p321_p2) target bundleno = 1617 (0x651), region = 60  ;;  %1202 = vmatprep.subr.bf16.mxu1 (!%p321_p2), %v1318_v1  ;;  %1194 = vmatprep.subr.bf16.mxu0 (!%p321_p2), %v1318_v1  ;;  %v1287_v2 = vld [vmem:[%s1527_s2] sm:$0xff] (!%p321_p2)   ;;  %v1289_v4 = vld [vmem:[%s1527_s2 + $0x8] sm:$0xff] (!%p321_p2)   ;;  %vm512_vm2 = vcmask (!%p321_p2), 64512   ;;  %s1320_s15 = smov (!%p321_p2), 112   ;;  %vm573_vm3 = vcmask (!%p321_p2), 1043456  }
   0x7   : > { %1203 = vmatpush3.bf16.msra.mxu1 (!%p321_p2), %v1286_v0  ;;  %1206 = vmatprep.mubr.msk.bf16.mxu1 (!%p321_p2), %vm1319_vm0, %v1318_v1  ;;  %v1149_v9 = vld [vmem:[%s1530_s5] ss:$0 sm:$0xff] (!%p321_p2)  ;;  %s1321_s16 = smov (!%p321_p2), 120   ;;  %s1322_s17 = smov (!%p321_p2), 104   ;;  %vm969_vm4 = vcmask (!%p321_p2), 130048   ;;  %vm971_vm5 = vcmask (!%p321_p2), 195584  }
   0x8   : > { %1204 = vmatprep.subr.bf16.mxu1 (!%p321_p2), %v1318_v1  ;;  %1195 = vmatpush3.bf16.msra.mxu0 (!%p321_p2), %v1287_v2  ;;  %v1145_v10 = vld [vmem:[%s1528_s3] ss:$0 sm:$0xff] (!%p321_p2)  ;;  %s1323_s18 = smov (!%p321_p2), 96   ;;  %s1324_s19 = smov (!%p321_p2), 80  }
   0x9   : > { %1196 = vmatprep.subr.bf16.mxu0 (!%p321_p2), %v1318_v1  ;;  %1198 = vmatprep.mubr.msk.bf16.mxu0 (!%p321_p2), %vm1319_vm0, %v1318_v1  ;;  %s1325_s20 = smov (!%p321_p2), 72   ;;  %s1326_s21 = smov (!%p321_p2), 88  }
   0xa   : > { %s1327_s25 = smov (!%p321_p2), 8   ;;  %s1328_s28 = smov (!%p321_p2), 16  }
   0xb   : > { %1205 = vmatpush3.bf16.msra.mxu1 (!%p321_p2), %v1288_v3 }
   0xc   : > { %1197 = vmatpush3.bf16.msra.mxu0 (!%p321_p2), %v1289_v4  ;;  %1216 = vmatprep.subr.bf16.mxu1 (!%p321_p2), %v1318_v1 }
   0xd   : > { %s1537_s14 = smov (!%p360_p3, %s1137_s14), 1  ;;  %1210 = vmatprep.subr.bf16.mxu0 %v1318_v1 }
   0xe   : > { %s1413_s23 = sshll.u32 %s1537_s14, 3 }
   0xf   : > { %s367_s26 = scalar_lea.vmem %s1526_s1, %s1413_s23  ;;  %s363_s29 = scalar_lea.vmem %s1525_s0, %s1413_s23 }
  0x10   : > { %v374_v5 = vld [vmem:[%s367_s26] sm:$0xff] }
  0x11   : > { %v443_v6 = vpack.c.bf16 %v374_v5, %v374_v5  ;;  %v1425_v7 = vld [vmem:[%s363_s29] sm:$0xff]  ;;  %s1329_s29 = smov 24  }
  0x12   : > { %v375_v8 = vpack.c.bf16 %v1425_v7, %v1425_v7 }
  0x13   : > { %1207 = vmatmul.mubr.msk.bf16.vlgmr.msra.gmra.mrb[0].mxu1 %vm399_vm1, %v443_v6 }
  0x14   : > { %1199 = vmatmul.mubr.msk.bf16.vlgmr.msra.gmra.mrb[0].mxu0 %vm399_vm1, %v375_v8  ;;  %1218 = vmatprep.mubr.msk.bf16.mxu1 %vm1319_vm0, %v1318_v1 }
  0x15   : > { %1212 = vmatprep.mubr.msk.bf16.mxu0 %vm1319_vm0, %v1318_v1 }
  0xe6   : > { %v504_v11 = vpop.f32.mrb[0].mxu1 }
  0xe7   : > { %v505_v12 = vadd.f32 %v1149_v9, %v504_v11  ;;  %v1208_v13 = vpop.f32.mrb[1].mxu1  ;;  %v437_v14 = vpop.f32.mrb[0].mxu0 }
  0xe8   : > { %v507_v15 = vpop.f32.mrb[2].mxu1  ;;  %v438_v16 = vadd.f32 %v1145_v10, %v437_v14  ;;  %v1200_v17 = vpop.f32.mrb[1].mxu0 }
  0xe9   : > { %v1441_v18 = vpack.c.bf16 %v505_v12, %v505_v12  ;;  %v1209_v19 = vpop.f32.mrb[3].mxu1  ;;  %v440_v20 = vpop.f32.mrb[2].mxu0 }
  0xea   : > { %v1201_v21 = vpop.f32.mrb[3].mxu0  ;;  %v510_v22 = vpack.c.bf16 %v438_v16, %v438_v16 }
  0xeb   : > { %736 = vrot.lane.b32.xlu1 %v1441_v18, %s1320_s15  ;;  %625 = vrot.lane.b32.xlu0 %v1441_v18, %s1321_s16  ;;  %v517_v23 = vsel %vm512_vm2, %v1441_v18, 0 }
  0xec   : > { %1211 = vmatpush3.bf16.xpose.msra.mxu0 %v517_v23 }
  0xed   : > { %1222 = vmatprep.subr.bf16.mxu0 %v1318_v1 }
  0xef   : > { %734 = vrot.lane.b32.xlu1 %v510_v22, %s1320_s15  ;;  %623 = vrot.lane.b32.xlu0 %v510_v22, %s1321_s16 }
  0xf3   : > { %845 = vrot.lane.b32.xlu1 %v510_v22, %s1322_s17  ;;  %847 = vrot.lane.b32.xlu0 %v1441_v18, %s1322_s17 }
  0xf4   : > { %1213 = vmatmul.mubr.msk.bf16.vlgmr.msra.gmra.mrb[4].mxu0 %vm512_vm2, %v510_v22 }
  0xf5   : > { %1224 = vmatprep.mubr.msk.bf16.mxu0 %vm1319_vm0, %v1318_v1 }
  0xf7   : > { %568 = vrot.lane.b32.xlu1 %v1441_v18, %s1323_s18 }
 0x15d   : > { %v737_v24 = vpop.permute.xlu1 %736  ;;  %v626_v25 = vpop.permute.xlu0 %625 }
 0x15e   : > { %v631_v26 = vsel %vm512_vm2, %v626_v25, 0  ;;  %v742_v30 = vsel %vm512_vm2, %v737_v24, 0 }
 0x15f   : > { %1223 = vmatpush3.bf16.xpose.msra.mxu0 %v631_v26 }
 0x160   : > { %1234 = vmatprep.subr.bf16.mxu0 %v1318_v1 }
 0x161   : > { %v735_v27 = vpop.permute.xlu1 %734  ;;  %v624_v28 = vpop.permute.xlu0 %623 }
 0x165   : > { %v846_v29 = vpop.permute.xlu1 %845  ;;  %v848_v33 = vpop.permute.xlu0 %847 }
 0x166   : > { %1225 = vmatmul.mubr.msk.bf16.vlgmr.msra.gmra.mrb[8].mxu0 %vm512_vm2, %v624_v28  ;;  %v853_v34 = vsel %vm512_vm2, %v848_v33, 0  ;;  %v1290_v33 = vld [vmem:[%s1531_s6] sm:$0xff]  }
 0x167   : > { %1235 = vmatpush3.bf16.xpose.msra.mxu0 %v742_v30  ;;  %1236 = vmatprep.mubr.msk.bf16.mxu0 %vm1319_vm0, %v1318_v1 }
 0x168   : > { %1246 = vmatprep.subr.bf16.mxu0 %v1318_v1 }
 0x169   : > { %v569_v31 = vpop.permute.xlu1 %568 }
 0x16a   : > { %v575_v32 = vsel %vm573_vm3, %v569_v31, 0 }
 0x16b   : > { %1217 = vmatpush3.bf16.msra.mxu1 %v575_v32 }
 0x16c   : > { %1228 = vmatprep.subr.bf16.mxu1 %v1318_v1 }
 0x16e   : > { %1237 = vmatmul.mubr.msk.bf16.vlgmr.msra.gmra.mrb[12].mxu0 %vm512_vm2, %v735_v27 }
 0x16f   : > { %1247 = vmatpush3.bf16.xpose.msra.mxu0 %v853_v34  ;;  %1248 = vmatprep.mubr.msk.bf16.mxu0 %vm1319_vm0, %v1318_v1 }
 0x170   : > { %1258 = vmatprep.subr.bf16.mxu0 %v1318_v1 }
 0x176   : > { %1249 = vmatmul.mubr.msk.bf16.vlgmr.msra.gmra.mrb[16].mxu0 %vm512_vm2, %v846_v29 }
 0x177   : > { %1262 = vmatprep.mubr.msk.bf16.mxu0 %vm1319_vm0, %v1318_v1  ;;  %1259 = vmatpush3.bf16.msra.mxu0 %v1290_v33 }
 0x178   : > { %1260 = vmatprep.subr.bf16.mxu0 %v1318_v1 }
 0x1c7   : > { %v553_v35 = vpop.f32.mrb[4].mxu0 }
 0x1c8   : > { %v559_v36 = vmul.f32 0.35355338, %v553_v35  ;;  %v1214_v37 = vpop.f32.mrb[5].mxu0 }
 0x1c9   : > { %v556_v38 = vpop.f32.mrb[6].mxu0 }
 0x1ca   : > { %v1215_v39 = vpop.f32.mrb[7].mxu0  ;;  %v560_v40 = vsel %vm512_vm2, %v559_v36, -inf }
 0x1cb   : > { %561 = vmax.xlane.f32.xlu0 %v560_v40 }
 0x239   : > { %v667_v41 = vpop.f32.mrb[8].mxu0 }
 0x23a   : > { %v673_v42 = vmul.f32 0.35355338, %v667_v41  ;;  %v1226_v43 = vpop.f32.mrb[9].mxu0  ;;  %v1291_v41 = vld [vmem:[%s1531_s6 + $0x8] sm:$0xff]  }
 0x23b   : > { %v670_v44 = vpop.f32.mrb[10].mxu0  ;;  %1261 = vmatpush3.bf16.msra.mxu0 %v1291_v41 }
 0x23c   : > { %v1227_v45 = vpop.f32.mrb[11].mxu0  ;;  %v674_v46 = vsel %vm512_vm2, %v673_v42, -inf }
 0x23d   : > { %675 = vmax.xlane.f32.xlu1 %v674_v46 }
 0x241   : > { %v778_v47 = vpop.f32.mrb[12].mxu0 }
 0x242   : > { %v784_v48 = vmul.f32 0.35355338, %v778_v47  ;;  %v1238_v49 = vpop.f32.mrb[13].mxu0 }
 0x243   : > { %v781_v50 = vpop.f32.mrb[14].mxu0 }
 0x244   : > { %v1239_v51 = vpop.f32.mrb[15].mxu0  ;;  %v785_v52 = vsel %vm512_vm2, %v784_v48, -inf }
 0x245   : > { %786 = vmax.xlane.f32.xlu0 %v785_v52 }
 0x249   : > { %v889_v53 = vpop.f32.mrb[16].mxu0 }
 0x24a   : > { %v895_v54 = vmul.f32 0.35355338, %v889_v53  ;;  %v1250_v55 = vpop.f32.mrb[17].mxu0 }
 0x24b   : > { %v892_v56 = vpop.f32.mrb[18].mxu0 }
 0x24c   : > { %v1251_v57 = vpop.f32.mrb[19].mxu0  ;;  %v896_v58 = vsel %vm512_vm2, %v895_v54, -inf }
 0x24d   : > { %897 = vmax.xlane.f32.xlu0 %v896_v58 }
 0x24e   : > { %792 = vrot.lane.b32.xlu1 %v1441_v18, %s1324_s19  ;;  %s371_s19 = scalar_lea.vmem %s1535_s10, %s1413_s23 }
 0x252   : > { %903 = vrot.lane.b32.xlu1 %v1441_v18, %s1325_s20 }
 0x258   : > { %v562_v59 = vpop.xlane.xlu0 %561 }
 0x259   : > { %v563_v60 = vsub.f32 %v559_v36, %v562_v59 }
 0x25b   : > { %v564_v61 = vmul.f32 1.442695, %v563_v60 }
 0x25d   : > { %1292 = vpow2.f32 %v564_v61 }
 0x263   : > { %681 = vrot.lane.b32.xlu0 %v1441_v18, %s1326_s21 }
 0x267   : > { %v1293_v62 = vpop.eup %1292 }
 0x268   : > { %v566_v63 = vpack.c.bf16 %v1293_v62, %v1293_v62  ;;  %v617_v25 = vsel %vm512_vm2, %v1293_v62, 0.0 }
 0x26a   : > { %1219 = vmatmul.mubr.msk.bf16.vlgmr.msra.gmra.mrb[4].mxu1 %vm512_vm2, %v566_v63  ;;  %v1161_v63 = vld [vmem:[%s1532_s7] ss:$0 sm:$0xff] }
 0x26b   : > { %1230 = vmatprep.mubr.msk.bf16.mxu1 %vm1319_vm0, %v1318_v1 }
 0x2ca   : > { %v676_v0 = vpop.xlane.xlu1 %675 }
 0x2cb   : > { %v677_v2 = vsub.f32 %v673_v42, %v676_v0 }
 0x2cd   : > { %v678_v3 = vmul.f32 1.442695, %v677_v2 }
 0x2ce   : > { %v793_v15 = vpop.permute.xlu1 %792 }
 0x2cf   : > { %1294 = vpow2.f32 %v678_v3  ;;  %v798_v19 = vsel %vm573_vm3, %v793_v15, 0 }
 0x2d2   : > { %v787_v4 = vpop.xlane.xlu0 %786  ;;  %v904_v20 = vpop.permute.xlu1 %903 }
 0x2d3   : > { %v788_v5 = vsub.f32 %v784_v48, %v787_v4  ;;  %v909_v24 = vsel %vm573_vm3, %v904_v20, 0 }
 0x2d5   : > { %v789_v6 = vmul.f32 1.442695, %v788_v5 }
 0x2d7   : > { %1296 = vpow2.f32 %v789_v6 }
 0x2d9   : > { %v1295_v8 = vpop.eup %1294 }
 0x2da   : > { %v898_v9 = vpop.xlane.xlu0 %897  ;;  %v729_v10 = vsel %vm512_vm2, %v1295_v8, 0.0  ;;  %v680_v17 = vpack.c.bf16 %v1295_v8, %v1295_v8 }
 0x2db   : > { %v899_v11 = vsub.f32 %v895_v54, %v898_v9  ;;  %730 = vadd.xlane.f32.xlu0 %v729_v10 }
 0x2dd   : > { %v900_v12 = vmul.f32 1.442695, %v899_v11 }
 0x2de   : > { %v682_v13 = vpop.permute.xlu0 %681 }
 0x2df   : > { %1298 = vpow2.f32 %v900_v12  ;;  %v687_v14 = vsel %vm573_vm3, %v682_v13, 0 }
 0x2e0   : > { %1229 = vmatpush3.bf16.msra.mxu1 %v687_v14 }
 0x2e1   : > { %v1297_v16 = vpop.eup %1296  ;;  %1240 = vmatprep.subr.bf16.mxu1 %v1318_v1 }
 0x2e2   : > { %v840_v18 = vsel %vm512_vm2, %v1297_v16, 0.0  ;;  %v791_v22 = vpack.c.bf16 %v1297_v16, %v1297_v16 }
 0x2e3   : > { %841 = vadd.xlane.f32.xlu1 %v840_v18  ;;  %1231 = vmatmul.mubr.msk.bf16.vlgmr.msra.gmra.mrb[8].mxu1 %vm512_vm2, %v680_v17 }
 0x2e4   : > { %1241 = vmatpush3.bf16.msra.mxu1 %v798_v19  ;;  %1242 = vmatprep.mubr.msk.bf16.mxu1 %vm1319_vm0, %v1318_v1  ;;  %v1166_v19 = vld [vmem:[%s1534_s9] ss:$0 sm:$0xff] }
 0x2e5   : > { %1252 = vmatprep.subr.bf16.mxu1 %v1318_v1 }
 0x2e9   : > { %v1299_v21 = vpop.eup %1298 }
 0x2ea   : > { %v951_v23 = vsel %vm512_vm2, %v1299_v21, 0.0  ;;  %v902_v26 = vpack.c.bf16 %v1299_v21, %v1299_v21 }
 0x2eb   : > { %952 = vadd.xlane.f32.xlu0 %v951_v23  ;;  %1243 = vmatmul.mubr.msk.bf16.vlgmr.msra.gmra.mrb[12].mxu1 %vm512_vm2, %v791_v22 }
 0x2ec   : > { %1253 = vmatpush3.bf16.msra.mxu1 %v909_v24  ;;  %1254 = vmatprep.mubr.msk.bf16.mxu1 %vm1319_vm0, %v1318_v1 }
 0x2ef   : > { %618 = vadd.xlane.f32.xlu0 %v617_v25 }
 0x2f3   : > { %1255 = vmatmul.mubr.msk.bf16.vlgmr.msra.gmra.mrb[16].mxu1 %vm512_vm2, %v902_v26 }
 0x33d   : > { %v611_v27 = vpop.f32.mrb[4].mxu1 }
 0x33e   : > { %v1220_v28 = vpop.f32.mrb[5].mxu1 }
 0x33f   : > { %v614_v29 = vpop.f32.mrb[6].mxu1 }
 0x340   : > { %v1221_v30 = vpop.f32.mrb[7].mxu1 }
 0x368   : > { %v731_v31 = vpop.xlane.xlu0 %730 }
 0x369   : > { %1300 = vrcp.f32 %v731_v31 }
 0x370   : > { %v842_v32 = vpop.xlane.xlu1 %841 }
 0x371   : > { %1302 = vrcp.f32 %v842_v32 }
 0x373   : > { %v1301_v34 = vpop.eup %1300 }
 0x378   : > { %v953_v39 = vpop.xlane.xlu0 %952 }
 0x379   : > { %1304 = vrcp.f32 %v953_v39 }
 0x37b   : > { %v1303_v42 = vpop.eup %1302 }
 0x37c   : > { %v619_v53 = vpop.xlane.xlu0 %618 }
 0x37d   : > { %1306 = vrcp.f32 %v619_v53 }
 0x383   : > { %v1305_v1 = vpop.eup %1304 }
 0x387   : > { %v1307_v54 = vpop.eup %1306 }
 0x388   : > { %v621_v56 = vmul.f32 %v1307_v54, %v611_v27 }
 0x3b6   : > { %v723_v35 = vpop.f32.mrb[8].mxu1 }
 0x3b7   : > { %v733_v36 = vmul.f32 %v1301_v34, %v723_v35  ;;  %v1232_v37 = vpop.f32.mrb[9].mxu1 }
 0x3b8   : > { %v726_v38 = vpop.f32.mrb[10].mxu1 }
 0x3b9   : > { %v1233_v40 = vpop.f32.mrb[11].mxu1  ;;  %957 = vrot.lane.b32.xlu1 %v733_v36, %s1327_s25 }
 0x3be   : > { %v834_v43 = vpop.f32.mrb[12].mxu1 }
 0x3bf   : > { %v844_v44 = vmul.f32 %v1303_v42, %v834_v43  ;;  %v1244_v45 = vpop.f32.mrb[13].mxu1 }
 0x3c0   : > { %v837_v46 = vpop.f32.mrb[14].mxu1 }
 0x3c1   : > { %961 = vrot.lane.b32.xlu0 %v844_v44, %s1328_s28  ;;  %v1245_v47 = vpop.f32.mrb[15].mxu1 }
 0x3c6   : > { %v945_v48 = vpop.f32.mrb[16].mxu1 }
 0x3c7   : > { %v955_v49 = vmul.f32 %v1305_v1, %v945_v48  ;;  %v1256_v50 = vpop.f32.mrb[17].mxu1 }
 0x3c8   : > { %v948_v51 = vpop.f32.mrb[18].mxu1 }
 0x3c9   : > { %v1257_v52 = vpop.f32.mrb[19].mxu1  ;;  %965 = vrot.lane.b32.xlu1 %v955_v49, %s1329_s29 }
 0x42b   : > { %v958_v55 = vpop.permute.xlu1 %957 }
 0x42c   : > { %v968_v58 = vsel %vm512_vm2, %v621_v56, %v958_v55 }
 0x433   : > { %v962_v57 = vpop.permute.xlu0 %961 }
 0x434   : > { %v970_v59 = vsel %vm969_vm4, %v968_v58, %v962_v57 }
 0x43b   : > { %v966_v60 = vpop.permute.xlu1 %965 }
 0x43c   : > { %v972_v61 = vsel %vm971_vm5, %v970_v59, %v966_v60 }
 0x43d   : > { %v973_v62 = vpack.c.bf16 %v972_v61, %v972_v61 }
 0x43f   : > { %1263 = vmatmul.mubr.msk.bf16.vlgmr.msra.gmra.mrb[20].mxu0 %vm399_vm1, %v973_v62 }
 0x512   : > { %v1034_v0 = vpop.f32.mrb[20].mxu0 }
 0x513   : > { %v1035_v2 = vadd.f32 %v1161_v63, %v1034_v0  ;;  %v1264_v3 = vpop.f32.mrb[21].mxu0 }
 0x514   : > { %v1037_v4 = vpop.f32.mrb[22].mxu0 }
 0x515   : > { %v1265_v5 = vpop.f32.mrb[23].mxu0  ;;  %v1040_v6 = vadd.f32 %v1035_v2, %v1425_v7  ;;  %v1165_v7 = vld [vmem:[%s1533_s8] ss:$0 sm:$0xff] }
 0x517   : > { %v1043_v8 = vsel %vm399_vm1, %v1040_v6, 0.0 }
 0x518   : > { %1044 = vadd.xlane.f32.xlu1 %v1043_v8 }
 0x5a5   : > { %v1045_v9 = vpop.xlane.xlu1 %1044 }
 0x5a6   : > { %v1047_v10 = vmul.f32 0.03125, %v1045_v9 }
 0x5a8   : > { %v1048_v11 = vsub.f32 %v1040_v6, %v1047_v10 }
 0x5aa   : > { %v1049_v12 = vmul.f32 %v1048_v11, %v1048_v11 }
 0x5ac   : > { %v1050_v13 = vsel %vm399_vm1, %v1049_v12, 0.0 }
 0x5ad   : > { %1051 = vadd.xlane.f32.xlu0 %v1050_v13 }
 0x63a   : > { %v1052_v14 = vpop.xlane.xlu0 %1051 }
 0x63b   : > { %v1053_v15 = vmul.f32 0.03125, %v1052_v14 }
 0x63d   : > { %v1054_v16 = vadd.f32 1e-05, %v1053_v15 }
 0x63f   : > { %1308 = vrsqrt.f32 %v1054_v16 }
 0x649   : > { %v1309_v17 = vpop.eup %1308 }
 0x64a   : > { %v1056_v18 = vmul.f32 %v1309_v17, %v1048_v11 }
 0x64c   : > { %v1063_v20 = vmul.f32 %v1165_v7, %v1056_v18 }
 0x64e   : > { %v1070_v21 = vadd.f32 %v1166_v19, %v1063_v20 }
 0x650   : > { %1071 = vst.msk [vmem:[%s371_s19] sm:$0xff] %vm399_vm1, %v1070_v21 }
 0x651 PF: > { %s20_s13 = sadd.s32 1, %s1316_s13  }
 0x652   : > { %p17_p4 = scmp.ge.s32.totalorder %s20_s13, 4  }
 0x654   :  { %19 = sbr.rel (!%p17_p4) target bundleno = 1 (0x1), region = 93 }

// kernel: transformer_forward.19
= control target key start
LH: loop header
LB: loop body
LE: loop exit
PB: predicated region body
PF: predicated region fallthrough
CT: control target
= control target key end

     0   :  { %12 = vsyncpa [#allocation3], 0  ;;  %s933_s0 = inlined_call_operand.vmem [shape: f32[2,8,32], index: 0, kind: input, shape index: {}]   ;;  %s934_s1 = inlined_call_operand.vmem [shape: bf16[32,128], index: 1, kind: input, shape index: {}]   ;;  %s935_s2 = inlined_call_operand.vmem [shape: f32[1,128], index: 2, kind: input, shape index: {}]   ;;  %s936_s3 = inlined_call_operand.vmem [shape: bf16[128,32], index: 3, kind: input, shape index: {}]   ;;  %s937_s4 = inlined_call_operand.vmem [shape: f32[1,32], index: 4, kind: input, shape index: {}]   ;;  %s938_s5 = inlined_call_operand.vmem [shape: f32[1,32], index: 5, kind: input, shape index: {}]   ;;  %s939_s6 = inlined_call_operand.vmem [shape: f32[1,32], index: 6, kind: input, shape index: {}]   ;;  %s940_s7 = inlined_call_operand.hbm [shape: f32[2,8,32], index: 7, kind: output, shape index: {}]  }
   0x1   :  { %14 = vsyncpa [#allocation3 + $0x1], 0  ;;  %s787_s24 = smov 0   ;;  %s789_s25 = smov 0  }
   0x2   :  { %s791_s26 = smov 0   ;;  %s793_s27 = smov 0  }
   0x3 LB: > { %s808_s28 = sadd.s32 4294967295, %s742_s27   ;;  %s562_s29 = sadd.s32 4294967294, %s742_s27   ;;  %s742_s27 = sphi %s793_s27, %s946_s27   ;;  %s738_s26 = sphi %s791_s26, %s945_s26   ;;  %s734_s25 = sphi %s789_s25, %s944_s25   ;;  %s730_s24 = sphi %s787_s24, %s943_s24  }
   0x4   : > { %s812_s30 = sadd.s32 1, %s742_s27   ;;  %s179_s8 = sadd.s32 1, %s738_s26 }
   0x5   : > { %s176_s9 = ssub.s32 %s742_s27, %s812_s30  ;;  %p189_p0 = scmp.ne.s32.totalorder %s738_s26, %s734_s25 }
   0x6   : > { %p177_p1 = scmp.eq.s32.totalorder %s176_s9, 0  ;;  %p190_p2 = scmp.eq.s32.totalorder %s808_s28, 1 }
   0x7   : > { %p195_p3 = scmp.ne.s32.totalorder %s734_s25, %s730_s24  ;;  %p196_p4 = scmp.eq.s32.totalorder %s562_s29, 1 }
   0x8   : > { %s823_s10 = scalar_select %p177_p1, %s738_s26, %s179_s8  }
   0x9   : > { %p825_p5 = por %p190_p2, %p189_p0  ;;  %p829_p6 = por %p196_p4, %p195_p3 }
   0xa   : > { %p565_p7 = scmp.ge.s32.totalorder %s742_s27, 1  ;;  %p239_p8 = scmp.lt.s32.totalorder %s742_s27, 3 }
   0xc   : > { %p240_p9 = pnand %p565_p7, %p239_p8 }
   0xd   : > { %v668_v0 = vld [vmem:[%s934_s1] sm:$0xff] (!%p240_p9)   ;;  %v744_v1 = vmov (!%p240_p9), 0.0   ;;  %v669_v2 = vld [vmem:[%s934_s1 + $0x8] sm:$0xff] (!%p240_p9)   ;;  %vm745_vm0 = vmmov (!%p240_p9), 0   ;;  %p270_p10 = scmp.lt.s32.totalorder (!%p240_p9), %s808_s28, 1  ;;  %vm300_vm1 = vcmask (!%p240_p9), 261120  }
   0xe   : > { %243 = sbr.rel (%p240_p9) target bundleno = 789 (0x315), region = 48  ;;  %599 = vmatprep.subr.bf16.mxu0 (!%p240_p9), %v744_v1  ;;  %607 = vmatprep.subr.bf16.mxu1 (!%p240_p9), %v744_v1  ;;  %v670_v3 = vld [vmem:[%s936_s3] sm:$0xff] (!%p240_p9)   ;;  %v671_v4 = vld [vmem:[%s936_s3 + $0x8] sm:$0xff] (!%p240_p9)   ;;  %v672_v6 = vld [vmem:[%s936_s3 + $0x10] sm:$0xff] (!%p240_p9)   ;;  %s267_s14 = sand.u32 (!%p240_p9), 1, %s734_s25  }
   0xf   : > { %600 = vmatpush3.bf16.msra.mxu0 (!%p240_p9), %v668_v0  ;;  %603 = vmatprep.mubr.msk.bf16.mxu0 (!%p240_p9), %vm745_vm0, %v744_v1  ;;  %v673_v8 = vld [vmem:[%s936_s3 + $0x18] sm:$0xff] (!%p240_p9)   ;;  %v674_v9 = vld [vmem:[%s936_s3 + $0x20] sm:$0xff] (!%p240_p9)   ;;  %v675_v10 = vld [vmem:[%s936_s3 + $0x28] sm:$0xff] (!%p240_p9)   ;;  %s566_s15 = sshll.u32 (!%p240_p9), %s267_s14, 3  ;;  %s584_s20 = sshll.u32 (!%p240_p9), %s808_s28, 7 }
  0x10   : > { %601 = vmatprep.subr.bf16.mxu0 (!%p240_p9), %v744_v1  ;;  %623 = vmatprep.mubr.msk.bf16.mxu1 (!%p240_p9), %vm745_vm0, %v744_v1  ;;  %v676_v11 = vld [vmem:[%s936_s3 + $0x30] sm:$0xff] (!%p240_p9)   ;;  %v677_v12 = vld [vmem:[%s936_s3 + $0x38] sm:$0xff] (!%p240_p9)   ;;  %v568_v13 = vld [vmem:[%s935_s2] ss:$0 sm:$0xff] (!%p240_p9)  ;;  %s269_s21 = scalar_lea.vmem (!%p240_p9), [#allocation2], %s566_s15  ;;  %s490_s9 = scalar_lea.sflag (!%p240_p9), [#allocation3], %s267_s14 }
  0x11   : > { %608 = vmatpush3.bf16.msra.mxu1 (!%p240_p9), %v670_v3  ;;  %v572_v21 = vld [vmem:[%s937_s4] ss:$0 sm:$0xff] (!%p240_p9) }
  0x12   : > { %609 = vmatprep.subr.bf16.mxu1 (!%p240_p9), %v744_v1  ;;  %v581_v38 = vld [vmem:[%s938_s5] ss:$0 sm:$0xff] (!%p240_p9) }
  0x13   : > { %602 = vmatpush3.bf16.msra.mxu0 (!%p240_p9), %v669_v2  ;;  %v582_v40 = vld [vmem:[%s939_s6] ss:$0 sm:$0xff] (!%p240_p9) }
  0x15   : > { %s271_s19 = scalar_select %p270_p10, %s808_s28, 1  ;;  %610 = vmatpush3.bf16.msra.mxu1 %v671_v4 }
  0x16   : > { %611 = vmatprep.subr.bf16.mxu1 %v744_v1  ;;  %s746_s28 = smov [#allocation2]  }
  0x17   : > { %s567_s22 = sshll.u32 %s271_s19, 3  ;;  %s684_s15 = sshll.u32 %s746_s28, 4  ;;  %s685_s15 = int_to_ptr.vmem [resolvable:$false] %s684_s15 }
  0x18   : > { %s273_s8 = scalar_lea.vmem %s933_s0, %s567_s22  ;;  %s503_s22 = sshll.u32 %s269_s21, 4  ;;  %s892_s22 = int_to_ptr.vmem [resolvable:$true] %s503_s22 }
  0x19   : > { %v275_v5 = vld [vmem:[%s273_s8] sm:$0xff]  ;;  %612 = vmatpush3.bf16.msra.mxu1 %v672_v6  ;;  %s890_s8 = scalar_lea.hbm %s940_s7, %s584_s20  ;;  %s680_s13 = scalar_lea.vmem %s892_s22, 128 }
  0x1a   : > { %v276_v7 = vpack.c.bf16 %v275_v5, %v275_v5  ;;  %613 = vmatprep.subr.bf16.mxu1 %v744_v1  ;;  %p681_p11 = scmp.ne.s32.totalorder %s892_s22, %s680_s13  ;;  %s686_s16 = scalar_lea.vmem %s685_s15, 256 }
  0x1b   : > { %p687_p0 = scmp.lt.s32.totalorder %s892_s22, %s685_s15  ;;  %p688_p1 = scmp.lt.s32.totalorder %s686_s16, %s680_s13 }
  0x1c   : > { %604 = vmatmul.mubr.msk.bf16.vlgmr.msra.gmra.mrb[0].mxu0 %vm300_vm1, %v276_v7  ;;  %p682_p12 = pnand %p681_p11, %p825_p5 }
  0x1d   : > { %614 = vmatpush3.bf16.msra.mxu1 %v673_v8  ;;  %p689_p2 = por %p688_p1, %p687_p0 }
  0x1e   : > { %615 = vmatprep.subr.bf16.mxu1 %v744_v1  ;;  %p683_p13 = pneg %p682_p12 }
  0x20   : > { %p690_p3 = pnand %p689_p2, %p683_p13 }
  0x21   : > { %616 = vmatpush3.bf16.msra.mxu1 %v674_v9 }
  0x22   : > { %617 = vmatprep.subr.bf16.mxu1 %v744_v1 }
  0x25   : > { %618 = vmatpush3.bf16.msra.mxu1 %v675_v10 }
  0x26   : > { %619 = vmatprep.subr.bf16.mxu1 %v744_v1 }
  0x29   : > { %620 = vmatpush3.bf16.msra.mxu1 %v676_v11 }
  0x2a   : > { %621 = vmatprep.subr.bf16.mxu1 %v744_v1 }
  0x2d   : > { %622 = vmatpush3.bf16.msra.mxu1 %v677_v12 }
  0xef   : > { %v338_v14 = vpop.f32.mrb[0].mxu0 }
  0xf0   : > { %v339_v15 = vadd.f32 %v568_v13, %v338_v14  ;;  %v605_v16 = vpop.f32.mrb[1].mxu0 }
  0xf1   : > { %v341_v17 = vpop.f32.mrb[2].mxu0 }
  0xf2   : > { %v344_v18 = vmax.f32 %v339_v15, 0.0  ;;  %v606_v19 = vpop.f32.mrb[3].mxu0 }
  0xf4   : > { %v345_v20 = vpack.c.bf16 %v344_v18, %v344_v18 }
  0xf6   : > { %624 = vmatmul.mubr.bf16.vlgmr.msra.gmra.mrb[0].mxu1 %v345_v20 }
 0x1c9   : > { %v451_v22 = vpop.f32.mrb[0].mxu1 }
 0x1ca   : > { %v452_v23 = vadd.f32 %v572_v21, %v451_v22  ;;  %v625_v24 = vpop.f32.mrb[1].mxu1 }
 0x1cb   : > { %v454_v25 = vpop.f32.mrb[2].mxu1 }
 0x1cc   : > { %v626_v26 = vpop.f32.mrb[3].mxu1  ;;  %v457_v27 = vadd.f32 %v452_v23, %v275_v5 }
 0x1ce   : > { %v460_v28 = vsel %vm300_vm1, %v457_v27, 0.0 }
 0x1cf   : > { %461 = vadd.xlane.f32.xlu0 %v460_v28 }
 0x25c   : > { %v462_v29 = vpop.xlane.xlu0 %461 }
 0x25d   : > { %v464_v30 = vmul.f32 0.03125, %v462_v29 }
 0x25f   : > { %v465_v31 = vsub.f32 %v457_v27, %v464_v30 }
 0x261   : > { %v466_v32 = vmul.f32 %v465_v31, %v465_v31 }
 0x263   : > { %v467_v33 = vsel %vm300_vm1, %v466_v32, 0.0 }
 0x264   : > { %468 = vadd.xlane.f32.xlu0 %v467_v33 }
 0x2f1   : > { %v469_v34 = vpop.xlane.xlu0 %468 }
 0x2f2   : > { %v470_v35 = vmul.f32 0.03125, %v469_v34 }
 0x2f4   : > { %v471_v36 = vadd.f32 1e-05, %v470_v35 }
 0x2f6   : > { %678 = vrsqrt.f32 %v471_v36 }
 0x300   : > { %v679_v37 = vpop.eup %678 }
 0x301   : > { %v473_v39 = vmul.f32 %v679_v37, %v465_v31 }
 0x303   : > { %v480_v41 = vmul.f32 %v581_v38, %v473_v39 }
 0x305   : > { %v487_v42 = vadd.f32 %v582_v40, %v480_v41 }
 0x307   : > { %488 = vst.msk [vmem:[%s269_s21] sm:$0xff] %vm300_vm1, %v487_v42 }
 0x308   : > { %693 = shalt.err (!%p690_p3)
}
 0x309   : > { %s694_s14 = scalar_lea.hbm %s890_s8, 128  ;;  %s698_s19 = scalar_lea.hbm %s940_s7, 256 }
 0x30a   : > { %p695_p4 = scmp.ne.s32.totalorder %s890_s8, %s694_s14  ;;  %p699_p9 = scmp.lt.u32.totalorder %s890_s8, %s940_s7 }
 0x30b   : > { %p700_p10 = scmp.lt.u32.totalorder %s698_s19, %s694_s14  ;;  %p702_p12 = scmp.lt.u32.totalorder %s694_s14, %s890_s8 }
 0x30c   : > { %p696_p7 = pnand %p695_p4, %p825_p5 }
 0x30d   : > { %p701_p11 = por %p700_p10, %p699_p9 }
 0x30e   : > { %p697_p8 = pneg %p696_p7 }
 0x30f   : > { %p703_p13 = por %p702_p12, %p701_p11 }
 0x311   : > { %p704_p0 = pnand %p703_p13, %p697_p8 }
 0x313   : > { %707 = shalt.err (!%p704_p0)
}
 0x314   : > { %627 = dma.vmem_to_hbm [thread:$0]  (%p825_p5), %s892_s22, 128, %s890_s8, %s490_s9  }
 0x315 PF: > { %p633_p1 = scmp.ge.s32.totalorder %s742_s27, 2  ;;  %s515_s23 = sand.u32 1, %s730_s24  }
 0x316   : > { %s516_s29 = scalar_lea.sflag [#allocation3], %s515_s23 }
 0x317   : > { %p630_p2 = pnand %p633_p1, %p829_p6 }
 0x319   : > { %725 = dma.done.wait (!%p630_p2), %s516_s29, 128  }
 0x31a   : > { %727 = vsyncadd (!%p630_p2), %s516_s29, 4294967168  ;;  %p17_p3 = scmp.ge.s32.totalorder %s812_s30, 4   ;;  %s943_s24 = smov %s734_s25 }
 0x31b   : > { %s944_s25 = smov %s738_s26  ;;  %s945_s26 = smov %s823_s10 }
 0x31c   : > { %s946_s27 = smov %s812_s30  ;;  %19 = sbr.rel (!%p17_p3) target bundleno = 3 (0x3), region = 83 }
 0x323   :  { %521 = vsyncpa [#allocation3], 1 }
 0x324   :  { %523 = vsyncpa [#allocation3 + $0x1], 1 }

</bundles_post_ra>
